<compile_context>
chip_gen: v5e
topology: v5e:2x2
jax: 0.10.0
libtpu: 0.0.40
codegen_flags: <defaults>
</compile_context>

<pallas_src>
import functools
import math

import jax
import jax.numpy as jnp
from jax.experimental import pallas as pl
from jax.experimental.pallas import tpu as pltpu

NEG_SLOPE = 0.01  # nn.LeakyReLU default negative_slope


def _leaky(x):
    return jnp.where(x >= 0, x, NEG_SLOPE * x)


def _layernorm(h):
    mu = jnp.mean(h, axis=-1, keepdims=True)
    d = h - mu
    var = jnp.mean(d * d, axis=-1, keepdims=True)
    return d * jax.lax.rsqrt(var + 1e-5)


# ----------------------------------------------------------------------------
# Fused forward kernel: one grid step == B_TILE batch elements, all in VMEM.
# ----------------------------------------------------------------------------
def _generator_kernel(
    z_ref,        # (B_TILE, z_dim)     f32  latents for this tile
    pos_ref,      # (n, dim)            f32  shared positional tokens
    m0w_ref,      # (z_dim, dim)        bf16 mapping layer 0
    m0b_ref,      # (1, dim)            f32
    mw_ref,       # (5, dim, dim)       bf16 mapping layers 1..5
    mb_ref,       # (5, 1, dim)         f32
    modw_ref,     # (L, dim, 4*dim)     bf16 [gamma1|beta1|gamma2|beta2]
    modb_ref,     # (L, 1, 4*dim)       f32
    ln_ref,       # (L, 4, dim)         f32  rows: ln1_w, ln1_b, ln2_w, ln2_b
    qkvw_ref,     # (L, dim, 3*inner)   bf16 q columns pre-scaled by 1/sqrt(dh)
    outw_ref,     # (L, heads, dh, dim) bf16 out-proj split per head
    outb_ref,     # (L, 1, dim)         f32
    ff1w_ref,     # (L, dim, mlp)       bf16
    ff1b_ref,     # (L, 1, mlp)         f32
    ff2w_ref,     # (L, mlp, dim)       bf16
    ff2b_ref,     # (L, 1, dim)         f32
    rgb1w_ref,    # (dim, 2*dim)        bf16
    rgb1b_ref,    # (1, 2*dim)          f32
    rgb2w_ref,    # (2*dim, rgb_out)    bf16
    rgb2b_ref,    # (1, rgb_out)        f32
    o_ref,        # (B_TILE, n, rgb_out) output slab for this tile
    *, dim, heads, dim_head, n_tokens, b_tile, n_blocks, n_map_layers,
):
    f32 = jnp.float32
    bf16 = jnp.bfloat16
    inner = heads * dim_head
    rows = b_tile * n_tokens

    def mm(x, w, b=None):
        # bf16 weights; cast activation at the MXU boundary, f32 accumulate.
        y = jnp.dot(x.astype(bf16), w, preferred_element_type=f32)
        return y if b is None else y + b

    # ---- mapping network: 6 x (Linear + LeakyReLU), M = b_tile rows, once ----
    w = _leaky(mm(z_ref[...], m0w_ref[...], m0b_ref[...]))
    for i in range(n_map_layers):
        w = _leaky(mm(w, mw_ref[i], mb_ref[i]))
    # w: (b_tile, dim) style vectors

    # tokens: pos broadcast over the batch tile, stacked along sublanes
    pos = pos_ref[...]                                   # (n, dim) f32
    x = jnp.broadcast_to(pos[None], (b_tile, n_tokens, dim)).reshape(rows, dim)

    for l in range(n_blocks):
        ln = ln_ref[l]                                   # (4, dim) f32
        # Four modulation projections in one 4*dim-lane MXU pass, once/block.
        mod = mm(w, modw_ref[l], modb_ref[l])            # (b_tile, 4*dim)
        mod_rows = jnp.broadcast_to(
            mod[:, None, :], (b_tile, n_tokens, 4 * dim)).reshape(rows, 4 * dim)
        gamma1 = mod_rows[:, 0 * dim:1 * dim]
        beta1 = mod_rows[:, 1 * dim:2 * dim]
        gamma2 = mod_rows[:, 2 * dim:3 * dim]
        beta2 = mod_rows[:, 3 * dim:4 * dim]

        # --- attention sub-block: x = x + Attn(SLN(x, w)) ---
        xn = _layernorm(x) * ln[0:1] + ln[1:2]
        xn = xn * gamma1 + beta1
        qkv = mm(xn, qkvw_ref[l])                        # (rows, 3*inner), no bias
        qkv3 = qkv.reshape(b_tile, n_tokens, 3 * inner)
        attn = jnp.zeros((rows, dim), f32)
        for h in range(heads):
            q_h = qkv3[:, :, h * dim_head:(h + 1) * dim_head]
            k_h = qkv3[:, :, inner + h * dim_head:inner + (h + 1) * dim_head]
            v_h = qkv3[:, :, 2 * inner + h * dim_head:2 * inner + (h + 1) * dim_head]
            # contract dim_head directly (no k.T transpose); batched over b_tile
            s = jnp.einsum('bqd,bkd->bqk', q_h, k_h, preferred_element_type=f32)
            p = jnp.exp(s - jnp.max(s, axis=-1, keepdims=True))
            p = p * pl.reciprocal(jnp.sum(p, axis=-1, keepdims=True), approx=True)
            o_h = jnp.einsum('bqk,bkd->bqd', p, v_h, preferred_element_type=f32)
            # accumulate through this head's slice of the out projection
            # (replaces the head concat)
            attn = attn + jnp.dot(o_h.reshape(rows, dim_head).astype(bf16),
                                  outw_ref[l, h], preferred_element_type=f32)
        x = x + attn + outb_ref[l]

        # --- MLP sub-block: x = x + MLP(SLN(x, w)) ---
        xn = _layernorm(x) * ln[2:3] + ln[3:4]
        xn = xn * gamma2 + beta2
        h1 = jax.nn.gelu(mm(xn, ff1w_ref[l], ff1b_ref[l]))
        x = x + mm(h1, ff2w_ref[l], ff2b_ref[l])

    # ---- to_rgb head: Linear -> LeakyReLU -> Linear ----
    y = _leaky(mm(x, rgb1w_ref[...], rgb1b_ref[...]))
    y = mm(y, rgb2w_ref[...], rgb2b_ref[...])
    # Only HBM write of the whole forward (leading-dim split only, no lane move).
    o_ref[...] = y.reshape(b_tile, n_tokens, -1).astype(o_ref.dtype)


# ----------------------------------------------------------------------------
# Parameter construction (deterministic, torch.nn.Linear-style init),
# packed into the fused/stacked layout the kernel wants.
# ----------------------------------------------------------------------------
def _init_linear(key, fan_in, fan_out, bias=True):
    kw, kb = jax.random.split(key)
    bound = 1.0 / math.sqrt(fan_in)
    w = jax.random.uniform(kw, (fan_in, fan_out), jnp.float32, -bound, bound)
    b = (jax.random.uniform(kb, (fan_out,), jnp.float32, -bound, bound)
         if bias else None)
    return w, b


def init_params(key, cfg):
    dim = cfg["g_dim"]
    heads, dim_head = cfg["heads"], cfg["dim_head"]
    inner = heads * dim_head
    mlp = cfg["mlp_dim"]
    L = cfg["g_blocks"]
    n = (cfg["image_size"] // cfg["patch_size"]) ** 2
    rgb_out = cfg["patch_size"] * cfg["patch_size"] * cfg["image_dim"]
    bf16 = jnp.bfloat16

    keys = iter(jax.random.split(key, 256))
    p = {}

    # pos_embedding ~ torch.randn(1, num_patches, dim); stored (n, dim) f32.
    p["pos_embedding"] = jax.random.normal(next(keys), (n, dim), jnp.float32)

    # mapping network: Linear(z_dim,g_dim) + 5x Linear(g_dim,g_dim), LeakyReLU
    w0, b0 = _init_linear(next(keys), cfg["z_dim"], dim)
    p["map0_w"], p["map0_b"] = w0.astype(bf16), b0.reshape(1, dim)
    mws, mbs = [], []
    for _ in range(5):
        w_, b_ = _init_linear(next(keys), dim, dim)
        mws.append(w_)
        mbs.append(b_.reshape(1, dim))
    p["maps_w"], p["maps_b"] = jnp.stack(mws).astype(bf16), jnp.stack(mbs)

    # transformer blocks (stacked over depth)
    modw, modb, ln, qkvw, outw, outb = [], [], [], [], [], []
    f1w, f1b, f2w, f2b = [], [], [], []
    for _ in range(L):
        g1w, g1b = _init_linear(next(keys), dim, dim)
        b1w, b1b = _init_linear(next(keys), dim, dim)
        g2w, g2b = _init_linear(next(keys), dim, dim)
        b2w, b2b = _init_linear(next(keys), dim, dim)
        # fuse the four modulation projections into one (dim, 4*dim) matmul
        modw.append(jnp.concatenate([g1w, b1w, g2w, b2w], axis=1))
        modb.append(jnp.concatenate([g1b, b1b, g2b, b2b]).reshape(1, 4 * dim))
        ln.append(jnp.stack([jnp.ones((dim,), jnp.float32),
                             jnp.zeros((dim,), jnp.float32),
                             jnp.ones((dim,), jnp.float32),
                             jnp.zeros((dim,), jnp.float32)]))
        qw, _ = _init_linear(next(keys), dim, 3 * inner, bias=False)  # no qkv bias
        # fold the 1/sqrt(dim_head) attention scale into the q columns
        qw = qw.at[:, :inner].multiply(1.0 / math.sqrt(dim_head))
        qkvw.append(qw)
        ow, ob = _init_linear(next(keys), inner, dim)
        outw.append(ow.reshape(heads, dim_head, dim))   # per-head slices
        outb.append(ob.reshape(1, dim))
        w1, bb1 = _init_linear(next(keys), dim, mlp)
        f1w.append(w1)
        f1b.append(bb1.reshape(1, mlp))
        w2, bb2 = _init_linear(next(keys), mlp, dim)
        f2w.append(w2)
        f2b.append(bb2.reshape(1, dim))
    p["mod_w"], p["mod_b"] = jnp.stack(modw).astype(bf16), jnp.stack(modb)
    p["ln"] = jnp.stack(ln)
    p["qkv_w"] = jnp.stack(qkvw).astype(bf16)
    p["out_w"], p["out_b"] = jnp.stack(outw).astype(bf16), jnp.stack(outb)
    p["ff1_w"], p["ff1_b"] = jnp.stack(f1w).astype(bf16), jnp.stack(f1b)
    p["ff2_w"], p["ff2_b"] = jnp.stack(f2w).astype(bf16), jnp.stack(f2b)

    # to_rgb: Linear(dim, 2*dim) + LeakyReLU + Linear(2*dim, p*p*c)
    r1w, r1b = _init_linear(next(keys), dim, 2 * dim)
    r2w, r2b = _init_linear(next(keys), 2 * dim, rgb_out)
    p["rgb1_w"], p["rgb1_b"] = r1w.astype(bf16), r1b.reshape(1, 2 * dim)
    p["rgb2_w"], p["rgb2_b"] = r2w.astype(bf16), r2b.reshape(1, rgb_out)
    return p


# ----------------------------------------------------------------------------
# Forward pass: ONE fused pallas_call, grid over batch tiles.
# ----------------------------------------------------------------------------
def _const_spec(arr):
    nd = arr.ndim
    # Whole-array block, broadcast to every grid step (constant index_map).
    return pl.BlockSpec(arr.shape, lambda i: (0,) * nd)


_WEIGHT_NAMES = [
    "map0_w", "map0_b", "maps_w", "maps_b",
    "mod_w", "mod_b", "ln",
    "qkv_w", "out_w", "out_b",
    "ff1_w", "ff1_b", "ff2_w", "ff2_b",
    "rgb1_w", "rgb1_b", "rgb2_w", "rgb2_b",
]


def generator_forward(params, z, cfg):
    b = z.shape[0]
    dim = cfg["g_dim"]
    heads, dim_head = cfg["heads"], cfg["dim_head"]
    z_dim = cfg["z_dim"]
    n = (cfg["image_size"] // cfg["patch_size"]) ** 2
    rgb_out = cfg["patch_size"] * cfg["patch_size"] * cfg["image_dim"]
    L = cfg["g_blocks"]

    assert n % 8 == 0, "num_patches must be a multiple of 8 (sublane tile)"

    # Batch tiling: pack enough batch elements per step that token-major
    # matmuls see ~128 sublane rows (fills MXU, amortizes per-step overhead).
    b_tile = max(1, min(b, max(1, 128 // n)))
    n_steps = -(-b // b_tile)                 # cdiv
    b_pad = n_steps * b_tile
    if b_pad != b:
        z = jnp.pad(z, ((0, b_pad - b), (0, 0)))

    kernel = functools.partial(
        _generator_kernel,
        dim=dim, heads=heads, dim_head=dim_head, n_tokens=n,
        b_tile=b_tile, n_blocks=L, n_map_layers=5,
    )

    out = pl.pallas_call(
        kernel,
        out_shape=jax.ShapeDtypeStruct((b_pad, n, rgb_out), jnp.float32),
        grid=(n_steps,),
        in_specs=[
            pl.BlockSpec((b_tile, z_dim), lambda i: (i, 0)),   # z per batch tile
            _const_spec(params["pos_embedding"]),              # pos (broadcast)
            *[_const_spec(params[k]) for k in _WEIGHT_NAMES],  # resident weights
        ],
        out_specs=pl.BlockSpec((b_tile, n, rgb_out), lambda i: (i, 0, 0)),
        compiler_params=pltpu.CompilerParams(
            dimension_semantics=("parallel",),  # v7x: batch tiles split across TCs
        ),
    )(z, params["pos_embedding"], *[params[k] for k in _WEIGHT_NAMES])

    out = out[:b]
    # x.view(b, image_dim, image_size, image_size): row-major metadata reshape.
    return out.reshape(b, cfg["image_dim"], cfg["image_size"], cfg["image_size"])


# ----------------------------------------------------------------------------
if __name__ == "__main__":
    cfg = dict(
        image_size=16,
        patch_size=4,
        image_dim=3,
        z_dim=16,
        g_dim=32,
        g_blocks=2,
        heads=4,
        dim_head=8,
        mlp_dim=32,   # matches SLNTransformer(..., mlp_dim=dim) in the reference
    )

    key = jax.random.PRNGKey(0)
    kp, kz = jax.random.split(key)
    params = init_params(kp, cfg)
    z = jax.random.normal(kz, (2, cfg["z_dim"]), jnp.float32)

    fwd = jax.jit(functools.partial(generator_forward, cfg=cfg))
    out = fwd(params, z)
    jax.block_until_ready(out)

    assert out.shape == (2, cfg["image_dim"], cfg["image_size"], cfg["image_size"])
    assert jnp.all(jnp.isfinite(out))
    print("KERNEL_OK")
</pallas_src>

<mosaic_0001>
module attributes {stable_mosaic.version = 11 : i64} {
  func.func @_generator_kernel(%arg0: i32, %arg1: memref<2x16xf32, #tpu.memory_space<vmem>>, %arg2: memref<16x32xf32, #tpu.memory_space<vmem>>, %arg3: memref<16x32xbf16, #tpu.memory_space<vmem>>, %arg4: memref<1x32xf32, #tpu.memory_space<vmem>>, %arg5: memref<5x32x32xbf16, #tpu.memory_space<vmem>>, %arg6: memref<5x1x32xf32, #tpu.memory_space<vmem>>, %arg7: memref<2x32x128xbf16, #tpu.memory_space<vmem>>, %arg8: memref<2x1x128xf32, #tpu.memory_space<vmem>>, %arg9: memref<2x4x32xf32, #tpu.memory_space<vmem>>, %arg10: memref<2x32x96xbf16, #tpu.memory_space<vmem>>, %arg11: memref<2x4x8x32xbf16, #tpu.memory_space<vmem>>, %arg12: memref<2x1x32xf32, #tpu.memory_space<vmem>>, %arg13: memref<2x32x32xbf16, #tpu.memory_space<vmem>>, %arg14: memref<2x1x32xf32, #tpu.memory_space<vmem>>, %arg15: memref<2x32x32xbf16, #tpu.memory_space<vmem>>, %arg16: memref<2x1x32xf32, #tpu.memory_space<vmem>>, %arg17: memref<32x64xbf16, #tpu.memory_space<vmem>>, %arg18: memref<1x64xf32, #tpu.memory_space<vmem>>, %arg19: memref<64x48xbf16, #tpu.memory_space<vmem>>, %arg20: memref<1x48xf32, #tpu.memory_space<vmem>>, %arg21: memref<2x16x48xf32, #tpu.memory_space<vmem>>) attributes {dimension_semantics = [#tpu.dimension_semantics<parallel>], iteration_bounds = array<i64: 1>, scalar_prefetch = 0 : i64, scratch_operands = 0 : i64, tpu.core_type = #tpu.core_type<tc>, window_params = [{transform_indices = @transform_0, window_bounds = array<i64: 2, 16>}, {pipeline_mode = #tpu.pipeline_mode<synchronous>, transform_indices = @transform_1, window_bounds = array<i64: 16, 32>}, {pipeline_mode = #tpu.pipeline_mode<synchronous>, transform_indices = @transform_2, window_bounds = array<i64: 16, 32>}, {pipeline_mode = #tpu.pipeline_mode<synchronous>, transform_indices = @transform_3, window_bounds = array<i64: 1, 32>}, {pipeline_mode = #tpu.pipeline_mode<synchronous>, transform_indices = @transform_4, window_bounds = array<i64: 5, 32, 32>}, {pipeline_mode = #tpu.pipeline_mode<synchronous>, transform_indices = @transform_5, window_bounds = array<i64: 5, 1, 32>}, {pipeline_mode = #tpu.pipeline_mode<synchronous>, transform_indices = @transform_6, window_bounds = array<i64: 2, 32, 128>}, {pipeline_mode = #tpu.pipeline_mode<synchronous>, transform_indices = @transform_7, window_bounds = array<i64: 2, 1, 128>}, {pipeline_mode = #tpu.pipeline_mode<synchronous>, transform_indices = @transform_8, window_bounds = array<i64: 2, 4, 32>}, {pipeline_mode = #tpu.pipeline_mode<synchronous>, transform_indices = @transform_9, window_bounds = array<i64: 2, 32, 96>}, {pipeline_mode = #tpu.pipeline_mode<synchronous>, transform_indices = @transform_10, window_bounds = array<i64: 2, 4, 8, 32>}, {pipeline_mode = #tpu.pipeline_mode<synchronous>, transform_indices = @transform_11, window_bounds = array<i64: 2, 1, 32>}, {pipeline_mode = #tpu.pipeline_mode<synchronous>, transform_indices = @transform_12, window_bounds = array<i64: 2, 32, 32>}, {pipeline_mode = #tpu.pipeline_mode<synchronous>, transform_indices = @transform_13, window_bounds = array<i64: 2, 1, 32>}, {pipeline_mode = #tpu.pipeline_mode<synchronous>, transform_indices = @transform_14, window_bounds = array<i64: 2, 32, 32>}, {pipeline_mode = #tpu.pipeline_mode<synchronous>, transform_indices = @transform_15, window_bounds = array<i64: 2, 1, 32>}, {pipeline_mode = #tpu.pipeline_mode<synchronous>, transform_indices = @transform_16, window_bounds = array<i64: 32, 64>}, {pipeline_mode = #tpu.pipeline_mode<synchronous>, transform_indices = @transform_17, window_bounds = array<i64: 1, 64>}, {pipeline_mode = #tpu.pipeline_mode<synchronous>, transform_indices = @transform_18, window_bounds = array<i64: 64, 48>}, {pipeline_mode = #tpu.pipeline_mode<synchronous>, transform_indices = @transform_19, window_bounds = array<i64: 1, 48>}, {transform_indices = @transform_20, window_bounds = array<i64: 2, 16, 48>}]} {
    %c0 = arith.constant 0 : index
    %c0_0 = arith.constant 0 : index
    %0 = vector.load %arg1[%c0, %c0_0] : memref<2x16xf32, #tpu.memory_space<vmem>>, vector<2x16xf32>
    %c0_1 = arith.constant 0 : index
    %c0_2 = arith.constant 0 : index
    %1 = vector.load %arg3[%c0_1, %c0_2] : memref<16x32xbf16, #tpu.memory_space<vmem>>, vector<16x32xbf16>
    %c0_3 = arith.constant 0 : index
    %c0_4 = arith.constant 0 : index
    %2 = vector.load %arg4[%c0_3, %c0_4] : memref<1x32xf32, #tpu.memory_space<vmem>>, vector<1x32xf32>
    %3 = arith.truncf %0 : vector<2x16xf32> to vector<2x16xbf16>
    %cst = arith.constant dense<0.000000e+00> : vector<2x32xf32>
    %4 = tpu.matmul %3, %1, %cst {dimension_numbers = #tpu.dot_dimension_numbers<[1], [0], [0], [1], [0, 0, 1, 1], [], []>} : vector<2x16xbf16>, vector<16x32xbf16>, vector<2x32xf32> -> vector<2x32xf32>
    %5 = vector.broadcast %2 : vector<1x32xf32> to vector<2x32xf32>
    %6 = arith.addf %4, %5 : vector<2x32xf32>
    %cst_5 = arith.constant 0.000000e+00 : f32
    %7 = vector.broadcast %cst_5 : f32 to vector<2x32xf32>
    %8 = arith.cmpf oge, %6, %7 : vector<2x32xf32>
    %cst_6 = arith.constant 0.00999999977 : f32
    %9 = vector.broadcast %cst_6 : f32 to vector<2x32xf32>
    %10 = arith.mulf %9, %6 : vector<2x32xf32>
    %11 = arith.select %8, %6, %10 : vector<2x32xi1>, vector<2x32xf32>
    %c0_7 = arith.constant 0 : index
    %c0_8 = arith.constant 0 : index
    %c0_9 = arith.constant 0 : index
    %12 = vector.load %arg5[%c0_7, %c0_8, %c0_9] : memref<5x32x32xbf16, #tpu.memory_space<vmem>>, vector<1x32x32xbf16>
    %13 = vector.shape_cast %12 : vector<1x32x32xbf16> to vector<32x32xbf16>
    %c0_10 = arith.constant 0 : index
    %c0_11 = arith.constant 0 : index
    %c0_12 = arith.constant 0 : index
    %14 = vector.load %arg6[%c0_10, %c0_11, %c0_12] : memref<5x1x32xf32, #tpu.memory_space<vmem>>, vector<1x1x32xf32>
    %15 = vector.shape_cast %14 : vector<1x1x32xf32> to vector<1x32xf32>
    %16 = arith.truncf %11 : vector<2x32xf32> to vector<2x32xbf16>
    %cst_13 = arith.constant dense<0.000000e+00> : vector<2x32xf32>
    %17 = tpu.matmul %16, %13, %cst_13 {dimension_numbers = #tpu.dot_dimension_numbers<[1], [0], [0], [1], [0, 0, 1, 1], [], []>} : vector<2x32xbf16>, vector<32x32xbf16>, vector<2x32xf32> -> vector<2x32xf32>
    %18 = vector.broadcast %15 : vector<1x32xf32> to vector<2x32xf32>
    %19 = arith.addf %17, %18 : vector<2x32xf32>
    %cst_14 = arith.constant 0.000000e+00 : f32
    %20 = vector.broadcast %cst_14 : f32 to vector<2x32xf32>
    %21 = arith.cmpf oge, %19, %20 : vector<2x32xf32>
    %cst_15 = arith.constant 0.00999999977 : f32
    %22 = vector.broadcast %cst_15 : f32 to vector<2x32xf32>
    %23 = arith.mulf %22, %19 : vector<2x32xf32>
    %24 = arith.select %21, %19, %23 : vector<2x32xi1>, vector<2x32xf32>
    %c1 = arith.constant 1 : index
    %c0_16 = arith.constant 0 : index
    %c0_17 = arith.constant 0 : index
    %25 = vector.load %arg5[%c1, %c0_16, %c0_17] : memref<5x32x32xbf16, #tpu.memory_space<vmem>>, vector<1x32x32xbf16>
    %26 = vector.shape_cast %25 : vector<1x32x32xbf16> to vector<32x32xbf16>
    %c1_18 = arith.constant 1 : index
    %c0_19 = arith.constant 0 : index
    %c0_20 = arith.constant 0 : index
    %27 = vector.load %arg6[%c1_18, %c0_19, %c0_20] : memref<5x1x32xf32, #tpu.memory_space<vmem>>, vector<1x1x32xf32>
    %28 = vector.shape_cast %27 : vector<1x1x32xf32> to vector<1x32xf32>
    %29 = arith.truncf %24 : vector<2x32xf32> to vector<2x32xbf16>
    %cst_21 = arith.constant dense<0.000000e+00> : vector<2x32xf32>
    %30 = tpu.matmul %29, %26, %cst_21 {dimension_numbers = #tpu.dot_dimension_numbers<[1], [0], [0], [1], [0, 0, 1, 1], [], []>} : vector<2x32xbf16>, vector<32x32xbf16>, vector<2x32xf32> -> vector<2x32xf32>
    %31 = vector.broadcast %28 : vector<1x32xf32> to vector<2x32xf32>
    %32 = arith.addf %30, %31 : vector<2x32xf32>
    %cst_22 = arith.constant 0.000000e+00 : f32
    %33 = vector.broadcast %cst_22 : f32 to vector<2x32xf32>
    %34 = arith.cmpf oge, %32, %33 : vector<2x32xf32>
    %cst_23 = arith.constant 0.00999999977 : f32
    %35 = vector.broadcast %cst_23 : f32 to vector<2x32xf32>
    %36 = arith.mulf %35, %32 : vector<2x32xf32>
    %37 = arith.select %34, %32, %36 : vector<2x32xi1>, vector<2x32xf32>
    %c2 = arith.constant 2 : index
    %c0_24 = arith.constant 0 : index
    %c0_25 = arith.constant 0 : index
    %38 = vector.load %arg5[%c2, %c0_24, %c0_25] : memref<5x32x32xbf16, #tpu.memory_space<vmem>>, vector<1x32x32xbf16>
    %39 = vector.shape_cast %38 : vector<1x32x32xbf16> to vector<32x32xbf16>
    %c2_26 = arith.constant 2 : index
    %c0_27 = arith.constant 0 : index
    %c0_28 = arith.constant 0 : index
    %40 = vector.load %arg6[%c2_26, %c0_27, %c0_28] : memref<5x1x32xf32, #tpu.memory_space<vmem>>, vector<1x1x32xf32>
    %41 = vector.shape_cast %40 : vector<1x1x32xf32> to vector<1x32xf32>
    %42 = arith.truncf %37 : vector<2x32xf32> to vector<2x32xbf16>
    %cst_29 = arith.constant dense<0.000000e+00> : vector<2x32xf32>
    %43 = tpu.matmul %42, %39, %cst_29 {dimension_numbers = #tpu.dot_dimension_numbers<[1], [0], [0], [1], [0, 0, 1, 1], [], []>} : vector<2x32xbf16>, vector<32x32xbf16>, vector<2x32xf32> -> vector<2x32xf32>
    %44 = vector.broadcast %41 : vector<1x32xf32> to vector<2x32xf32>
    %45 = arith.addf %43, %44 : vector<2x32xf32>
    %cst_30 = arith.constant 0.000000e+00 : f32
    %46 = vector.broadcast %cst_30 : f32 to vector<2x32xf32>
    %47 = arith.cmpf oge, %45, %46 : vector<2x32xf32>
    %cst_31 = arith.constant 0.00999999977 : f32
    %48 = vector.broadcast %cst_31 : f32 to vector<2x32xf32>
    %49 = arith.mulf %48, %45 : vector<2x32xf32>
    %50 = arith.select %47, %45, %49 : vector<2x32xi1>, vector<2x32xf32>
    %c3 = arith.constant 3 : index
    %c0_32 = arith.constant 0 : index
    %c0_33 = arith.constant 0 : index
    %51 = vector.load %arg5[%c3, %c0_32, %c0_33] : memref<5x32x32xbf16, #tpu.memory_space<vmem>>, vector<1x32x32xbf16>
    %52 = vector.shape_cast %51 : vector<1x32x32xbf16> to vector<32x32xbf16>
    %c3_34 = arith.constant 3 : index
    %c0_35 = arith.constant 0 : index
    %c0_36 = arith.constant 0 : index
    %53 = vector.load %arg6[%c3_34, %c0_35, %c0_36] : memref<5x1x32xf32, #tpu.memory_space<vmem>>, vector<1x1x32xf32>
    %54 = vector.shape_cast %53 : vector<1x1x32xf32> to vector<1x32xf32>
    %55 = arith.truncf %50 : vector<2x32xf32> to vector<2x32xbf16>
    %cst_37 = arith.constant dense<0.000000e+00> : vector<2x32xf32>
    %56 = tpu.matmul %55, %52, %cst_37 {dimension_numbers = #tpu.dot_dimension_numbers<[1], [0], [0], [1], [0, 0, 1, 1], [], []>} : vector<2x32xbf16>, vector<32x32xbf16>, vector<2x32xf32> -> vector<2x32xf32>
    %57 = vector.broadcast %54 : vector<1x32xf32> to vector<2x32xf32>
    %58 = arith.addf %56, %57 : vector<2x32xf32>
    %cst_38 = arith.constant 0.000000e+00 : f32
    %59 = vector.broadcast %cst_38 : f32 to vector<2x32xf32>
    %60 = arith.cmpf oge, %58, %59 : vector<2x32xf32>
    %cst_39 = arith.constant 0.00999999977 : f32
    %61 = vector.broadcast %cst_39 : f32 to vector<2x32xf32>
    %62 = arith.mulf %61, %58 : vector<2x32xf32>
    %63 = arith.select %60, %58, %62 : vector<2x32xi1>, vector<2x32xf32>
    %c4 = arith.constant 4 : index
    %c0_40 = arith.constant 0 : index
    %c0_41 = arith.constant 0 : index
    %64 = vector.load %arg5[%c4, %c0_40, %c0_41] : memref<5x32x32xbf16, #tpu.memory_space<vmem>>, vector<1x32x32xbf16>
    %65 = vector.shape_cast %64 : vector<1x32x32xbf16> to vector<32x32xbf16>
    %c4_42 = arith.constant 4 : index
    %c0_43 = arith.constant 0 : index
    %c0_44 = arith.constant 0 : index
    %66 = vector.load %arg6[%c4_42, %c0_43, %c0_44] : memref<5x1x32xf32, #tpu.memory_space<vmem>>, vector<1x1x32xf32>
    %67 = vector.shape_cast %66 : vector<1x1x32xf32> to vector<1x32xf32>
    %68 = arith.truncf %63 : vector<2x32xf32> to vector<2x32xbf16>
    %cst_45 = arith.constant dense<0.000000e+00> : vector<2x32xf32>
    %69 = tpu.matmul %68, %65, %cst_45 {dimension_numbers = #tpu.dot_dimension_numbers<[1], [0], [0], [1], [0, 0, 1, 1], [], []>} : vector<2x32xbf16>, vector<32x32xbf16>, vector<2x32xf32> -> vector<2x32xf32>
    %70 = vector.broadcast %67 : vector<1x32xf32> to vector<2x32xf32>
    %71 = arith.addf %69, %70 : vector<2x32xf32>
    %cst_46 = arith.constant 0.000000e+00 : f32
    %72 = vector.broadcast %cst_46 : f32 to vector<2x32xf32>
    %73 = arith.cmpf oge, %71, %72 : vector<2x32xf32>
    %cst_47 = arith.constant 0.00999999977 : f32
    %74 = vector.broadcast %cst_47 : f32 to vector<2x32xf32>
    %75 = arith.mulf %74, %71 : vector<2x32xf32>
    %76 = arith.select %73, %71, %75 : vector<2x32xi1>, vector<2x32xf32>
    %c0_48 = arith.constant 0 : index
    %c0_49 = arith.constant 0 : index
    %77 = vector.load %arg2[%c0_48, %c0_49] : memref<16x32xf32, #tpu.memory_space<vmem>>, vector<16x32xf32>
    %78 = vector.shape_cast %77 : vector<16x32xf32> to vector<1x16x32xf32>
    %79 = vector.shape_cast %78 : vector<1x16x32xf32> to vector<1x16x32xf32>
    %80 = vector.broadcast %79 : vector<1x16x32xf32> to vector<2x16x32xf32>
    %81 = vector.shape_cast %80 : vector<2x16x32xf32> to vector<32x32xf32>
    %c0_50 = arith.constant 0 : index
    %c0_51 = arith.constant 0 : index
    %c0_52 = arith.constant 0 : index
    %82 = vector.load %arg9[%c0_50, %c0_51, %c0_52] : memref<2x4x32xf32, #tpu.memory_space<vmem>>, vector<1x4x32xf32>
    %83 = vector.shape_cast %82 : vector<1x4x32xf32> to vector<4x32xf32>
    %c0_53 = arith.constant 0 : index
    %c0_54 = arith.constant 0 : index
    %c0_55 = arith.constant 0 : index
    %84 = vector.load %arg7[%c0_53, %c0_54, %c0_55] : memref<2x32x128xbf16, #tpu.memory_space<vmem>>, vector<1x32x128xbf16>
    %85 = vector.shape_cast %84 : vector<1x32x128xbf16> to vector<32x128xbf16>
    %c0_56 = arith.constant 0 : index
    %c0_57 = arith.constant 0 : index
    %c0_58 = arith.constant 0 : index
    %86 = vector.load %arg8[%c0_56, %c0_57, %c0_58] : memref<2x1x128xf32, #tpu.memory_space<vmem>>, vector<1x1x128xf32>
    %87 = vector.shape_cast %86 : vector<1x1x128xf32> to vector<1x128xf32>
    %88 = arith.truncf %76 : vector<2x32xf32> to vector<2x32xbf16>
    %cst_59 = arith.constant dense<0.000000e+00> : vector<2x128xf32>
    %89 = tpu.matmul %88, %85, %cst_59 {dimension_numbers = #tpu.dot_dimension_numbers<[1], [0], [0], [1], [0, 0, 1, 1], [], []>} : vector<2x32xbf16>, vector<32x128xbf16>, vector<2x128xf32> -> vector<2x128xf32>
    %90 = vector.broadcast %87 : vector<1x128xf32> to vector<2x128xf32>
    %91 = arith.addf %89, %90 : vector<2x128xf32>
    %92 = vector.shape_cast %91 : vector<2x128xf32> to vector<2x1x128xf32>
    %93 = vector.shape_cast %92 : vector<2x1x128xf32> to vector<2x1x128xf32>
    %94 = vector.broadcast %93 : vector<2x1x128xf32> to vector<2x16x128xf32>
    %95 = vector.shape_cast %94 : vector<2x16x128xf32> to vector<32x128xf32>
    %96 = vector.extract_strided_slice %95 {offsets = [0, 0], sizes = [32, 32], strides = [1, 1]} : vector<32x128xf32> to vector<32x32xf32>
    %97 = vector.extract_strided_slice %95 {offsets = [0, 32], sizes = [32, 32], strides = [1, 1]} : vector<32x128xf32> to vector<32x32xf32>
    %98 = vector.extract_strided_slice %95 {offsets = [0, 64], sizes = [32, 32], strides = [1, 1]} : vector<32x128xf32> to vector<32x32xf32>
    %99 = vector.extract_strided_slice %95 {offsets = [0, 96], sizes = [32, 32], strides = [1, 1]} : vector<32x128xf32> to vector<32x32xf32>
    %cst_60 = arith.constant dense<0.000000e+00> : vector<32xf32>
    %100 = vector.multi_reduction <add>, %81, %cst_60 [1] : vector<32x32xf32> to vector<32xf32>
    %101 = vector.shape_cast %100 : vector<32xf32> to vector<32x1xf32>
    %cst_61 = arith.constant 3.200000e+01 : f32
    %102 = vector.broadcast %cst_61 : f32 to vector<32x1xf32>
    %103 = arith.divf %101, %102 : vector<32x1xf32>
    %104 = vector.broadcast %103 : vector<32x1xf32> to vector<32x32xf32>
    %105 = arith.subf %81, %104 : vector<32x32xf32>
    %106 = arith.mulf %105, %105 : vector<32x32xf32>
    %cst_62 = arith.constant dense<0.000000e+00> : vector<32xf32>
    %107 = vector.multi_reduction <add>, %106, %cst_62 [1] : vector<32x32xf32> to vector<32xf32>
    %108 = vector.shape_cast %107 : vector<32xf32> to vector<32x1xf32>
    %cst_63 = arith.constant 3.200000e+01 : f32
    %109 = vector.broadcast %cst_63 : f32 to vector<32x1xf32>
    %110 = arith.divf %108, %109 : vector<32x1xf32>
    %cst_64 = arith.constant 9.99999974E-6 : f32
    %111 = vector.broadcast %cst_64 : f32 to vector<32x1xf32>
    %112 = arith.addf %110, %111 : vector<32x1xf32>
    %113 = math.rsqrt %112 : vector<32x1xf32>
    %114 = vector.broadcast %113 : vector<32x1xf32> to vector<32x32xf32>
    %115 = arith.mulf %105, %114 : vector<32x32xf32>
    %116 = vector.extract_strided_slice %83 {offsets = [0, 0], sizes = [1, 32], strides = [1, 1]} : vector<4x32xf32> to vector<1x32xf32>
    %117 = vector.broadcast %116 : vector<1x32xf32> to vector<32x32xf32>
    %118 = arith.mulf %115, %117 : vector<32x32xf32>
    %119 = vector.extract_strided_slice %83 {offsets = [1, 0], sizes = [1, 32], strides = [1, 1]} : vector<4x32xf32> to vector<1x32xf32>
    %120 = vector.broadcast %119 : vector<1x32xf32> to vector<32x32xf32>
    %121 = arith.addf %118, %120 : vector<32x32xf32>
    %122 = arith.mulf %121, %96 : vector<32x32xf32>
    %123 = arith.addf %122, %97 : vector<32x32xf32>
    %c0_65 = arith.constant 0 : index
    %c0_66 = arith.constant 0 : index
    %c0_67 = arith.constant 0 : index
    %124 = vector.load %arg10[%c0_65, %c0_66, %c0_67] : memref<2x32x96xbf16, #tpu.memory_space<vmem>>, vector<1x32x96xbf16>
    %125 = vector.shape_cast %124 : vector<1x32x96xbf16> to vector<32x96xbf16>
    %126 = arith.truncf %123 : vector<32x32xf32> to vector<32x32xbf16>
    %cst_68 = arith.constant dense<0.000000e+00> : vector<32x96xf32>
    %127 = tpu.matmul %126, %125, %cst_68 {dimension_numbers = #tpu.dot_dimension_numbers<[1], [0], [0], [1], [0, 0, 1, 1], [], []>} : vector<32x32xbf16>, vector<32x96xbf16>, vector<32x96xf32> -> vector<32x96xf32>
    %128 = vector.shape_cast %127 : vector<32x96xf32> to vector<2x16x96xf32>
    %cst_69 = arith.constant 0.000000e+00 : f32
    %129 = vector.broadcast %cst_69 : f32 to vector<32x32xf32>
    %130 = vector.extract_strided_slice %128 {offsets = [0, 0, 0], sizes = [2, 16, 8], strides = [1, 1, 1]} : vector<2x16x96xf32> to vector<2x16x8xf32>
    %131 = vector.extract_strided_slice %128 {offsets = [0, 0, 32], sizes = [2, 16, 8], strides = [1, 1, 1]} : vector<2x16x96xf32> to vector<2x16x8xf32>
    %132 = vector.extract_strided_slice %128 {offsets = [0, 0, 64], sizes = [2, 16, 8], strides = [1, 1, 1]} : vector<2x16x96xf32> to vector<2x16x8xf32>
    "tpu.trace_start"() <{level = 10 : i32, message = "bqd,bkd->bqk"}> : () -> ()
    %cst_70 = arith.constant dense<0.000000e+00> : vector<2x16x16xf32>
    %133 = tpu.matmul %130, %131, %cst_70 {dimension_numbers = #tpu.dot_dimension_numbers<[2], [2], [1], [1], [0, 0, 0, 1, 1, 1], [0], [0]>} : vector<2x16x8xf32>, vector<2x16x8xf32>, vector<2x16x16xf32> -> vector<2x16x16xf32>
    "tpu.trace_stop"() : () -> ()
    %cst_71 = arith.constant dense<0xFF800000> : vector<2x16xf32>
    %134 = vector.multi_reduction <maximumf>, %133, %cst_71 [2] : vector<2x16x16xf32> to vector<2x16xf32>
    %135 = vector.shape_cast %134 : vector<2x16xf32> to vector<2x16x1xf32>
    %136 = vector.broadcast %135 : vector<2x16x1xf32> to vector<2x16x16xf32>
    %137 = arith.subf %133, %136 : vector<2x16x16xf32>
    %138 = math.exp %137 : vector<2x16x16xf32>
    %cst_72 = arith.constant dense<0.000000e+00> : vector<2x16xf32>
    %139 = vector.multi_reduction <add>, %138, %cst_72 [2] : vector<2x16x16xf32> to vector<2x16xf32>
    %140 = vector.shape_cast %139 : vector<2x16xf32> to vector<2x16x1xf32>
    %141 = tpu.reciprocal %140 {approx = true} : vector<2x16x1xf32> -> vector<2x16x1xf32>
    %142 = vector.broadcast %141 : vector<2x16x1xf32> to vector<2x16x16xf32>
    %143 = arith.mulf %138, %142 : vector<2x16x16xf32>
    "tpu.trace_start"() <{level = 10 : i32, message = "bqk,bkd->bqd"}> : () -> ()
    %cst_73 = arith.constant dense<0.000000e+00> : vector<2x16x8xf32>
    %144 = tpu.matmul %143, %132, %cst_73 {dimension_numbers = #tpu.dot_dimension_numbers<[2], [1], [1], [2], [0, 0, 0, 1, 1, 2], [0], [0]>} : vector<2x16x16xf32>, vector<2x16x8xf32>, vector<2x16x8xf32> -> vector<2x16x8xf32>
    "tpu.trace_stop"() : () -> ()
    %145 = vector.shape_cast %144 : vector<2x16x8xf32> to vector<32x8xf32>
    %146 = arith.truncf %145 : vector<32x8xf32> to vector<32x8xbf16>
    %c0_74 = arith.constant 0 : index
    %c0_75 = arith.constant 0 : index
    %c0_76 = arith.constant 0 : index
    %c0_77 = arith.constant 0 : index
    %147 = vector.load %arg11[%c0_74, %c0_75, %c0_76, %c0_77] : memref<2x4x8x32xbf16, #tpu.memory_space<vmem>>, vector<1x1x8x32xbf16>
    %148 = vector.shape_cast %147 : vector<1x1x8x32xbf16> to vector<8x32xbf16>
    %cst_78 = arith.constant dense<0.000000e+00> : vector<32x32xf32>
    %149 = tpu.matmul %146, %148, %cst_78 {dimension_numbers = #tpu.dot_dimension_numbers<[1], [0], [0], [1], [0, 0, 1, 1], [], []>} : vector<32x8xbf16>, vector<8x32xbf16>, vector<32x32xf32> -> vector<32x32xf32>
    %150 = arith.addf %129, %149 : vector<32x32xf32>
    %151 = vector.extract_strided_slice %128 {offsets = [0, 0, 8], sizes = [2, 16, 8], strides = [1, 1, 1]} : vector<2x16x96xf32> to vector<2x16x8xf32>
    %152 = vector.extract_strided_slice %128 {offsets = [0, 0, 40], sizes = [2, 16, 8], strides = [1, 1, 1]} : vector<2x16x96xf32> to vector<2x16x8xf32>
    %153 = vector.extract_strided_slice %128 {offsets = [0, 0, 72], sizes = [2, 16, 8], strides = [1, 1, 1]} : vector<2x16x96xf32> to vector<2x16x8xf32>
    "tpu.trace_start"() <{level = 10 : i32, message = "bqd,bkd->bqk"}> : () -> ()
    %cst_79 = arith.constant dense<0.000000e+00> : vector<2x16x16xf32>
    %154 = tpu.matmul %151, %152, %cst_79 {dimension_numbers = #tpu.dot_dimension_numbers<[2], [2], [1], [1], [0, 0, 0, 1, 1, 1], [0], [0]>} : vector<2x16x8xf32>, vector<2x16x8xf32>, vector<2x16x16xf32> -> vector<2x16x16xf32>
    "tpu.trace_stop"() : () -> ()
    %cst_80 = arith.constant dense<0xFF800000> : vector<2x16xf32>
    %155 = vector.multi_reduction <maximumf>, %154, %cst_80 [2] : vector<2x16x16xf32> to vector<2x16xf32>
    %156 = vector.shape_cast %155 : vector<2x16xf32> to vector<2x16x1xf32>
    %157 = vector.broadcast %156 : vector<2x16x1xf32> to vector<2x16x16xf32>
    %158 = arith.subf %154, %157 : vector<2x16x16xf32>
    %159 = math.exp %158 : vector<2x16x16xf32>
    %cst_81 = arith.constant dense<0.000000e+00> : vector<2x16xf32>
    %160 = vector.multi_reduction <add>, %159, %cst_81 [2] : vector<2x16x16xf32> to vector<2x16xf32>
    %161 = vector.shape_cast %160 : vector<2x16xf32> to vector<2x16x1xf32>
    %162 = tpu.reciprocal %161 {approx = true} : vector<2x16x1xf32> -> vector<2x16x1xf32>
    %163 = vector.broadcast %162 : vector<2x16x1xf32> to vector<2x16x16xf32>
    %164 = arith.mulf %159, %163 : vector<2x16x16xf32>
    "tpu.trace_start"() <{level = 10 : i32, message = "bqk,bkd->bqd"}> : () -> ()
    %cst_82 = arith.constant dense<0.000000e+00> : vector<2x16x8xf32>
    %165 = tpu.matmul %164, %153, %cst_82 {dimension_numbers = #tpu.dot_dimension_numbers<[2], [1], [1], [2], [0, 0, 0, 1, 1, 2], [0], [0]>} : vector<2x16x16xf32>, vector<2x16x8xf32>, vector<2x16x8xf32> -> vector<2x16x8xf32>
    "tpu.trace_stop"() : () -> ()
    %166 = vector.shape_cast %165 : vector<2x16x8xf32> to vector<32x8xf32>
    %167 = arith.truncf %166 : vector<32x8xf32> to vector<32x8xbf16>
    %c0_83 = arith.constant 0 : index
    %c1_84 = arith.constant 1 : index
    %c0_85 = arith.constant 0 : index
    %c0_86 = arith.constant 0 : index
    %168 = vector.load %arg11[%c0_83, %c1_84, %c0_85, %c0_86] : memref<2x4x8x32xbf16, #tpu.memory_space<vmem>>, vector<1x1x8x32xbf16>
    %169 = vector.shape_cast %168 : vector<1x1x8x32xbf16> to vector<8x32xbf16>
    %cst_87 = arith.constant dense<0.000000e+00> : vector<32x32xf32>
    %170 = tpu.matmul %167, %169, %cst_87 {dimension_numbers = #tpu.dot_dimension_numbers<[1], [0], [0], [1], [0, 0, 1, 1], [], []>} : vector<32x8xbf16>, vector<8x32xbf16>, vector<32x32xf32> -> vector<32x32xf32>
    %171 = arith.addf %150, %170 : vector<32x32xf32>
    %172 = vector.extract_strided_slice %128 {offsets = [0, 0, 16], sizes = [2, 16, 8], strides = [1, 1, 1]} : vector<2x16x96xf32> to vector<2x16x8xf32>
    %173 = vector.extract_strided_slice %128 {offsets = [0, 0, 48], sizes = [2, 16, 8], strides = [1, 1, 1]} : vector<2x16x96xf32> to vector<2x16x8xf32>
    %174 = vector.extract_strided_slice %128 {offsets = [0, 0, 80], sizes = [2, 16, 8], strides = [1, 1, 1]} : vector<2x16x96xf32> to vector<2x16x8xf32>
    "tpu.trace_start"() <{level = 10 : i32, message = "bqd,bkd->bqk"}> : () -> ()
    %cst_88 = arith.constant dense<0.000000e+00> : vector<2x16x16xf32>
    %175 = tpu.matmul %172, %173, %cst_88 {dimension_numbers = #tpu.dot_dimension_numbers<[2], [2], [1], [1], [0, 0, 0, 1, 1, 1], [0], [0]>} : vector<2x16x8xf32>, vector<2x16x8xf32>, vector<2x16x16xf32> -> vector<2x16x16xf32>
    "tpu.trace_stop"() : () -> ()
    %cst_89 = arith.constant dense<0xFF800000> : vector<2x16xf32>
    %176 = vector.multi_reduction <maximumf>, %175, %cst_89 [2] : vector<2x16x16xf32> to vector<2x16xf32>
    %177 = vector.shape_cast %176 : vector<2x16xf32> to vector<2x16x1xf32>
    %178 = vector.broadcast %177 : vector<2x16x1xf32> to vector<2x16x16xf32>
    %179 = arith.subf %175, %178 : vector<2x16x16xf32>
    %180 = math.exp %179 : vector<2x16x16xf32>
    %cst_90 = arith.constant dense<0.000000e+00> : vector<2x16xf32>
    %181 = vector.multi_reduction <add>, %180, %cst_90 [2] : vector<2x16x16xf32> to vector<2x16xf32>
    %182 = vector.shape_cast %181 : vector<2x16xf32> to vector<2x16x1xf32>
    %183 = tpu.reciprocal %182 {approx = true} : vector<2x16x1xf32> -> vector<2x16x1xf32>
    %184 = vector.broadcast %183 : vector<2x16x1xf32> to vector<2x16x16xf32>
    %185 = arith.mulf %180, %184 : vector<2x16x16xf32>
    "tpu.trace_start"() <{level = 10 : i32, message = "bqk,bkd->bqd"}> : () -> ()
    %cst_91 = arith.constant dense<0.000000e+00> : vector<2x16x8xf32>
    %186 = tpu.matmul %185, %174, %cst_91 {dimension_numbers = #tpu.dot_dimension_numbers<[2], [1], [1], [2], [0, 0, 0, 1, 1, 2], [0], [0]>} : vector<2x16x16xf32>, vector<2x16x8xf32>, vector<2x16x8xf32> -> vector<2x16x8xf32>
    "tpu.trace_stop"() : () -> ()
    %187 = vector.shape_cast %186 : vector<2x16x8xf32> to vector<32x8xf32>
    %188 = arith.truncf %187 : vector<32x8xf32> to vector<32x8xbf16>
    %c0_92 = arith.constant 0 : index
    %c2_93 = arith.constant 2 : index
    %c0_94 = arith.constant 0 : index
    %c0_95 = arith.constant 0 : index
    %189 = vector.load %arg11[%c0_92, %c2_93, %c0_94, %c0_95] : memref<2x4x8x32xbf16, #tpu.memory_space<vmem>>, vector<1x1x8x32xbf16>
    %190 = vector.shape_cast %189 : vector<1x1x8x32xbf16> to vector<8x32xbf16>
    %cst_96 = arith.constant dense<0.000000e+00> : vector<32x32xf32>
    %191 = tpu.matmul %188, %190, %cst_96 {dimension_numbers = #tpu.dot_dimension_numbers<[1], [0], [0], [1], [0, 0, 1, 1], [], []>} : vector<32x8xbf16>, vector<8x32xbf16>, vector<32x32xf32> -> vector<32x32xf32>
    %192 = arith.addf %171, %191 : vector<32x32xf32>
    %193 = vector.extract_strided_slice %128 {offsets = [0, 0, 24], sizes = [2, 16, 8], strides = [1, 1, 1]} : vector<2x16x96xf32> to vector<2x16x8xf32>
    %194 = vector.extract_strided_slice %128 {offsets = [0, 0, 56], sizes = [2, 16, 8], strides = [1, 1, 1]} : vector<2x16x96xf32> to vector<2x16x8xf32>
    %195 = vector.extract_strided_slice %128 {offsets = [0, 0, 88], sizes = [2, 16, 8], strides = [1, 1, 1]} : vector<2x16x96xf32> to vector<2x16x8xf32>
    "tpu.trace_start"() <{level = 10 : i32, message = "bqd,bkd->bqk"}> : () -> ()
    %cst_97 = arith.constant dense<0.000000e+00> : vector<2x16x16xf32>
    %196 = tpu.matmul %193, %194, %cst_97 {dimension_numbers = #tpu.dot_dimension_numbers<[2], [2], [1], [1], [0, 0, 0, 1, 1, 1], [0], [0]>} : vector<2x16x8xf32>, vector<2x16x8xf32>, vector<2x16x16xf32> -> vector<2x16x16xf32>
    "tpu.trace_stop"() : () -> ()
    %cst_98 = arith.constant dense<0xFF800000> : vector<2x16xf32>
    %197 = vector.multi_reduction <maximumf>, %196, %cst_98 [2] : vector<2x16x16xf32> to vector<2x16xf32>
    %198 = vector.shape_cast %197 : vector<2x16xf32> to vector<2x16x1xf32>
    %199 = vector.broadcast %198 : vector<2x16x1xf32> to vector<2x16x16xf32>
    %200 = arith.subf %196, %199 : vector<2x16x16xf32>
    %201 = math.exp %200 : vector<2x16x16xf32>
    %cst_99 = arith.constant dense<0.000000e+00> : vector<2x16xf32>
    %202 = vector.multi_reduction <add>, %201, %cst_99 [2] : vector<2x16x16xf32> to vector<2x16xf32>
    %203 = vector.shape_cast %202 : vector<2x16xf32> to vector<2x16x1xf32>
    %204 = tpu.reciprocal %203 {approx = true} : vector<2x16x1xf32> -> vector<2x16x1xf32>
    %205 = vector.broadcast %204 : vector<2x16x1xf32> to vector<2x16x16xf32>
    %206 = arith.mulf %201, %205 : vector<2x16x16xf32>
    "tpu.trace_start"() <{level = 10 : i32, message = "bqk,bkd->bqd"}> : () -> ()
    %cst_100 = arith.constant dense<0.000000e+00> : vector<2x16x8xf32>
    %207 = tpu.matmul %206, %195, %cst_100 {dimension_numbers = #tpu.dot_dimension_numbers<[2], [1], [1], [2], [0, 0, 0, 1, 1, 2], [0], [0]>} : vector<2x16x16xf32>, vector<2x16x8xf32>, vector<2x16x8xf32> -> vector<2x16x8xf32>
    "tpu.trace_stop"() : () -> ()
    %208 = vector.shape_cast %207 : vector<2x16x8xf32> to vector<32x8xf32>
    %209 = arith.truncf %208 : vector<32x8xf32> to vector<32x8xbf16>
    %c0_101 = arith.constant 0 : index
    %c3_102 = arith.constant 3 : index
    %c0_103 = arith.constant 0 : index
    %c0_104 = arith.constant 0 : index
    %210 = vector.load %arg11[%c0_101, %c3_102, %c0_103, %c0_104] : memref<2x4x8x32xbf16, #tpu.memory_space<vmem>>, vector<1x1x8x32xbf16>
    %211 = vector.shape_cast %210 : vector<1x1x8x32xbf16> to vector<8x32xbf16>
    %cst_105 = arith.constant dense<0.000000e+00> : vector<32x32xf32>
    %212 = tpu.matmul %209, %211, %cst_105 {dimension_numbers = #tpu.dot_dimension_numbers<[1], [0], [0], [1], [0, 0, 1, 1], [], []>} : vector<32x8xbf16>, vector<8x32xbf16>, vector<32x32xf32> -> vector<32x32xf32>
    %213 = arith.addf %192, %212 : vector<32x32xf32>
    %214 = arith.addf %81, %213 : vector<32x32xf32>
    %c0_106 = arith.constant 0 : index
    %c0_107 = arith.constant 0 : index
    %c0_108 = arith.constant 0 : index
    %215 = vector.load %arg12[%c0_106, %c0_107, %c0_108] : memref<2x1x32xf32, #tpu.memory_space<vmem>>, vector<1x1x32xf32>
    %216 = vector.shape_cast %215 : vector<1x1x32xf32> to vector<1x32xf32>
    %217 = vector.broadcast %216 : vector<1x32xf32> to vector<32x32xf32>
    %218 = arith.addf %214, %217 : vector<32x32xf32>
    %cst_109 = arith.constant dense<0.000000e+00> : vector<32xf32>
    %219 = vector.multi_reduction <add>, %218, %cst_109 [1] : vector<32x32xf32> to vector<32xf32>
    %220 = vector.shape_cast %219 : vector<32xf32> to vector<32x1xf32>
    %cst_110 = arith.constant 3.200000e+01 : f32
    %221 = vector.broadcast %cst_110 : f32 to vector<32x1xf32>
    %222 = arith.divf %220, %221 : vector<32x1xf32>
    %223 = vector.broadcast %222 : vector<32x1xf32> to vector<32x32xf32>
    %224 = arith.subf %218, %223 : vector<32x32xf32>
    %225 = arith.mulf %224, %224 : vector<32x32xf32>
    %cst_111 = arith.constant dense<0.000000e+00> : vector<32xf32>
    %226 = vector.multi_reduction <add>, %225, %cst_111 [1] : vector<32x32xf32> to vector<32xf32>
    %227 = vector.shape_cast %226 : vector<32xf32> to vector<32x1xf32>
    %cst_112 = arith.constant 3.200000e+01 : f32
    %228 = vector.broadcast %cst_112 : f32 to vector<32x1xf32>
    %229 = arith.divf %227, %228 : vector<32x1xf32>
    %cst_113 = arith.constant 9.99999974E-6 : f32
    %230 = vector.broadcast %cst_113 : f32 to vector<32x1xf32>
    %231 = arith.addf %229, %230 : vector<32x1xf32>
    %232 = math.rsqrt %231 : vector<32x1xf32>
    %233 = vector.broadcast %232 : vector<32x1xf32> to vector<32x32xf32>
    %234 = arith.mulf %224, %233 : vector<32x32xf32>
    %235 = vector.extract_strided_slice %83 {offsets = [2, 0], sizes = [1, 32], strides = [1, 1]} : vector<4x32xf32> to vector<1x32xf32>
    %236 = vector.broadcast %235 : vector<1x32xf32> to vector<32x32xf32>
    %237 = arith.mulf %234, %236 : vector<32x32xf32>
    %238 = vector.extract_strided_slice %83 {offsets = [3, 0], sizes = [1, 32], strides = [1, 1]} : vector<4x32xf32> to vector<1x32xf32>
    %239 = vector.broadcast %238 : vector<1x32xf32> to vector<32x32xf32>
    %240 = arith.addf %237, %239 : vector<32x32xf32>
    %241 = arith.mulf %240, %98 : vector<32x32xf32>
    %242 = arith.addf %241, %99 : vector<32x32xf32>
    %c0_114 = arith.constant 0 : index
    %c0_115 = arith.constant 0 : index
    %c0_116 = arith.constant 0 : index
    %243 = vector.load %arg13[%c0_114, %c0_115, %c0_116] : memref<2x32x32xbf16, #tpu.memory_space<vmem>>, vector<1x32x32xbf16>
    %244 = vector.shape_cast %243 : vector<1x32x32xbf16> to vector<32x32xbf16>
    %c0_117 = arith.constant 0 : index
    %c0_118 = arith.constant 0 : index
    %c0_119 = arith.constant 0 : index
    %245 = vector.load %arg14[%c0_117, %c0_118, %c0_119] : memref<2x1x32xf32, #tpu.memory_space<vmem>>, vector<1x1x32xf32>
    %246 = vector.shape_cast %245 : vector<1x1x32xf32> to vector<1x32xf32>
    %247 = arith.truncf %242 : vector<32x32xf32> to vector<32x32xbf16>
    %cst_120 = arith.constant dense<0.000000e+00> : vector<32x32xf32>
    %248 = tpu.matmul %247, %244, %cst_120 {dimension_numbers = #tpu.dot_dimension_numbers<[1], [0], [0], [1], [0, 0, 1, 1], [], []>} : vector<32x32xbf16>, vector<32x32xbf16>, vector<32x32xf32> -> vector<32x32xf32>
    %249 = vector.broadcast %246 : vector<1x32xf32> to vector<32x32xf32>
    %250 = arith.addf %248, %249 : vector<32x32xf32>
    %251 = arith.mulf %250, %250 : vector<32x32xf32>
    %252 = arith.mulf %250, %251 : vector<32x32xf32>
    %cst_121 = arith.constant 4.471500e-02 : f32
    %253 = vector.broadcast %cst_121 : f32 to vector<32x32xf32>
    %254 = arith.mulf %253, %252 : vector<32x32xf32>
    %255 = arith.addf %250, %254 : vector<32x32xf32>
    %cst_122 = arith.constant 0.797884583 : f32
    %256 = vector.broadcast %cst_122 : f32 to vector<32x32xf32>
    %257 = arith.mulf %256, %255 : vector<32x32xf32>
    %258 = math.tanh %257 : vector<32x32xf32>
    %cst_123 = arith.constant 1.000000e+00 : f32
    %259 = vector.broadcast %cst_123 : f32 to vector<32x32xf32>
    %260 = arith.addf %259, %258 : vector<32x32xf32>
    %cst_124 = arith.constant 5.000000e-01 : f32
    %261 = vector.broadcast %cst_124 : f32 to vector<32x32xf32>
    %262 = arith.mulf %261, %260 : vector<32x32xf32>
    %263 = arith.mulf %250, %262 : vector<32x32xf32>
    %c0_125 = arith.constant 0 : index
    %c0_126 = arith.constant 0 : index
    %c0_127 = arith.constant 0 : index
    %264 = vector.load %arg15[%c0_125, %c0_126, %c0_127] : memref<2x32x32xbf16, #tpu.memory_space<vmem>>, vector<1x32x32xbf16>
    %265 = vector.shape_cast %264 : vector<1x32x32xbf16> to vector<32x32xbf16>
    %c0_128 = arith.constant 0 : index
    %c0_129 = arith.constant 0 : index
    %c0_130 = arith.constant 0 : index
    %266 = vector.load %arg16[%c0_128, %c0_129, %c0_130] : memref<2x1x32xf32, #tpu.memory_space<vmem>>, vector<1x1x32xf32>
    %267 = vector.shape_cast %266 : vector<1x1x32xf32> to vector<1x32xf32>
    %268 = arith.truncf %263 : vector<32x32xf32> to vector<32x32xbf16>
    %cst_131 = arith.constant dense<0.000000e+00> : vector<32x32xf32>
    %269 = tpu.matmul %268, %265, %cst_131 {dimension_numbers = #tpu.dot_dimension_numbers<[1], [0], [0], [1], [0, 0, 1, 1], [], []>} : vector<32x32xbf16>, vector<32x32xbf16>, vector<32x32xf32> -> vector<32x32xf32>
    %270 = vector.broadcast %267 : vector<1x32xf32> to vector<32x32xf32>
    %271 = arith.addf %269, %270 : vector<32x32xf32>
    %272 = arith.addf %218, %271 : vector<32x32xf32>
    %c1_132 = arith.constant 1 : index
    %c0_133 = arith.constant 0 : index
    %c0_134 = arith.constant 0 : index
    %273 = vector.load %arg9[%c1_132, %c0_133, %c0_134] : memref<2x4x32xf32, #tpu.memory_space<vmem>>, vector<1x4x32xf32>
    %274 = vector.shape_cast %273 : vector<1x4x32xf32> to vector<4x32xf32>
    %c1_135 = arith.constant 1 : index
    %c0_136 = arith.constant 0 : index
    %c0_137 = arith.constant 0 : index
    %275 = vector.load %arg7[%c1_135, %c0_136, %c0_137] : memref<2x32x128xbf16, #tpu.memory_space<vmem>>, vector<1x32x128xbf16>
    %276 = vector.shape_cast %275 : vector<1x32x128xbf16> to vector<32x128xbf16>
    %c1_138 = arith.constant 1 : index
    %c0_139 = arith.constant 0 : index
    %c0_140 = arith.constant 0 : index
    %277 = vector.load %arg8[%c1_138, %c0_139, %c0_140] : memref<2x1x128xf32, #tpu.memory_space<vmem>>, vector<1x1x128xf32>
    %278 = vector.shape_cast %277 : vector<1x1x128xf32> to vector<1x128xf32>
    %279 = arith.truncf %76 : vector<2x32xf32> to vector<2x32xbf16>
    %cst_141 = arith.constant dense<0.000000e+00> : vector<2x128xf32>
    %280 = tpu.matmul %279, %276, %cst_141 {dimension_numbers = #tpu.dot_dimension_numbers<[1], [0], [0], [1], [0, 0, 1, 1], [], []>} : vector<2x32xbf16>, vector<32x128xbf16>, vector<2x128xf32> -> vector<2x128xf32>
    %281 = vector.broadcast %278 : vector<1x128xf32> to vector<2x128xf32>
    %282 = arith.addf %280, %281 : vector<2x128xf32>
    %283 = vector.shape_cast %282 : vector<2x128xf32> to vector<2x1x128xf32>
    %284 = vector.shape_cast %283 : vector<2x1x128xf32> to vector<2x1x128xf32>
    %285 = vector.broadcast %284 : vector<2x1x128xf32> to vector<2x16x128xf32>
    %286 = vector.shape_cast %285 : vector<2x16x128xf32> to vector<32x128xf32>
    %287 = vector.extract_strided_slice %286 {offsets = [0, 0], sizes = [32, 32], strides = [1, 1]} : vector<32x128xf32> to vector<32x32xf32>
    %288 = vector.extract_strided_slice %286 {offsets = [0, 32], sizes = [32, 32], strides = [1, 1]} : vector<32x128xf32> to vector<32x32xf32>
    %289 = vector.extract_strided_slice %286 {offsets = [0, 64], sizes = [32, 32], strides = [1, 1]} : vector<32x128xf32> to vector<32x32xf32>
    %290 = vector.extract_strided_slice %286 {offsets = [0, 96], sizes = [32, 32], strides = [1, 1]} : vector<32x128xf32> to vector<32x32xf32>
    %cst_142 = arith.constant dense<0.000000e+00> : vector<32xf32>
    %291 = vector.multi_reduction <add>, %272, %cst_142 [1] : vector<32x32xf32> to vector<32xf32>
    %292 = vector.shape_cast %291 : vector<32xf32> to vector<32x1xf32>
    %cst_143 = arith.constant 3.200000e+01 : f32
    %293 = vector.broadcast %cst_143 : f32 to vector<32x1xf32>
    %294 = arith.divf %292, %293 : vector<32x1xf32>
    %295 = vector.broadcast %294 : vector<32x1xf32> to vector<32x32xf32>
    %296 = arith.subf %272, %295 : vector<32x32xf32>
    %297 = arith.mulf %296, %296 : vector<32x32xf32>
    %cst_144 = arith.constant dense<0.000000e+00> : vector<32xf32>
    %298 = vector.multi_reduction <add>, %297, %cst_144 [1] : vector<32x32xf32> to vector<32xf32>
    %299 = vector.shape_cast %298 : vector<32xf32> to vector<32x1xf32>
    %cst_145 = arith.constant 3.200000e+01 : f32
    %300 = vector.broadcast %cst_145 : f32 to vector<32x1xf32>
    %301 = arith.divf %299, %300 : vector<32x1xf32>
    %cst_146 = arith.constant 9.99999974E-6 : f32
    %302 = vector.broadcast %cst_146 : f32 to vector<32x1xf32>
    %303 = arith.addf %301, %302 : vector<32x1xf32>
    %304 = math.rsqrt %303 : vector<32x1xf32>
    %305 = vector.broadcast %304 : vector<32x1xf32> to vector<32x32xf32>
    %306 = arith.mulf %296, %305 : vector<32x32xf32>
    %307 = vector.extract_strided_slice %274 {offsets = [0, 0], sizes = [1, 32], strides = [1, 1]} : vector<4x32xf32> to vector<1x32xf32>
    %308 = vector.broadcast %307 : vector<1x32xf32> to vector<32x32xf32>
    %309 = arith.mulf %306, %308 : vector<32x32xf32>
    %310 = vector.extract_strided_slice %274 {offsets = [1, 0], sizes = [1, 32], strides = [1, 1]} : vector<4x32xf32> to vector<1x32xf32>
    %311 = vector.broadcast %310 : vector<1x32xf32> to vector<32x32xf32>
    %312 = arith.addf %309, %311 : vector<32x32xf32>
    %313 = arith.mulf %312, %287 : vector<32x32xf32>
    %314 = arith.addf %313, %288 : vector<32x32xf32>
    %c1_147 = arith.constant 1 : index
    %c0_148 = arith.constant 0 : index
    %c0_149 = arith.constant 0 : index
    %315 = vector.load %arg10[%c1_147, %c0_148, %c0_149] : memref<2x32x96xbf16, #tpu.memory_space<vmem>>, vector<1x32x96xbf16>
    %316 = vector.shape_cast %315 : vector<1x32x96xbf16> to vector<32x96xbf16>
    %317 = arith.truncf %314 : vector<32x32xf32> to vector<32x32xbf16>
    %cst_150 = arith.constant dense<0.000000e+00> : vector<32x96xf32>
    %318 = tpu.matmul %317, %316, %cst_150 {dimension_numbers = #tpu.dot_dimension_numbers<[1], [0], [0], [1], [0, 0, 1, 1], [], []>} : vector<32x32xbf16>, vector<32x96xbf16>, vector<32x96xf32> -> vector<32x96xf32>
    %319 = vector.shape_cast %318 : vector<32x96xf32> to vector<2x16x96xf32>
    %cst_151 = arith.constant 0.000000e+00 : f32
    %320 = vector.broadcast %cst_151 : f32 to vector<32x32xf32>
    %321 = vector.extract_strided_slice %319 {offsets = [0, 0, 0], sizes = [2, 16, 8], strides = [1, 1, 1]} : vector<2x16x96xf32> to vector<2x16x8xf32>
    %322 = vector.extract_strided_slice %319 {offsets = [0, 0, 32], sizes = [2, 16, 8], strides = [1, 1, 1]} : vector<2x16x96xf32> to vector<2x16x8xf32>
    %323 = vector.extract_strided_slice %319 {offsets = [0, 0, 64], sizes = [2, 16, 8], strides = [1, 1, 1]} : vector<2x16x96xf32> to vector<2x16x8xf32>
    "tpu.trace_start"() <{level = 10 : i32, message = "bqd,bkd->bqk"}> : () -> ()
    %cst_152 = arith.constant dense<0.000000e+00> : vector<2x16x16xf32>
    %324 = tpu.matmul %321, %322, %cst_152 {dimension_numbers = #tpu.dot_dimension_numbers<[2], [2], [1], [1], [0, 0, 0, 1, 1, 1], [0], [0]>} : vector<2x16x8xf32>, vector<2x16x8xf32>, vector<2x16x16xf32> -> vector<2x16x16xf32>
    "tpu.trace_stop"() : () -> ()
    %cst_153 = arith.constant dense<0xFF800000> : vector<2x16xf32>
    %325 = vector.multi_reduction <maximumf>, %324, %cst_153 [2] : vector<2x16x16xf32> to vector<2x16xf32>
    %326 = vector.shape_cast %325 : vector<2x16xf32> to vector<2x16x1xf32>
    %327 = vector.broadcast %326 : vector<2x16x1xf32> to vector<2x16x16xf32>
    %328 = arith.subf %324, %327 : vector<2x16x16xf32>
    %329 = math.exp %328 : vector<2x16x16xf32>
    %cst_154 = arith.constant dense<0.000000e+00> : vector<2x16xf32>
    %330 = vector.multi_reduction <add>, %329, %cst_154 [2] : vector<2x16x16xf32> to vector<2x16xf32>
    %331 = vector.shape_cast %330 : vector<2x16xf32> to vector<2x16x1xf32>
    %332 = tpu.reciprocal %331 {approx = true} : vector<2x16x1xf32> -> vector<2x16x1xf32>
    %333 = vector.broadcast %332 : vector<2x16x1xf32> to vector<2x16x16xf32>
    %334 = arith.mulf %329, %333 : vector<2x16x16xf32>
    "tpu.trace_start"() <{level = 10 : i32, message = "bqk,bkd->bqd"}> : () -> ()
    %cst_155 = arith.constant dense<0.000000e+00> : vector<2x16x8xf32>
    %335 = tpu.matmul %334, %323, %cst_155 {dimension_numbers = #tpu.dot_dimension_numbers<[2], [1], [1], [2], [0, 0, 0, 1, 1, 2], [0], [0]>} : vector<2x16x16xf32>, vector<2x16x8xf32>, vector<2x16x8xf32> -> vector<2x16x8xf32>
    "tpu.trace_stop"() : () -> ()
    %336 = vector.shape_cast %335 : vector<2x16x8xf32> to vector<32x8xf32>
    %337 = arith.truncf %336 : vector<32x8xf32> to vector<32x8xbf16>
    %c1_156 = arith.constant 1 : index
    %c0_157 = arith.constant 0 : index
    %c0_158 = arith.constant 0 : index
    %c0_159 = arith.constant 0 : index
    %338 = vector.load %arg11[%c1_156, %c0_157, %c0_158, %c0_159] : memref<2x4x8x32xbf16, #tpu.memory_space<vmem>>, vector<1x1x8x32xbf16>
    %339 = vector.shape_cast %338 : vector<1x1x8x32xbf16> to vector<8x32xbf16>
    %cst_160 = arith.constant dense<0.000000e+00> : vector<32x32xf32>
    %340 = tpu.matmul %337, %339, %cst_160 {dimension_numbers = #tpu.dot_dimension_numbers<[1], [0], [0], [1], [0, 0, 1, 1], [], []>} : vector<32x8xbf16>, vector<8x32xbf16>, vector<32x32xf32> -> vector<32x32xf32>
    %341 = arith.addf %320, %340 : vector<32x32xf32>
    %342 = vector.extract_strided_slice %319 {offsets = [0, 0, 8], sizes = [2, 16, 8], strides = [1, 1, 1]} : vector<2x16x96xf32> to vector<2x16x8xf32>
    %343 = vector.extract_strided_slice %319 {offsets = [0, 0, 40], sizes = [2, 16, 8], strides = [1, 1, 1]} : vector<2x16x96xf32> to vector<2x16x8xf32>
    %344 = vector.extract_strided_slice %319 {offsets = [0, 0, 72], sizes = [2, 16, 8], strides = [1, 1, 1]} : vector<2x16x96xf32> to vector<2x16x8xf32>
    "tpu.trace_start"() <{level = 10 : i32, message = "bqd,bkd->bqk"}> : () -> ()
    %cst_161 = arith.constant dense<0.000000e+00> : vector<2x16x16xf32>
    %345 = tpu.matmul %342, %343, %cst_161 {dimension_numbers = #tpu.dot_dimension_numbers<[2], [2], [1], [1], [0, 0, 0, 1, 1, 1], [0], [0]>} : vector<2x16x8xf32>, vector<2x16x8xf32>, vector<2x16x16xf32> -> vector<2x16x16xf32>
    "tpu.trace_stop"() : () -> ()
    %cst_162 = arith.constant dense<0xFF800000> : vector<2x16xf32>
    %346 = vector.multi_reduction <maximumf>, %345, %cst_162 [2] : vector<2x16x16xf32> to vector<2x16xf32>
    %347 = vector.shape_cast %346 : vector<2x16xf32> to vector<2x16x1xf32>
    %348 = vector.broadcast %347 : vector<2x16x1xf32> to vector<2x16x16xf32>
    %349 = arith.subf %345, %348 : vector<2x16x16xf32>
    %350 = math.exp %349 : vector<2x16x16xf32>
    %cst_163 = arith.constant dense<0.000000e+00> : vector<2x16xf32>
    %351 = vector.multi_reduction <add>, %350, %cst_163 [2] : vector<2x16x16xf32> to vector<2x16xf32>
    %352 = vector.shape_cast %351 : vector<2x16xf32> to vector<2x16x1xf32>
    %353 = tpu.reciprocal %352 {approx = true} : vector<2x16x1xf32> -> vector<2x16x1xf32>
    %354 = vector.broadcast %353 : vector<2x16x1xf32> to vector<2x16x16xf32>
    %355 = arith.mulf %350, %354 : vector<2x16x16xf32>
    "tpu.trace_start"() <{level = 10 : i32, message = "bqk,bkd->bqd"}> : () -> ()
    %cst_164 = arith.constant dense<0.000000e+00> : vector<2x16x8xf32>
    %356 = tpu.matmul %355, %344, %cst_164 {dimension_numbers = #tpu.dot_dimension_numbers<[2], [1], [1], [2], [0, 0, 0, 1, 1, 2], [0], [0]>} : vector<2x16x16xf32>, vector<2x16x8xf32>, vector<2x16x8xf32> -> vector<2x16x8xf32>
    "tpu.trace_stop"() : () -> ()
    %357 = vector.shape_cast %356 : vector<2x16x8xf32> to vector<32x8xf32>
    %358 = arith.truncf %357 : vector<32x8xf32> to vector<32x8xbf16>
    %c1_165 = arith.constant 1 : index
    %c1_166 = arith.constant 1 : index
    %c0_167 = arith.constant 0 : index
    %c0_168 = arith.constant 0 : index
    %359 = vector.load %arg11[%c1_165, %c1_166, %c0_167, %c0_168] : memref<2x4x8x32xbf16, #tpu.memory_space<vmem>>, vector<1x1x8x32xbf16>
    %360 = vector.shape_cast %359 : vector<1x1x8x32xbf16> to vector<8x32xbf16>
    %cst_169 = arith.constant dense<0.000000e+00> : vector<32x32xf32>
    %361 = tpu.matmul %358, %360, %cst_169 {dimension_numbers = #tpu.dot_dimension_numbers<[1], [0], [0], [1], [0, 0, 1, 1], [], []>} : vector<32x8xbf16>, vector<8x32xbf16>, vector<32x32xf32> -> vector<32x32xf32>
    %362 = arith.addf %341, %361 : vector<32x32xf32>
    %363 = vector.extract_strided_slice %319 {offsets = [0, 0, 16], sizes = [2, 16, 8], strides = [1, 1, 1]} : vector<2x16x96xf32> to vector<2x16x8xf32>
    %364 = vector.extract_strided_slice %319 {offsets = [0, 0, 48], sizes = [2, 16, 8], strides = [1, 1, 1]} : vector<2x16x96xf32> to vector<2x16x8xf32>
    %365 = vector.extract_strided_slice %319 {offsets = [0, 0, 80], sizes = [2, 16, 8], strides = [1, 1, 1]} : vector<2x16x96xf32> to vector<2x16x8xf32>
    "tpu.trace_start"() <{level = 10 : i32, message = "bqd,bkd->bqk"}> : () -> ()
    %cst_170 = arith.constant dense<0.000000e+00> : vector<2x16x16xf32>
    %366 = tpu.matmul %363, %364, %cst_170 {dimension_numbers = #tpu.dot_dimension_numbers<[2], [2], [1], [1], [0, 0, 0, 1, 1, 1], [0], [0]>} : vector<2x16x8xf32>, vector<2x16x8xf32>, vector<2x16x16xf32> -> vector<2x16x16xf32>
    "tpu.trace_stop"() : () -> ()
    %cst_171 = arith.constant dense<0xFF800000> : vector<2x16xf32>
    %367 = vector.multi_reduction <maximumf>, %366, %cst_171 [2] : vector<2x16x16xf32> to vector<2x16xf32>
    %368 = vector.shape_cast %367 : vector<2x16xf32> to vector<2x16x1xf32>
    %369 = vector.broadcast %368 : vector<2x16x1xf32> to vector<2x16x16xf32>
    %370 = arith.subf %366, %369 : vector<2x16x16xf32>
    %371 = math.exp %370 : vector<2x16x16xf32>
    %cst_172 = arith.constant dense<0.000000e+00> : vector<2x16xf32>
    %372 = vector.multi_reduction <add>, %371, %cst_172 [2] : vector<2x16x16xf32> to vector<2x16xf32>
    %373 = vector.shape_cast %372 : vector<2x16xf32> to vector<2x16x1xf32>
    %374 = tpu.reciprocal %373 {approx = true} : vector<2x16x1xf32> -> vector<2x16x1xf32>
    %375 = vector.broadcast %374 : vector<2x16x1xf32> to vector<2x16x16xf32>
    %376 = arith.mulf %371, %375 : vector<2x16x16xf32>
    "tpu.trace_start"() <{level = 10 : i32, message = "bqk,bkd->bqd"}> : () -> ()
    %cst_173 = arith.constant dense<0.000000e+00> : vector<2x16x8xf32>
    %377 = tpu.matmul %376, %365, %cst_173 {dimension_numbers = #tpu.dot_dimension_numbers<[2], [1], [1], [2], [0, 0, 0, 1, 1, 2], [0], [0]>} : vector<2x16x16xf32>, vector<2x16x8xf32>, vector<2x16x8xf32> -> vector<2x16x8xf32>
    "tpu.trace_stop"() : () -> ()
    %378 = vector.shape_cast %377 : vector<2x16x8xf32> to vector<32x8xf32>
    %379 = arith.truncf %378 : vector<32x8xf32> to vector<32x8xbf16>
    %c1_174 = arith.constant 1 : index
    %c2_175 = arith.constant 2 : index
    %c0_176 = arith.constant 0 : index
    %c0_177 = arith.constant 0 : index
    %380 = vector.load %arg11[%c1_174, %c2_175, %c0_176, %c0_177] : memref<2x4x8x32xbf16, #tpu.memory_space<vmem>>, vector<1x1x8x32xbf16>
    %381 = vector.shape_cast %380 : vector<1x1x8x32xbf16> to vector<8x32xbf16>
    %cst_178 = arith.constant dense<0.000000e+00> : vector<32x32xf32>
    %382 = tpu.matmul %379, %381, %cst_178 {dimension_numbers = #tpu.dot_dimension_numbers<[1], [0], [0], [1], [0, 0, 1, 1], [], []>} : vector<32x8xbf16>, vector<8x32xbf16>, vector<32x32xf32> -> vector<32x32xf32>
    %383 = arith.addf %362, %382 : vector<32x32xf32>
    %384 = vector.extract_strided_slice %319 {offsets = [0, 0, 24], sizes = [2, 16, 8], strides = [1, 1, 1]} : vector<2x16x96xf32> to vector<2x16x8xf32>
    %385 = vector.extract_strided_slice %319 {offsets = [0, 0, 56], sizes = [2, 16, 8], strides = [1, 1, 1]} : vector<2x16x96xf32> to vector<2x16x8xf32>
    %386 = vector.extract_strided_slice %319 {offsets = [0, 0, 88], sizes = [2, 16, 8], strides = [1, 1, 1]} : vector<2x16x96xf32> to vector<2x16x8xf32>
    "tpu.trace_start"() <{level = 10 : i32, message = "bqd,bkd->bqk"}> : () -> ()
    %cst_179 = arith.constant dense<0.000000e+00> : vector<2x16x16xf32>
    %387 = tpu.matmul %384, %385, %cst_179 {dimension_numbers = #tpu.dot_dimension_numbers<[2], [2], [1], [1], [0, 0, 0, 1, 1, 1], [0], [0]>} : vector<2x16x8xf32>, vector<2x16x8xf32>, vector<2x16x16xf32> -> vector<2x16x16xf32>
    "tpu.trace_stop"() : () -> ()
    %cst_180 = arith.constant dense<0xFF800000> : vector<2x16xf32>
    %388 = vector.multi_reduction <maximumf>, %387, %cst_180 [2] : vector<2x16x16xf32> to vector<2x16xf32>
    %389 = vector.shape_cast %388 : vector<2x16xf32> to vector<2x16x1xf32>
    %390 = vector.broadcast %389 : vector<2x16x1xf32> to vector<2x16x16xf32>
    %391 = arith.subf %387, %390 : vector<2x16x16xf32>
    %392 = math.exp %391 : vector<2x16x16xf32>
    %cst_181 = arith.constant dense<0.000000e+00> : vector<2x16xf32>
    %393 = vector.multi_reduction <add>, %392, %cst_181 [2] : vector<2x16x16xf32> to vector<2x16xf32>
    %394 = vector.shape_cast %393 : vector<2x16xf32> to vector<2x16x1xf32>
    %395 = tpu.reciprocal %394 {approx = true} : vector<2x16x1xf32> -> vector<2x16x1xf32>
    %396 = vector.broadcast %395 : vector<2x16x1xf32> to vector<2x16x16xf32>
    %397 = arith.mulf %392, %396 : vector<2x16x16xf32>
    "tpu.trace_start"() <{level = 10 : i32, message = "bqk,bkd->bqd"}> : () -> ()
    %cst_182 = arith.constant dense<0.000000e+00> : vector<2x16x8xf32>
    %398 = tpu.matmul %397, %386, %cst_182 {dimension_numbers = #tpu.dot_dimension_numbers<[2], [1], [1], [2], [0, 0, 0, 1, 1, 2], [0], [0]>} : vector<2x16x16xf32>, vector<2x16x8xf32>, vector<2x16x8xf32> -> vector<2x16x8xf32>
    "tpu.trace_stop"() : () -> ()
    %399 = vector.shape_cast %398 : vector<2x16x8xf32> to vector<32x8xf32>
    %400 = arith.truncf %399 : vector<32x8xf32> to vector<32x8xbf16>
    %c1_183 = arith.constant 1 : index
    %c3_184 = arith.constant 3 : index
    %c0_185 = arith.constant 0 : index
    %c0_186 = arith.constant 0 : index
    %401 = vector.load %arg11[%c1_183, %c3_184, %c0_185, %c0_186] : memref<2x4x8x32xbf16, #tpu.memory_space<vmem>>, vector<1x1x8x32xbf16>
    %402 = vector.shape_cast %401 : vector<1x1x8x32xbf16> to vector<8x32xbf16>
    %cst_187 = arith.constant dense<0.000000e+00> : vector<32x32xf32>
    %403 = tpu.matmul %400, %402, %cst_187 {dimension_numbers = #tpu.dot_dimension_numbers<[1], [0], [0], [1], [0, 0, 1, 1], [], []>} : vector<32x8xbf16>, vector<8x32xbf16>, vector<32x32xf32> -> vector<32x32xf32>
    %404 = arith.addf %383, %403 : vector<32x32xf32>
    %405 = arith.addf %272, %404 : vector<32x32xf32>
    %c1_188 = arith.constant 1 : index
    %c0_189 = arith.constant 0 : index
    %c0_190 = arith.constant 0 : index
    %406 = vector.load %arg12[%c1_188, %c0_189, %c0_190] : memref<2x1x32xf32, #tpu.memory_space<vmem>>, vector<1x1x32xf32>
    %407 = vector.shape_cast %406 : vector<1x1x32xf32> to vector<1x32xf32>
    %408 = vector.broadcast %407 : vector<1x32xf32> to vector<32x32xf32>
    %409 = arith.addf %405, %408 : vector<32x32xf32>
    %cst_191 = arith.constant dense<0.000000e+00> : vector<32xf32>
    %410 = vector.multi_reduction <add>, %409, %cst_191 [1] : vector<32x32xf32> to vector<32xf32>
    %411 = vector.shape_cast %410 : vector<32xf32> to vector<32x1xf32>
    %cst_192 = arith.constant 3.200000e+01 : f32
    %412 = vector.broadcast %cst_192 : f32 to vector<32x1xf32>
    %413 = arith.divf %411, %412 : vector<32x1xf32>
    %414 = vector.broadcast %413 : vector<32x1xf32> to vector<32x32xf32>
    %415 = arith.subf %409, %414 : vector<32x32xf32>
    %416 = arith.mulf %415, %415 : vector<32x32xf32>
    %cst_193 = arith.constant dense<0.000000e+00> : vector<32xf32>
    %417 = vector.multi_reduction <add>, %416, %cst_193 [1] : vector<32x32xf32> to vector<32xf32>
    %418 = vector.shape_cast %417 : vector<32xf32> to vector<32x1xf32>
    %cst_194 = arith.constant 3.200000e+01 : f32
    %419 = vector.broadcast %cst_194 : f32 to vector<32x1xf32>
    %420 = arith.divf %418, %419 : vector<32x1xf32>
    %cst_195 = arith.constant 9.99999974E-6 : f32
    %421 = vector.broadcast %cst_195 : f32 to vector<32x1xf32>
    %422 = arith.addf %420, %421 : vector<32x1xf32>
    %423 = math.rsqrt %422 : vector<32x1xf32>
    %424 = vector.broadcast %423 : vector<32x1xf32> to vector<32x32xf32>
    %425 = arith.mulf %415, %424 : vector<32x32xf32>
    %426 = vector.extract_strided_slice %274 {offsets = [2, 0], sizes = [1, 32], strides = [1, 1]} : vector<4x32xf32> to vector<1x32xf32>
    %427 = vector.broadcast %426 : vector<1x32xf32> to vector<32x32xf32>
    %428 = arith.mulf %425, %427 : vector<32x32xf32>
    %429 = vector.extract_strided_slice %274 {offsets = [3, 0], sizes = [1, 32], strides = [1, 1]} : vector<4x32xf32> to vector<1x32xf32>
    %430 = vector.broadcast %429 : vector<1x32xf32> to vector<32x32xf32>
    %431 = arith.addf %428, %430 : vector<32x32xf32>
    %432 = arith.mulf %431, %289 : vector<32x32xf32>
    %433 = arith.addf %432, %290 : vector<32x32xf32>
    %c1_196 = arith.constant 1 : index
    %c0_197 = arith.constant 0 : index
    %c0_198 = arith.constant 0 : index
    %434 = vector.load %arg13[%c1_196, %c0_197, %c0_198] : memref<2x32x32xbf16, #tpu.memory_space<vmem>>, vector<1x32x32xbf16>
    %435 = vector.shape_cast %434 : vector<1x32x32xbf16> to vector<32x32xbf16>
    %c1_199 = arith.constant 1 : index
    %c0_200 = arith.constant 0 : index
    %c0_201 = arith.constant 0 : index
    %436 = vector.load %arg14[%c1_199, %c0_200, %c0_201] : memref<2x1x32xf32, #tpu.memory_space<vmem>>, vector<1x1x32xf32>
    %437 = vector.shape_cast %436 : vector<1x1x32xf32> to vector<1x32xf32>
    %438 = arith.truncf %433 : vector<32x32xf32> to vector<32x32xbf16>
    %cst_202 = arith.constant dense<0.000000e+00> : vector<32x32xf32>
    %439 = tpu.matmul %438, %435, %cst_202 {dimension_numbers = #tpu.dot_dimension_numbers<[1], [0], [0], [1], [0, 0, 1, 1], [], []>} : vector<32x32xbf16>, vector<32x32xbf16>, vector<32x32xf32> -> vector<32x32xf32>
    %440 = vector.broadcast %437 : vector<1x32xf32> to vector<32x32xf32>
    %441 = arith.addf %439, %440 : vector<32x32xf32>
    %442 = arith.mulf %441, %441 : vector<32x32xf32>
    %443 = arith.mulf %441, %442 : vector<32x32xf32>
    %cst_203 = arith.constant 4.471500e-02 : f32
    %444 = vector.broadcast %cst_203 : f32 to vector<32x32xf32>
    %445 = arith.mulf %444, %443 : vector<32x32xf32>
    %446 = arith.addf %441, %445 : vector<32x32xf32>
    %cst_204 = arith.constant 0.797884583 : f32
    %447 = vector.broadcast %cst_204 : f32 to vector<32x32xf32>
    %448 = arith.mulf %447, %446 : vector<32x32xf32>
    %449 = math.tanh %448 : vector<32x32xf32>
    %cst_205 = arith.constant 1.000000e+00 : f32
    %450 = vector.broadcast %cst_205 : f32 to vector<32x32xf32>
    %451 = arith.addf %450, %449 : vector<32x32xf32>
    %cst_206 = arith.constant 5.000000e-01 : f32
    %452 = vector.broadcast %cst_206 : f32 to vector<32x32xf32>
    %453 = arith.mulf %452, %451 : vector<32x32xf32>
    %454 = arith.mulf %441, %453 : vector<32x32xf32>
    %c1_207 = arith.constant 1 : index
    %c0_208 = arith.constant 0 : index
    %c0_209 = arith.constant 0 : index
    %455 = vector.load %arg15[%c1_207, %c0_208, %c0_209] : memref<2x32x32xbf16, #tpu.memory_space<vmem>>, vector<1x32x32xbf16>
    %456 = vector.shape_cast %455 : vector<1x32x32xbf16> to vector<32x32xbf16>
    %c1_210 = arith.constant 1 : index
    %c0_211 = arith.constant 0 : index
    %c0_212 = arith.constant 0 : index
    %457 = vector.load %arg16[%c1_210, %c0_211, %c0_212] : memref<2x1x32xf32, #tpu.memory_space<vmem>>, vector<1x1x32xf32>
    %458 = vector.shape_cast %457 : vector<1x1x32xf32> to vector<1x32xf32>
    %459 = arith.truncf %454 : vector<32x32xf32> to vector<32x32xbf16>
    %cst_213 = arith.constant dense<0.000000e+00> : vector<32x32xf32>
    %460 = tpu.matmul %459, %456, %cst_213 {dimension_numbers = #tpu.dot_dimension_numbers<[1], [0], [0], [1], [0, 0, 1, 1], [], []>} : vector<32x32xbf16>, vector<32x32xbf16>, vector<32x32xf32> -> vector<32x32xf32>
    %461 = vector.broadcast %458 : vector<1x32xf32> to vector<32x32xf32>
    %462 = arith.addf %460, %461 : vector<32x32xf32>
    %463 = arith.addf %409, %462 : vector<32x32xf32>
    %c0_214 = arith.constant 0 : index
    %c0_215 = arith.constant 0 : index
    %464 = vector.load %arg17[%c0_214, %c0_215] : memref<32x64xbf16, #tpu.memory_space<vmem>>, vector<32x64xbf16>
    %c0_216 = arith.constant 0 : index
    %c0_217 = arith.constant 0 : index
    %465 = vector.load %arg18[%c0_216, %c0_217] : memref<1x64xf32, #tpu.memory_space<vmem>>, vector<1x64xf32>
    %466 = arith.truncf %463 : vector<32x32xf32> to vector<32x32xbf16>
    %cst_218 = arith.constant dense<0.000000e+00> : vector<32x64xf32>
    %467 = tpu.matmul %466, %464, %cst_218 {dimension_numbers = #tpu.dot_dimension_numbers<[1], [0], [0], [1], [0, 0, 1, 1], [], []>} : vector<32x32xbf16>, vector<32x64xbf16>, vector<32x64xf32> -> vector<32x64xf32>
    %468 = vector.broadcast %465 : vector<1x64xf32> to vector<32x64xf32>
    %469 = arith.addf %467, %468 : vector<32x64xf32>
    %cst_219 = arith.constant 0.000000e+00 : f32
    %470 = vector.broadcast %cst_219 : f32 to vector<32x64xf32>
    %471 = arith.cmpf oge, %469, %470 : vector<32x64xf32>
    %cst_220 = arith.constant 0.00999999977 : f32
    %472 = vector.broadcast %cst_220 : f32 to vector<32x64xf32>
    %473 = arith.mulf %472, %469 : vector<32x64xf32>
    %474 = arith.select %471, %469, %473 : vector<32x64xi1>, vector<32x64xf32>
    %c0_221 = arith.constant 0 : index
    %c0_222 = arith.constant 0 : index
    %475 = vector.load %arg19[%c0_221, %c0_222] : memref<64x48xbf16, #tpu.memory_space<vmem>>, vector<64x48xbf16>
    %c0_223 = arith.constant 0 : index
    %c0_224 = arith.constant 0 : index
    %476 = vector.load %arg20[%c0_223, %c0_224] : memref<1x48xf32, #tpu.memory_space<vmem>>, vector<1x48xf32>
    %477 = arith.truncf %474 : vector<32x64xf32> to vector<32x64xbf16>
    %cst_225 = arith.constant dense<0.000000e+00> : vector<32x48xf32>
    %478 = tpu.matmul %477, %475, %cst_225 {dimension_numbers = #tpu.dot_dimension_numbers<[1], [0], [0], [1], [0, 0, 1, 1], [], []>} : vector<32x64xbf16>, vector<64x48xbf16>, vector<32x48xf32> -> vector<32x48xf32>
    %479 = vector.broadcast %476 : vector<1x48xf32> to vector<32x48xf32>
    %480 = arith.addf %478, %479 : vector<32x48xf32>
    %481 = vector.shape_cast %480 : vector<32x48xf32> to vector<2x16x48xf32>
    %c0_226 = arith.constant 0 : index
    %c0_227 = arith.constant 0 : index
    %c0_228 = arith.constant 0 : index
    %482 = vector.load %arg21[%c0_226, %c0_227, %c0_228] : memref<2x16x48xf32, #tpu.memory_space<vmem>>, vector<2x16x48xf32>
    tpu.vector_store %arg21[%c0_226, %c0_227, %c0_228], %481 {strides = array<i32>} : memref<2x16x48xf32, #tpu.memory_space<vmem>>, vector<2x16x48xf32>,
    return
  }
  func.func @transform_0(%arg0: i32) -> (i32, i32) {
    %c0_i32 = arith.constant 0 : i32
    %c0_i32_0 = arith.constant 0 : i32
    return %arg0, %c0_i32 : i32, i32
  }
  func.func @transform_1(%arg0: i32) -> (i32, i32) {
    %c0_i32 = arith.constant 0 : i32
    %c0_i32_0 = arith.constant 0 : i32
    %c0_i32_1 = arith.constant 0 : i32
    return %c0_i32, %c0_i32_0 : i32, i32
  }
  func.func @transform_2(%arg0: i32) -> (i32, i32) {
    %c0_i32 = arith.constant 0 : i32
    %c0_i32_0 = arith.constant 0 : i32
    %c0_i32_1 = arith.constant 0 : i32
    return %c0_i32, %c0_i32_0 : i32, i32
  }
  func.func @transform_3(%arg0: i32) -> (i32, i32) {
    %c0_i32 = arith.constant 0 : i32
    %c0_i32_0 = arith.constant 0 : i32
    %c0_i32_1 = arith.constant 0 : i32
    return %c0_i32, %c0_i32_0 : i32, i32
  }
  func.func @transform_4(%arg0: i32) -> (i32, i32, i32) {
    %c0_i32 = arith.constant 0 : i32
    %c0_i32_0 = arith.constant 0 : i32
    %c0_i32_1 = arith.constant 0 : i32
    %c0_i32_2 = arith.constant 0 : i32
    return %c0_i32, %c0_i32_0, %c0_i32_1 : i32, i32, i32
  }
  func.func @transform_5(%arg0: i32) -> (i32, i32, i32) {
    %c0_i32 = arith.constant 0 : i32
    %c0_i32_0 = arith.constant 0 : i32
    %c0_i32_1 = arith.constant 0 : i32
    %c0_i32_2 = arith.constant 0 : i32
    return %c0_i32, %c0_i32_0, %c0_i32_1 : i32, i32, i32
  }
  func.func @transform_6(%arg0: i32) -> (i32, i32, i32) {
    %c0_i32 = arith.constant 0 : i32
    %c0_i32_0 = arith.constant 0 : i32
    %c0_i32_1 = arith.constant 0 : i32
    %c0_i32_2 = arith.constant 0 : i32
    return %c0_i32, %c0_i32_0, %c0_i32_1 : i32, i32, i32
  }
  func.func @transform_7(%arg0: i32) -> (i32, i32, i32) {
    %c0_i32 = arith.constant 0 : i32
    %c0_i32_0 = arith.constant 0 : i32
    %c0_i32_1 = arith.constant 0 : i32
    %c0_i32_2 = arith.constant 0 : i32
    return %c0_i32, %c0_i32_0, %c0_i32_1 : i32, i32, i32
  }
  func.func @transform_8(%arg0: i32) -> (i32, i32, i32) {
    %c0_i32 = arith.constant 0 : i32
    %c0_i32_0 = arith.constant 0 : i32
    %c0_i32_1 = arith.constant 0 : i32
    %c0_i32_2 = arith.constant 0 : i32
    return %c0_i32, %c0_i32_0, %c0_i32_1 : i32, i32, i32
  }
  func.func @transform_9(%arg0: i32) -> (i32, i32, i32) {
    %c0_i32 = arith.constant 0 : i32
    %c0_i32_0 = arith.constant 0 : i32
    %c0_i32_1 = arith.constant 0 : i32
    %c0_i32_2 = arith.constant 0 : i32
    return %c0_i32, %c0_i32_0, %c0_i32_1 : i32, i32, i32
  }
  func.func @transform_10(%arg0: i32) -> (i32, i32, i32, i32) {
    %c0_i32 = arith.constant 0 : i32
    %c0_i32_0 = arith.constant 0 : i32
    %c0_i32_1 = arith.constant 0 : i32
    %c0_i32_2 = arith.constant 0 : i32
    %c0_i32_3 = arith.constant 0 : i32
    return %c0_i32, %c0_i32_0, %c0_i32_1, %c0_i32_2 : i32, i32, i32, i32
  }
  func.func @transform_11(%arg0: i32) -> (i32, i32, i32) {
    %c0_i32 = arith.constant 0 : i32
    %c0_i32_0 = arith.constant 0 : i32
    %c0_i32_1 = arith.constant 0 : i32
    %c0_i32_2 = arith.constant 0 : i32
    return %c0_i32, %c0_i32_0, %c0_i32_1 : i32, i32, i32
  }
  func.func @transform_12(%arg0: i32) -> (i32, i32, i32) {
    %c0_i32 = arith.constant 0 : i32
    %c0_i32_0 = arith.constant 0 : i32
    %c0_i32_1 = arith.constant 0 : i32
    %c0_i32_2 = arith.constant 0 : i32
    return %c0_i32, %c0_i32_0, %c0_i32_1 : i32, i32, i32
  }
  func.func @transform_13(%arg0: i32) -> (i32, i32, i32) {
    %c0_i32 = arith.constant 0 : i32
    %c0_i32_0 = arith.constant 0 : i32
    %c0_i32_1 = arith.constant 0 : i32
    %c0_i32_2 = arith.constant 0 : i32
    return %c0_i32, %c0_i32_0, %c0_i32_1 : i32, i32, i32
  }
  func.func @transform_14(%arg0: i32) -> (i32, i32, i32) {
    %c0_i32 = arith.constant 0 : i32
    %c0_i32_0 = arith.constant 0 : i32
    %c0_i32_1 = arith.constant 0 : i32
    %c0_i32_2 = arith.constant 0 : i32
    return %c0_i32, %c0_i32_0, %c0_i32_1 : i32, i32, i32
  }
  func.func @transform_15(%arg0: i32) -> (i32, i32, i32) {
    %c0_i32 = arith.constant 0 : i32
    %c0_i32_0 = arith.constant 0 : i32
    %c0_i32_1 = arith.constant 0 : i32
    %c0_i32_2 = arith.constant 0 : i32
    return %c0_i32, %c0_i32_0, %c0_i32_1 : i32, i32, i32
  }
  func.func @transform_16(%arg0: i32) -> (i32, i32) {
    %c0_i32 = arith.constant 0 : i32
    %c0_i32_0 = arith.constant 0 : i32
    %c0_i32_1 = arith.constant 0 : i32
    return %c0_i32, %c0_i32_0 : i32, i32
  }
  func.func @transform_17(%arg0: i32) -> (i32, i32) {
    %c0_i32 = arith.constant 0 : i32
    %c0_i32_0 = arith.constant 0 : i32
    %c0_i32_1 = arith.constant 0 : i32
    return %c0_i32, %c0_i32_0 : i32, i32
  }
  func.func @transform_18(%arg0: i32) -> (i32, i32) {
    %c0_i32 = arith.constant 0 : i32
    %c0_i32_0 = arith.constant 0 : i32
    %c0_i32_1 = arith.constant 0 : i32
    return %c0_i32, %c0_i32_0 : i32, i32
  }
  func.func @transform_19(%arg0: i32) -> (i32, i32) {
    %c0_i32 = arith.constant 0 : i32
    %c0_i32_0 = arith.constant 0 : i32
    %c0_i32_1 = arith.constant 0 : i32
    return %c0_i32, %c0_i32_0 : i32, i32
  }
  func.func @transform_20(%arg0: i32) -> (i32, i32, i32) {
    %c0_i32 = arith.constant 0 : i32
    %c0_i32_0 = arith.constant 0 : i32
    %c0_i32_1 = arith.constant 0 : i32
    return %arg0, %c0_i32, %c0_i32_0 : i32, i32, i32
  }
}

</mosaic_0001>

<bundles_post_ra>
// kernel: generator_forward.1
= control target key start
LH: loop header
LB: loop body
LE: loop exit
PB: predicated region body
PF: predicated region fallthrough
CT: control target
= control target key end

     0   :  { %s5240_s0 = inlined_call_operand.vmem [shape: f32[2,16], index: 0, kind: input, shape index: {}]   ;;  %s5241_s1 = inlined_call_operand.hbm [shape: f32[16,32], index: 1, kind: input, shape index: {}]   ;;  %s5242_s2 = inlined_call_operand.hbm [shape: bf16[16,32], index: 2, kind: input, shape index: {}]   ;;  %s5243_s3 = inlined_call_operand.hbm [shape: f32[1,32], index: 3, kind: input, shape index: {}]   ;;  %s5244_s4 = inlined_call_operand.hbm [shape: bf16[5,32,32], index: 4, kind: input, shape index: {}]   ;;  %s5245_s5 = inlined_call_operand.hbm [shape: f32[5,1,32], index: 5, kind: input, shape index: {}]   ;;  %s5246_s6 = inlined_call_operand.vmem [shape: bf16[2,32,128], index: 6, kind: input, shape index: {}]   ;;  %s5247_s7 = inlined_call_operand.hbm [shape: f32[2,1,128], index: 7, kind: input, shape index: {}]   ;;  %s5248_s8 = inlined_call_operand.hbm [shape: f32[2,4,32], index: 8, kind: input, shape index: {}]   ;;  %s5249_s9 = inlined_call_operand.vmem [shape: bf16[2,32,96], index: 9, kind: input, shape index: {}]   ;;  %s5250_s10 = inlined_call_operand.hbm [shape: bf16[2,4,8,32], index: 10, kind: input, shape index: {}]   ;;  %s5251_s11 = inlined_call_operand.hbm [shape: f32[2,1,32], index: 11, kind: input, shape index: {}]   ;;  %s5252_s12 = inlined_call_operand.hbm [shape: bf16[2,32,32], index: 12, kind: input, shape index: {}]   ;;  %s5253_s13 = inlined_call_operand.hbm [shape: f32[2,1,32], index: 13, kind: input, shape index: {}]   ;;  %s5254_s14 = inlined_call_operand.hbm [shape: bf16[2,32,32], index: 14, kind: input, shape index: {}]   ;;  %s5255_s15 = inlined_call_operand.hbm [shape: f32[2,1,32], index: 15, kind: input, shape index: {}]   ;;  %s5256_s16 = inlined_call_operand.hbm [shape: bf16[32,64], index: 16, kind: input, shape index: {}]   ;;  %s5257_s17 = inlined_call_operand.vmem [shape: f32[1,64], index: 17, kind: input, shape index: {}]   ;;  %s5258_s18 = inlined_call_operand.vmem [shape: bf16[64,48], index: 18, kind: input, shape index: {}]   ;;  %s5259_s19 = inlined_call_operand.vmem [shape: f32[1,48], index: 19, kind: input, shape index: {}]   ;;  %s5260_s20 = inlined_call_operand.vmem [shape: f32[2,16,48], index: 20, kind: output, shape index: {}]  }
   0x1   :  { %5265 = sst [smem:[#allocation32_spill]] %s5240_s0 }
   0x2   :  { %5266 = sst [smem:[#allocation33_spill]] %s5241_s1 }
   0x3   :  { %5267 = sst [smem:[#allocation34_spill]] %s5242_s2 }
   0x4   :  { %5268 = sst [smem:[#allocation35_spill]] %s5243_s3 }
   0x5   :  { %5269 = sst [smem:[#allocation36_spill]] %s5244_s4 }
   0x6   :  { %25 = vsyncpa [#allocation3], 0 }
   0x7   :  { %26 = vsyncpa [#allocation5], 0 }
   0x8   :  { %27 = vsyncpa [#allocation8], 0 }
   0x9   :  { %28 = vsyncpa [#allocation11], 0 }
   0xa   :  { %29 = vsyncpa [#allocation14], 0 }
   0xb   :  { %30 = vsyncpa [#allocation17], 0 }
   0xc   :  { %31 = vsyncpa [#allocation20], 0  ;;  %s5270_s23 = sld [smem:[#allocation34_spill]] }
  0x12   :  { %s52_s24 = sshll.u32 %s5270_s23, 4  ;;  %s53_s24 = int_to_ptr.hbm [resolvable:$true] %s52_s24 }
  0x13   :  { %32 = vsyncpa [#allocation23], 0  ;;  %s4325_s2 = smov [#allocation4]   ;;  %s5271_s27 = sld [smem:[#allocation36_spill]] }
  0x14   :  { %s54_s25 = sshll.u32 %s4325_s2, 4  ;;  %s5263_s4 = smov 64   ;;  %s55_s25 = int_to_ptr.vmem [resolvable:$true] %s54_s25 }
  0x15   :  { %s4327_s29 = smov 4   ;;  %s4328_s30 = smov [#allocation7]  }
  0x16   :  { %60 = dma.hbm_to_vmem [thread:$0]  %s53_s24, 128, %s55_s25, [#allocation5], %s5263_s4, %s5263_s4, %s4327_s29  }
  0x17   :  { %s78_s0 = sshll.u32 %s4328_s30, 4  ;;  %s104_s22 = sshll.u32 %s5247_s7, 4  ;;  %s79_s0 = int_to_ptr.vmem [resolvable:$true] %s78_s0  ;;  %s105_s22 = int_to_ptr.hbm [resolvable:$true] %s104_s22 }
  0x18   :  { %s4329_s23 = smov [#allocation10]   ;;  %s132_s24 = sshll.u32 %s5250_s10, 4  ;;  %s133_s24 = int_to_ptr.hbm [resolvable:$true] %s132_s24 }
  0x19   :  { %s76_s28 = sshll.u32 %s5271_s27, 4  ;;  %s106_s2 = sshll.u32 %s4329_s23, 4  ;;  %s77_s28 = int_to_ptr.hbm [resolvable:$true] %s76_s28  ;;  %s107_s2 = int_to_ptr.vmem [resolvable:$true] %s106_s2 }
  0x1a   :  { %84 = dma.hbm_to_vmem [thread:$0]  %s77_s28, 1280, %s79_s0, [#allocation8], %s5263_s4, %s5263_s4, %s4327_s29  }
  0x1b   :  { %s5261_s25 = smov 16   ;;  %s4331_s27 = smov 1  }
  0x1c   :  { %112 = dma.hbm_to_vmem [thread:$0]  %s105_s22, 32, %s107_s2, [#allocation11], %s5261_s25, %s5261_s25, %s4331_s27  }
  0x1d   :  { %s4332_s28 = smov [#allocation13]   ;;  %s158_s7 = sshll.u32 %s5252_s12, 4  ;;  %s159_s7 = int_to_ptr.hbm [resolvable:$true] %s158_s7 }
  0x1e   :  { %s134_s30 = sshll.u32 %s4332_s28, 4  ;;  %s184_s23 = sshll.u32 %s5254_s14, 4  ;;  %s135_s30 = int_to_ptr.vmem [resolvable:$true] %s134_s30  ;;  %s185_s23 = int_to_ptr.hbm [resolvable:$true] %s184_s23 }
  0x1f   :  { %140 = dma.hbm_to_vmem [thread:$0]  %s133_s24, 512, %s135_s30, [#allocation14], %s5263_s4, %s5263_s4, %s4327_s29  }
  0x20   :  { %s4333_s3 = smov [#allocation16]   ;;  %s4334_s22 = smov [#allocation19]  }
  0x21   :  { %s160_s26 = sshll.u32 %s4333_s3, 4  ;;  %s186_s12 = sshll.u32 %s4334_s22, 4  ;;  %s161_s26 = int_to_ptr.vmem [resolvable:$true] %s160_s26  ;;  %s187_s12 = int_to_ptr.vmem [resolvable:$true] %s186_s12 }
  0x22   :  { %166 = dma.hbm_to_vmem [thread:$0]  %s159_s7, 512, %s161_s26, [#allocation17], %s5263_s4, %s5263_s4, %s4327_s29  }
  0x23   :  { %s5272_s0 = sld [smem:[#allocation33_spill]]  ;;  %s4335_s14 = smov [#allocation2]  }
  0x24   :  { %192 = dma.hbm_to_vmem [thread:$0]  %s185_s23, 512, %s187_s12, [#allocation20], %s5263_s4, %s5263_s4, %s4327_s29  }
  0x25   :  { %s41_s24 = sshll.u32 %s4335_s14, 4  ;;  %s5273_s1 = sld [smem:[#allocation35_spill]]  ;;  %s42_s24 = int_to_ptr.vmem [resolvable:$true] %s41_s24 }
  0x26   :  { %s4336_s7 = smov 128   ;;  %s4337_s26 = smov 8  }
  0x27   :  { %s4338_s22 = smov [#allocation6]   ;;  %s89_s25 = sshll.u32 %s5245_s5, 4  ;;  %s90_s25 = int_to_ptr.hbm [resolvable:$true] %s89_s25 }
  0x28   :  { %s68_s2 = sshll.u32 %s4338_s22, 4  ;;  %s117_s14 = sshll.u32 %s5248_s8, 4  ;;  %s69_s2 = int_to_ptr.vmem [resolvable:$true] %s68_s2  ;;  %s118_s14 = int_to_ptr.hbm [resolvable:$true] %s117_s14 }
  0x29   :  { %s39_s21 = sshll.u32 %s5272_s0, 4  ;;  %s4339_s4 = smov [#allocation9]   ;;  %s40_s21 = int_to_ptr.hbm [resolvable:$true] %s39_s21 }
  0x2a   :  { %47 = dma.hbm_to_vmem [thread:$0]  %s40_s21, 256, %s42_s24, [#allocation3], %s4336_s7, %s4336_s7, %s4337_s26  }
  0x2b   :  { %s66_s3 = sshll.u32 %s5273_s1, 4  ;;  %s91_s30 = sshll.u32 %s4339_s4, 4  ;;  %s67_s3 = int_to_ptr.hbm [resolvable:$true] %s66_s3  ;;  %s92_s30 = int_to_ptr.vmem [resolvable:$true] %s91_s30 }
  0x2c   :  { %71 = dma.hbm_to_vmem [thread:$0]  %s67_s3, 16, %s69_s2, [#allocation5]  }
  0x2d   :  { %s5274_s21 = smov 16   ;;  %s4340_s24 = smov [#allocation12]  }
  0x2e   :  { %97 = dma.hbm_to_vmem [thread:$0]  %s90_s25, 80, %s92_s30, [#allocation8], %s5274_s21, %s5274_s21, %s4331_s27  }
  0x2f   :  { %s119_s10 = sshll.u32 %s4340_s24, 4  ;;  %s145_s5 = sshll.u32 %s5251_s11, 4  ;;  %s120_s10 = int_to_ptr.vmem [resolvable:$true] %s119_s10  ;;  %s146_s5 = int_to_ptr.hbm [resolvable:$true] %s145_s5 }
  0x30   :  { %s5275_s3 = smov 64   ;;  %s171_s26 = sshll.u32 %s5253_s13, 4  ;;  %s172_s26 = int_to_ptr.hbm [resolvable:$true] %s171_s26 }
  0x31   :  { %125 = dma.hbm_to_vmem [thread:$0]  %s118_s14, 128, %s120_s10, [#allocation11], %s5275_s3, %s5275_s3, %s4327_s29  }
  0x32   :  { %s4341_s22 = smov [#allocation15]   ;;  %s4342_s25 = smov [#allocation18]  }
  0x33   :  { %s147_s2 = sshll.u32 %s4341_s22, 4  ;;  %s173_s11 = sshll.u32 %s4342_s25, 4  ;;  %s148_s2 = int_to_ptr.vmem [resolvable:$true] %s147_s2  ;;  %s174_s11 = int_to_ptr.vmem [resolvable:$true] %s173_s11 }
  0x34   :  { %153 = dma.hbm_to_vmem [thread:$0]  %s146_s5, 32, %s148_s2, [#allocation14], %s5274_s21, %s5274_s21, %s4331_s27  }
  0x35   :  { %s197_s23 = sshll.u32 %s5255_s15, 4  ;;  %s210_s14 = sshll.u32 %s5256_s16, 4  ;;  %s198_s23 = int_to_ptr.hbm [resolvable:$true] %s197_s23  ;;  %s211_s14 = int_to_ptr.hbm [resolvable:$true] %s210_s14 }
  0x36   :  { %179 = dma.hbm_to_vmem [thread:$0]  %s172_s26, 32, %s174_s11, [#allocation17], %s5274_s21, %s5274_s21, %s4331_s27  }
  0x37   :  { %s4343_s30 = smov [#allocation21]   ;;  %s4344_s10 = smov [#allocation22]  }
  0x38   :  { %s199_s24 = sshll.u32 %s4343_s30, 4  ;;  %s212_s15 = sshll.u32 %s4344_s10, 4  ;;  %s200_s24 = int_to_ptr.vmem [resolvable:$true] %s199_s24  ;;  %s213_s15 = int_to_ptr.vmem [resolvable:$true] %s212_s15 }
  0x39   :  { %205 = dma.hbm_to_vmem [thread:$0]  %s198_s23, 32, %s200_s24, [#allocation20], %s5274_s21, %s5274_s21, %s4331_s27  }
  0x3a   :  { %218 = dma.hbm_to_vmem [thread:$0]  %s211_s14, 256, %s213_s15, [#allocation23], %s5275_s3, %s5275_s3, %s4327_s29  }
  0x3b   :  { %4309 = dma.done.wait [#allocation3], 256  }
  0x3c   :  { %4310 = vsyncadd [#allocation3], 4294967040 }
  0x3d   :  { %4311 = dma.done.wait [#allocation5], 144  }
  0x3e   :  { %4312 = vsyncadd [#allocation5], 4294967152 }
  0x3f   :  { %4313 = dma.done.wait [#allocation8], 1360  }
  0x40   :  { %4314 = vsyncadd [#allocation8], 4294965936 }
  0x41   :  { %4315 = dma.done.wait [#allocation11], 160  }
  0x42   :  { %4316 = vsyncadd [#allocation11], 4294967136 }
  0x43   :  { %4317 = dma.done.wait [#allocation14], 544  }
  0x44   :  { %4318 = vsyncadd [#allocation14], 4294966752 }
  0x45   :  { %4319 = dma.done.wait [#allocation17], 544  }
  0x46   :  { %4320 = vsyncadd [#allocation17], 4294966752 }
  0x47   :  { %4321 = dma.done.wait [#allocation20], 544  }
  0x48   :  { %4322 = vsyncadd [#allocation20], 4294966752 }
  0x49   :  { %4323 = dma.done.wait [#allocation23], 256  }
  0x4a   :  { %4324 = vsyncadd [#allocation23], 4294967040  ;;  %v3634_v0 = vld [vmem:[#allocation4] sm:$0xff]  ;;  %s5276_s29 = sld [smem:[#allocation32_spill]]  ;;  %vm296_vm0 = vcmask 130048   ;;  %v3636_v3 = vld [vmem:[#allocation7 + $0x8] sm:$0xff] }
  0x4b   :  { %307 = vmatpush.bf16.msra.mxu0 %v3634_v0  ;;  %347 = vmatpush.bf16.msra.mxu1 %v3636_v3  ;;  %v3635_v4 = vld [vmem:[#allocation7] sm:$0xff]  ;;  %v3779_v5 = vld [vmem:[#allocation6] ss:$0 sm:$0xff]  ;;  %vm337_vm2 = vcmask 261120   ;;  %v3637_v13 = vld [vmem:[#allocation7 + $0x10] sm:$0xff]  ;;  %v4345_v45 = vmov 32.0  }
  0x4c   :  { %v3638_v12 = vld [vmem:[#allocation7 + $0x18] sm:$0xff]  ;;  %v3780_v14 = vld [vmem:[#allocation9] ss:$0 sm:$0xff]  ;;  %v3640_v21 = vld [vmem:[#allocation7 + $0x28] sm:$0xff]  ;;  %3795 = vrcp.f32 %v4345_v45  ;;  %s4346_s26 = smov 96   ;;  %s4347_s25 = smov 120  }
  0x4d   :  { %389 = vmatpush.bf16.msra.mxu3 %v3638_v12  ;;  %v3639_v22 = vld [vmem:[#allocation7 + $0x20] sm:$0xff]  ;;  %v3781_v23 = vld [vmem:[#allocation9 + $0x1] ss:$0 sm:$0xff]  ;;  %v3642_v30 = vld [vmem:[#allocation7 + $0x38] sm:$0xff]  ;;  %s4348_s11 = smov 88   ;;  %vm691_vm15 = vcmask 64512  }
  0x4e   :  { %v3641_v31 = vld [vmem:[#allocation7 + $0x30] sm:$0xff]  ;;  %v525_v32 = vld [vmem:[#allocation2] sm:$0xff]  ;;  %s4349_s28 = smov 80   ;;  %s4350_s0 = smov 112  }
  0x4f   :  { %348 = vmatpush.bf16.msra.mxu1 %v3635_v4  ;;  %473 = vmatpush.bf16.msrb.mxu0 %v3642_v30  ;;  %v571_v33 = vsel %vm337_vm2, %v525_v32, 0.0  ;;  %v526_v34 = vld [vmem:[#allocation2 + $0x8] sm:$0xff]  ;;  %v3643_v44 = vld [vmem:[#allocation7 + $0x40] sm:$0xff]  ;;  %s4351_s23 = smov 72   ;;  %s4352_s13 = smov 56  }
  0x50   :  { %v282_v1 = vld [vmem:[%s5276_s29] sm:$0x3]  ;;  %572 = vadd.xlane.f32.xlu0 %v571_v33  ;;  %v574_v35 = vsel %vm337_vm2, %v526_v34, 0.0  ;;  %v3782_v36 = vld [vmem:[#allocation9 + $0x2] ss:$0 sm:$0xff]  ;;  %v3644_v43 = vld [vmem:[#allocation7 + $0x48] sm:$0xff] }
  0x51   :  { %v286_v2 = vpack.c.bf16 %v282_v1, %v282_v1  ;;  %390 = vmatpush.bf16.msra.mxu3 %v3637_v13  ;;  %v3783_v57 = vld [vmem:[#allocation9 + $0x3] ss:$0 sm:$0xff]  ;;  %s4353_s12 = smov 48   ;;  %s4354_s14 = smov 104  }
  0x52   :  { %v3796_v47 = vpop.eup %3795  ;;  %s4355_s30 = smov 40  }
  0x53   :  { %3362 = vmatmul.msk.bf16.vlgmr.msra.gmra.mxu0 %vm296_vm0, %v286_v2  ;;  %515 = vmatpush.bf16.msrb.mxu1 %v3644_v43  ;;  %v578_v48 = vmul.f32 32.0, %v3796_v47  ;;  %vm582_vm6 = vweird.f32 %v3796_v47  ;;  %v527_v43 = vld [vmem:[#allocation12] sm:$0xf] }
  0x54   :  { %474 = vmatpush.bf16.msrb.mxu0 %v3641_v31 }
  0x55   :  { %431 = vmatpush.bf16.msrb.mxu3 %v3640_v21  ;;  %v579_v49 = vsub.f32 1.0, %v578_v48 }
  0x57   :  { %516 = vmatpush.bf16.msrb.mxu1 %v3643_v44  ;;  %v580_v50 = vmul.f32 %v3796_v47, %v579_v49  ;;  %v625_v49 = vperm.slane %v527_v43, 1 }
  0x58   :  { %575 = vadd.xlane.f32.xlu0 %v574_v35 }
  0x59   :  { %432 = vmatpush.bf16.msrb.mxu3 %v3639_v22  ;;  %v581_v51 = vadd.f32 %v3796_v47, %v580_v50 }
  0x5b   :  { %v4550_v53 = vsel %vm582_vm6, %v3796_v47, %v581_v51 }
  0xc3   :  { %v573_v46 = vpop.xlane.xlu0 %572 }
  0xc4   :  { %v584_v54 = vmul.f32 %v4550_v53, %v573_v46  ;;  %v622_v46 = vperm.slane %v527_v43, 0 }
  0xc6   :  { %v4554_v56 = vsub.f32 %v525_v32, %v584_v54  ;;  %v3647_v32 = vld [vmem:[%s5249_s9] sm:$0xff] }
  0xc8   :  { %v588_v58 = vmul.f32 %v4554_v56, %v4554_v56 }
  0xca   :  { %v590_v60 = vsel %vm337_vm2, %v588_v58, 0.0 }
  0xcb   :  { %v576_v52 = vpop.xlane.xlu0 %575  ;;  %591 = vadd.xlane.f32.xlu1 %v590_v60 }
  0xcc   :  { %v585_v55 = vmul.f32 %v4550_v53, %v576_v52 }
  0xce   :  { %v4558_v59 = vsub.f32 %v526_v34, %v585_v55 }
  0xd0   :  { %v309_v6 = vpop.f32.mrf.mxu0  ;;  %v589_v63 = vmul.f32 %v4558_v59, %v4558_v59 }
  0xd1   :  { %v310_v7 = vadd.f32 %v3779_v5, %v309_v6  ;;  %v3646_v5 = vld [vmem:[%s5246_s6 + $0x8] sm:$0xff]  ;;  %v3645_v6 = vld [vmem:[%s5246_s6] sm:$0xff] }
  0xd2   :  { %v593_v2 = vsel %vm337_vm2, %v589_v63, 0.0  ;;  %558 = vmatpush.bf16.msra.mxu2 %v3646_v5 }
  0xd3   :  { %vm313_vm1 = vcmp.ge.f32.partialorder %v310_v7, 0.0  ;;  %v314_v8 = vmul.f32 0.01, %v310_v7  ;;  %594 = vadd.xlane.f32.xlu1 %v593_v2 }
  0xd5   :  { %v315_v9 = vsel %vm313_vm1, %v310_v7, %v314_v8  ;;  %v3784_v7 = vld [vmem:[#allocation9 + $0x4] ss:$0 sm:$0xff]  ;;  %vm1079_vm1 = vcmask 1043456  }
  0xd6   :  { %v321_v10 = vpack.c.bf16 %v315_v9, %v315_v9  ;;  %559 = vmatpush.bf16.msra.mxu2 %v3645_v6 }
  0xd8   :  { %v311_v11 = vpop.f32.mrf.mxu0  ;;  %3371 = vmatmul.msk.bf16.vlgmr.msra.gmra.mxu1 %vm337_vm2, %v321_v10 }
 0x13e   :  { %v592_v22 = vpop.xlane.xlu1 %591 }
 0x155   :  { %v350_v15 = vpop.f32.mrf.mxu1 }
 0x156   :  { %v351_v16 = vadd.f32 %v3780_v14, %v350_v15  ;;  %v3648_v14 = vld [vmem:[%s5249_s9 + $0x8] sm:$0xff]  ;;  %v3785_v15 = vld [vmem:[#allocation10] ss:$0 sm:$0xff] }
 0x158   :  { %vm354_vm3 = vcmp.ge.f32.partialorder %v351_v16, 0.0  ;;  %v355_v17 = vmul.f32 0.01, %v351_v16 }
 0x15a   :  { %v356_v18 = vsel %vm354_vm3, %v351_v16, %v355_v17 }
 0x15b   :  { %v364_v19 = vpack.c.bf16 %v356_v18, %v356_v18 }
 0x15d   :  { %v352_v20 = vpop.f32.mrf.mxu1  ;;  %3380 = vmatmul.msk.bf16.vlgmr.msra.gmra.mxu3 %vm337_vm2, %v364_v19 }
 0x15e   :  { %672 = vmatpush.bf16.msra.mxu3 %v3648_v14 }
 0x162   :  { %673 = vmatpush.bf16.msra.mxu3 %v3647_v32 }
 0x1e0   :  { %v392_v24 = vpop.f32.mrf.mxu3 }
 0x1e1   :  { %v393_v25 = vadd.f32 %v3781_v23, %v392_v24  ;;  %v595_v23 = vpop.xlane.xlu1 %594  ;;  %v596_v24 = vmul.f32 %v592_v22, %v4550_v53 }
 0x1e3   :  { %vm396_vm4 = vcmp.ge.f32.partialorder %v393_v25, 0.0  ;;  %v397_v26 = vmul.f32 0.01, %v393_v25 }
 0x1e5   :  { %v398_v27 = vsel %vm396_vm4, %v393_v25, %v397_v26  ;;  %v597_v25 = vmul.f32 %v595_v23, %v4550_v53  ;;  %v598_v26 = vadd.f32 1e-05, %v596_v24 }
 0x1e6   :  { %v406_v28 = vpack.c.bf16 %v398_v27, %v398_v27 }
 0x1e7   :  { %v599_v27 = vadd.f32 1e-05, %v597_v25  ;;  %3797 = vrsqrt.f32 %v598_v26  ;;  %vm606_vm9 = vweird.f32 %v598_v26 }
 0x1e8   :  { %v394_v29 = vpop.f32.mrf.mxu3  ;;  %3389 = vmatmul.msk.bf16.vlgmr.msrb.gmra.mxu3 %vm337_vm2, %v406_v28 }
 0x1e9   :  { %3799 = vrsqrt.f32 %v599_v27  ;;  %vm616_vm11 = vweird.f32 %v599_v27 }
 0x1ed   :  { %v3798_v28 = vpop.eup %3797 }
 0x1ee   :  { %v601_v30 = vmul.f32 %v3798_v28, %v598_v26  ;;  %vm607_vm10 = vweird.f32 %v3798_v28 }
 0x1ef   :  { %v3800_v29 = vpop.eup %3799  ;;  %vm608_vm13 = vmor %vm606_vm9, %vm607_vm10 }
 0x1f0   :  { %v611_v31 = vmul.f32 %v3800_v29, %v599_v27  ;;  %v602_v33 = vmul.f32 %v3798_v28, %v601_v30  ;;  %vm617_vm12 = vweird.f32 %v3800_v29 }
 0x1f1   :  { %vm618_vm14 = vmor %vm616_vm11, %vm617_vm12 }
 0x1f2   :  { %v612_v34 = vmul.f32 %v3800_v29, %v611_v31  ;;  %v603_v35 = vmul.f32 0.5, %v602_v33 }
 0x26b   :  { %v434_v37 = vpop.f32.mrf.mxu3 }
 0x26c   :  { %v435_v38 = vadd.f32 %v3782_v36, %v434_v37  ;;  %v613_v36 = vmul.f32 0.5, %v612_v34  ;;  %v604_v37 = vsub.f32 1.5, %v603_v35 }
 0x26e   :  { %vm438_vm5 = vcmp.ge.f32.partialorder %v435_v38, 0.0  ;;  %v439_v39 = vmul.f32 0.01, %v435_v38 }
 0x270   :  { %v440_v40 = vsel %vm438_vm5, %v435_v38, %v439_v39  ;;  %v614_v38 = vsub.f32 1.5, %v613_v36  ;;  %v605_v39 = vmul.f32 %v3798_v28, %v604_v37 }
 0x271   :  { %v448_v41 = vpack.c.bf16 %v440_v40, %v440_v40 }
 0x272   :  { %v615_v40 = vmul.f32 %v3800_v29, %v614_v38 }
 0x273   :  { %v436_v42 = vpop.f32.mrf.mxu3  ;;  %3398 = vmatmul.msk.bf16.vlgmr.msrb.gmra.mxu0 %vm337_vm2, %v448_v41  ;;  %v609_v41 = vsel %vm608_vm13, %v3798_v28, %v605_v39 }
 0x274   :  { %v619_v42 = vsel %vm618_vm14, %v3800_v29, %v615_v40  ;;  %v620_v44 = vmul.f32 %v609_v41, %v4554_v56 }
 0x275   :  { %v621_v45 = vmul.f32 %v619_v42, %v4558_v59 }
 0x276   :  { %v623_v47 = vmul.f32 %v622_v46, %v620_v44 }
 0x277   :  { %v624_v48 = vmul.f32 %v622_v46, %v621_v45 }
 0x278   :  { %v626_v50 = vadd.f32 %v625_v49, %v623_v47 }
 0x279   :  { %v627_v51 = vadd.f32 %v625_v49, %v624_v48 }
 0x2f0   :  { %v476_v61 = vpop.f32.mrf.mxu0 }
 0x2f1   :  { %v477_v62 = vadd.f32 %v3783_v57, %v476_v61 }
 0x2f3   :  { %vm480_vm7 = vcmp.ge.f32.partialorder %v477_v62, 0.0  ;;  %v481_v0 = vmul.f32 0.01, %v477_v62 }
 0x2f5   :  { %v482_v1 = vsel %vm480_vm7, %v477_v62, %v481_v0 }
 0x2f6   :  { %v490_v3 = vpack.c.bf16 %v482_v1, %v482_v1 }
 0x2f8   :  { %v478_v4 = vpop.f32.mrf.mxu0  ;;  %3407 = vmatmul.msk.bf16.vlgmr.msrb.gmra.mxu1 %vm337_vm2, %v490_v3 }
 0x375   :  { %v518_v8 = vpop.f32.mrf.mxu1 }
 0x376   :  { %v519_v9 = vadd.f32 %v3784_v7, %v518_v8 }
 0x378   :  { %vm522_vm8 = vcmp.ge.f32.partialorder %v519_v9, 0.0  ;;  %v523_v10 = vmul.f32 0.01, %v519_v9 }
 0x37a   :  { %v524_v11 = vsel %vm522_vm8, %v519_v9, %v523_v10 }
 0x37b   :  { %v4571_v12 = vpack.c.bf16 %v524_v11, %v524_v11 }
 0x37d   :  { %v520_v13 = vpop.f32.mrf.mxu1  ;;  %3416 = vmatmul.msk.bf16.vlgmr.msra.gmra.mxu2 %vm337_vm2, %v4571_v12 }
 0x400   :  { %v561_v16 = vpop.f32.mrf.mxu2 }
 0x401   :  { %v562_v17 = vadd.f32 %v3785_v15, %v561_v16 }
 0x403   :  { %v4578_v18 = vperm.slane %v562_v17, 0  ;;  %v566_v19 = vrot.slane %v562_v17, 1 }
 0x405   :  { %632 = vrot.lane.b32.xlu2 %v4578_v18, %s4346_s26  ;;  %v4582_v21 = vperm.slane %v566_v19, 0  ;;  %v628_v52 = vmul.f32 %v626_v50, %v4578_v18  ;;  %v629_v54 = vmul.f32 %v627_v51, %v4578_v18 }
 0x407   :  { %v630_v56 = vmul.f32 %v626_v50, %v4582_v21  ;;  %v631_v59 = vmul.f32 %v627_v51, %v4582_v21 }
 0x408   :  { %v563_v20 = vpop.f32.mrf.mxu2 }
 0x40d   :  { %634 = vrot.lane.b32.xlu2 %v4582_v21, %s4346_s26 }
 0x45f   :  { %v633_v55 = vpop.permute.xlu2 %632 }
 0x460   :  { %v638_v57 = vadd.f32 %v633_v55, %v628_v52  ;;  %v639_v58 = vadd.f32 %v633_v55, %v629_v54 }
 0x462   :  { %v646_v60 = vpack.c.bf16 %v639_v58, %v638_v57 }
 0x464   :  { %3425 = vmatmul.msk.bf16.vlgmr.msra.gmra.mxu3 %vm337_vm2, %v646_v60 }
 0x467   :  { %v635_v61 = vpop.permute.xlu2 %634 }
 0x468   :  { %v640_v62 = vadd.f32 %v635_v61, %v630_v56  ;;  %v641_v63 = vadd.f32 %v635_v61, %v631_v59 }
 0x46a   :  { %v647_v0 = vpack.c.bf16 %v641_v63, %v640_v62 }
 0x474   :  { %3426 = vmatmul.msk.bf16.gmra.mxu3 %vm337_vm2, %v647_v0 }
 0x4e7   :  { %v4599_v1 = vpop.f32.mrf.mxu3 }
 0x4e8   :  { %687 = vrot.lane.b32.xlu1 %v4599_v1, %s4346_s26 }
 0x4ef   :  { %v4603_v2 = vpop.f32.mrf.mxu3 }
 0x4f0   :  { %879 = vrot.lane.b32.xlu1 %v4603_v2, %s4347_s25  ;;  %689 = vrot.lane.b32.xlu0 %v4603_v2, %s4346_s26  ;;  %v4611_v3 = vpack.i.bf16 %v4599_v1, %v4603_v2 }
 0x4f7   :  { %v4613_v4 = vpop.f32.mrf.mxu3 }
 0x4f8   :  { %3700 = vrot.lane.b32.xlu1 %v4611_v3, %s5275_s3  ;;  %881 = vrot.lane.b32.xlu0 %v4599_v1, %s4348_s11 }
 0x4ff   :  { %v4619_v5 = vpop.f32.mrf.mxu3 }
 0x500   :  { %727 = vrot.lane.b32.xlu2 %v4619_v5, %s4346_s26  ;;  %v4685_v57 = vpack.i.bf16 %v4613_v4, %v4619_v5 }
 0x508   :  { %725 = vrot.lane.b32.xlu2 %v4613_v4, %s4346_s26 }
 0x510   :  { %883 = vrot.lane.b32.xlu2 %v4603_v2, %s4348_s11 }
 0x518   :  { %877 = vrot.lane.b32.xlu2 %v4599_v1, %s4347_s25 }
 0x55a   :  { %v688_v6 = vpop.permute.xlu1 %687  ;;  %v728_v7 = vpop.permute.xlu2 %727 }
 0x55b   :  { %3431 = vmatpush.xpose.msk.msra.mxu1 %vm691_vm15, %v728_v7 }
 0x562   :  { %v880_v8 = vpop.permute.xlu1 %879  ;;  %v690_v9 = vpop.permute.xlu0 %689 }
 0x563   :  { %v726_v10 = vpop.permute.xlu2 %725  ;;  %3427 = vmatpush.xpose.msk.msra.mxu0 %vm691_vm15, %v690_v9 }
 0x564   :  { %3432 = vmatpush.xpose.msk.msra.mxu1 %vm691_vm15, %v726_v10 }
 0x567   :  { %3433 = vmatmul.msk.f32.vlgmr.msra.gmra.mxu1 %vm691_vm15, %v4613_v4  ;;  %3428 = vmatpush.xpose.msk.msra.mxu0 %vm691_vm15, %v688_v6 }
 0x56a   :  { %v3701_v11 = vpop.permute.xlu1 %3700  ;;  %3429 = vmatmul.msk.f32.vlgmr.msra.gmra.mxu0 %vm691_vm15, %v4599_v1  ;;  %v882_v16 = vpop.permute.xlu0 %881 }
 0x56b   :  { %v884_v13 = vpop.permute.xlu2 %883  ;;  %v3702_v14 = vunpack.i.l.bf16 %v3701_v11  ;;  %v3703_v15 = vunpack.i.h.bf16 %v3701_v11 }
 0x56c   :  { %3439 = vmatpush.xpose.msk.msrb.mxu1 %vm691_vm15, %v884_v13 }
 0x56d   :  { %830 = vmatpush.msrb.mxu2 %v3702_v14 }
 0x56f   :  { %3434 = vmatmul.msk.f32.gmra.mxu1 %vm691_vm15, %v4619_v5  ;;  %831 = vmatpush.msrb.mxu2 %v3703_v15 }
 0x570   :  { %3440 = vmatpush.xpose.msk.msrb.mxu1 %vm691_vm15, %v882_v16 }
 0x572   :  { %3430 = vmatmul.msk.f32.gmra.mxu0 %vm691_vm15, %v4603_v2 }
 0x573   :  { %v878_v17 = vpop.permute.xlu2 %877 }
 0x577   :  { %3441 = vmatmul.msk.f32.vlgmr.msrb.gmra.mxu1 %vm691_vm15, %v878_v17 }
 0x57f   :  { %3442 = vmatmul.msk.f32.gmra.mxu1 %vm691_vm15, %v880_v8  ;;  %v876_v8 = vld [vmem:[#allocation13] sm:$0xf] }
 0x580   :  { %v1109_v9 = vsel %vm1079_vm1, %v876_v8, 0 }
 0x5e4   :  { %v4645_v19 = vpop.f32.mrf.mxu1 }
 0x5e5   :  { %v766_v52 = vsel %vm296_vm0, %v4645_v19, -inf }
 0x5e7   :  { %v717_v20 = vpop.f32.mrf.mxu0 }
 0x5e8   :  { %v760_v22 = vsel %vm296_vm0, %v717_v20, -inf }
 0x5e9   :  { %761 = vmax.xlane.f32.xlu0 %v760_v22 }
 0x5ec   :  { %v4648_v23 = vpop.f32.mrf.mxu1 }
 0x5ed   :  { %v769_v33 = vsel %vm296_vm0, %v4648_v23, -inf }
 0x5ef   :  { %v720_v24 = vpop.f32.mrf.mxu0 }
 0x5f0   :  { %v763_v25 = vsel %vm296_vm0, %v720_v24, -inf }
 0x5f1   :  { %764 = vmax.xlane.f32.xlu2 %v763_v25 }
 0x5f4   :  { %v910_v26 = vpop.f32.mrf.mxu1 }
 0x5f5   :  { %v955_v27 = vsel %vm296_vm0, %v910_v26, -inf }
 0x5f6   :  { %956 = vmax.xlane.f32.xlu1 %v955_v27 }
 0x5fc   :  { %v913_v28 = vpop.f32.mrf.mxu1 }
 0x5fd   :  { %v958_v29 = vsel %vm296_vm0, %v913_v28, -inf }
 0x5fe   :  { %959 = vmax.xlane.f32.xlu0 %v958_v29 }
 0x60f   :  { %916 = vrot.lane.b32.xlu1 %v4613_v4, %s4347_s25 }
 0x612   :  { %920 = vrot.lane.b32.xlu0 %v4613_v4, %s4348_s11 }
 0x617   :  { %918 = vrot.lane.b32.xlu1 %v4619_v5, %s4347_s25 }
 0x61f   :  { %1136 = vrot.lane.b32.xlu1 %v4603_v2, %s4349_s28 }
 0x627   :  { %1134 = vrot.lane.b32.xlu1 %v4599_v1, %s4349_s28 }
 0x62f   :  { %1130 = vrot.lane.b32.xlu1 %v4599_v1, %s4350_s0 }
 0x637   :  { %1132 = vrot.lane.b32.xlu1 %v4603_v2, %s4350_s0 }
 0x65c   :  { %v762_v30 = vpop.xlane.xlu0 %761 }
 0x65d   :  { %v772_v31 = vsub.f32 %v717_v20, %v762_v30 }
 0x65f   :  { %v776_v32 = vmul.f32 1.442695, %v772_v31 }
 0x661   :  { %3801 = vpow2.f32 %v776_v32  ;;  %770 = vmax.xlane.f32.xlu1 %v769_v33 }
 0x664   :  { %v765_v34 = vpop.xlane.xlu2 %764 }
 0x665   :  { %v773_v35 = vsub.f32 %v720_v24, %v765_v34 }
 0x667   :  { %v3802_v36 = vpop.eup %3801  ;;  %v778_v37 = vmul.f32 1.442695, %v773_v35 }
 0x668   :  { %v784_v38 = vsel %vm296_vm0, %v3802_v36, 0.0 }
 0x669   :  { %3803 = vpow2.f32 %v778_v37  ;;  %785 = vadd.xlane.f32.xlu2 %v784_v38  ;;  %v957_v41 = vpop.xlane.xlu1 %956 }
 0x66a   :  { %v967_v42 = vsub.f32 %v910_v26, %v957_v41 }
 0x66c   :  { %v971_v44 = vmul.f32 1.442695, %v967_v42 }
 0x66e   :  { %3805 = vpow2.f32 %v971_v44 }
 0x66f   :  { %v3804_v39 = vpop.eup %3803 }
 0x670   :  { %v787_v40 = vsel %vm296_vm0, %v3804_v39, 0.0 }
 0x671   :  { %788 = vadd.xlane.f32.xlu0 %v787_v40  ;;  %v960_v43 = vpop.xlane.xlu0 %959 }
 0x672   :  { %v968_v45 = vsub.f32 %v913_v28, %v960_v43 }
 0x674   :  { %v973_v46 = vmul.f32 1.442695, %v968_v45  ;;  %v3806_v47 = vpop.eup %3805  ;;  %v1072_v45 = vld [vmem:[#allocation13 + $0x4] sm:$0xf] }
 0x675   :  { %v979_v49 = vsel %vm296_vm0, %v3806_v47, 0.0 }
 0x676   :  { %3807 = vpow2.f32 %v973_v46  ;;  %v1081_v46 = vsel %vm1079_vm1, %v1072_v45, 0 }
 0x677   :  { %1090 = vmatpush.bf16.msra.mxu1 %v1081_v46 }
 0x67a   :  { %1175 = vrot.lane.b32.xlu1 %v4619_v5, %s4349_s28 }
 0x67c   :  { %v3808_v50 = vpop.eup %3807 }
 0x67d   :  { %v982_v51 = vsel %vm296_vm0, %v3808_v50, 0.0 }
 0x681   :  { %922 = vrot.lane.b32.xlu2 %v4619_v5, %s4348_s11  ;;  %v917_v48 = vpop.permute.xlu1 %916 }
 0x682   :  { %1364 = vrot.lane.b32.xlu1 %v4603_v2, %s4351_s23 }
 0x684   :  { %v921_v56 = vpop.permute.xlu0 %920 }
 0x685   :  { %3705 = vrot.lane.b32.xlu0 %v4611_v3, %s4352_s13 }
 0x689   :  { %v919_v54 = vpop.permute.xlu1 %918 }
 0x691   :  { %v1137_v55 = vpop.permute.xlu1 %1136 }
 0x699   :  { %v1135_v58 = vpop.permute.xlu1 %1134 }
 0x6a1   :  { %v1131_v60 = vpop.permute.xlu1 %1130 }
 0x6a9   :  { %v1133_v61 = vpop.permute.xlu1 %1132 }
 0x6aa   :  { %980 = vadd.xlane.f32.xlu2 %v979_v49 }
 0x6af   :  { %983 = vadd.xlane.f32.xlu0 %v982_v51 }
 0x6b2   :  { %767 = vmax.xlane.f32.xlu2 %v766_v52 }
 0x6c3   :  { %3710 = vrot.lane.b32.xlu0 %v4685_v57, %s5275_s3 }
 0x6d4   :  { %v771_v63 = vpop.xlane.xlu1 %770 }
 0x6d5   :  { %v775_v28 = vsub.f32 %v4648_v23, %v771_v63 }
 0x6d7   :  { %v782_v31 = vmul.f32 1.442695, %v775_v28 }
 0x6dc   :  { %v786_v59 = vpop.xlane.xlu2 %785 }
 0x6dd   :  { %3809 = vrcp.f32 %v786_v59 }
 0x6e3   :  { %v3810_v62 = vpop.eup %3809 }
 0x6e4   :  { %v789_v0 = vpop.xlane.xlu0 %788  ;;  %v923_v6 = vpop.permute.xlu2 %922  ;;  %v800_v7 = vmul.f32 %v3810_v62, %v3802_v36 }
 0x6e5   :  { %3811 = vrcp.f32 %v789_v0  ;;  %3443 = vmatpush.xpose.msk.msra.mxu2 %vm691_vm15, %v923_v6 }
 0x6e6   :  { %3435 = vmatmul.msk.f32.vlgmr.msrb.gmra.mxu2 %vm296_vm0, %v800_v7 }
 0x6e9   :  { %3444 = vmatpush.xpose.msk.msra.mxu2 %vm691_vm15, %v921_v56 }
 0x6eb   :  { %v3812_v10 = vpop.eup %3811 }
 0x6ec   :  { %v4693_v11 = vpop.permute.xlu1 %1175  ;;  %v801_v13 = vmul.f32 %v3812_v10, %v3804_v39 }
 0x6ed   :  { %1118 = vmatpush.bf16.msrb.mxu2 %v1109_v9 }
 0x6ee   :  { %3436 = vmatmul.msk.f32.gmra.mxu2 %vm296_vm0, %v801_v13 }
 0x6f4   :  { %v1365_v14 = vpop.permute.xlu1 %1364 }
 0x6f6   :  { %3445 = vmatmul.msk.f32.vlgmr.msra.gmra.mxu2 %vm691_vm15, %v917_v48 }
 0x6f7   :  { %3469 = vmatpush.xpose.msk.msra.mxu2 %vm691_vm15, %v1365_v14  ;;  %v3706_v15 = vpop.permute.xlu0 %3705 }
 0x6f8   :  { %v3707_v16 = vunpack.i.l.bf16 %v3706_v15  ;;  %v3708_v17 = vunpack.i.h.bf16 %v3706_v15 }
 0x6fa   :  { %1025 = vmatpush.msrb.mxu3 %v3707_v16 }
 0x6fc   :  { %1026 = vmatpush.msrb.mxu3 %v3708_v17 }
 0x6fe   :  { %3455 = vmatpush.xpose.msk.msra.mxu3 %vm691_vm15, %v1137_v55  ;;  %3446 = vmatmul.msk.f32.gmra.mxu2 %vm691_vm15, %v919_v54 }
 0x702   :  { %3456 = vmatpush.xpose.msk.msra.mxu3 %vm691_vm15, %v1135_v58 }
 0x71d   :  { %v981_v20 = vpop.xlane.xlu2 %980 }
 0x71e   :  { %3813 = vrcp.f32 %v981_v20 }
 0x722   :  { %v984_v22 = vpop.xlane.xlu0 %983 }
 0x723   :  { %3815 = vrcp.f32 %v984_v22 }
 0x724   :  { %v3814_v24 = vpop.eup %3813 }
 0x725   :  { %v995_v25 = vmul.f32 %v3814_v24, %v3806_v47  ;;  %v768_v26 = vpop.xlane.xlu2 %767 }
 0x726   :  { %v774_v27 = vsub.f32 %v4645_v19, %v768_v26 }
 0x727   :  { %3447 = vmatmul.msk.f32.vlgmr.msrb.gmra.mxu3 %vm296_vm0, %v995_v25 }
 0x728   :  { %v780_v29 = vmul.f32 1.442695, %v774_v27 }
 0x729   :  { %v3816_v30 = vpop.eup %3815 }
 0x72a   :  { %3817 = vpow2.f32 %v780_v29  ;;  %v996_v32 = vmul.f32 %v3816_v30, %v3808_v50 }
 0x72b   :  { %3819 = vpow2.f32 %v782_v31 }
 0x72f   :  { %3448 = vmatmul.msk.f32.gmra.mxu3 %vm296_vm0, %v996_v32 }
 0x730   :  { %v3818_v33 = vpop.eup %3817 }
 0x731   :  { %v790_v34 = vsel %vm296_vm0, %v3818_v33, 0.0  ;;  %v3820_v36 = vpop.eup %3819 }
 0x732   :  { %791 = vadd.xlane.f32.xlu2 %v790_v34  ;;  %v793_v23 = vsel %vm296_vm0, %v3820_v36, 0.0 }
 0x735   :  { %v3711_v35 = vpop.permute.xlu0 %3710 }
 0x736   :  { %v3712_v37 = vunpack.i.l.bf16 %v3711_v35  ;;  %v3713_v19 = vunpack.i.h.bf16 %v3711_v35 }
 0x737   :  { %3457 = vmatmul.msk.f32.vlgmr.msra.gmra.mxu3 %vm691_vm15, %v1131_v60 }
 0x738   :  { %865 = vmatpush.msrb.mxu0 %v3712_v37 }
 0x73a   :  { %866 = vmatpush.msrb.mxu0 %v3713_v19  ;;  %794 = vadd.xlane.f32.xlu2 %v793_v23 }
 0x73f   :  { %3458 = vmatmul.msk.f32.gmra.mxu3 %vm691_vm15, %v1133_v61 }
 0x769   :  { %v833_v38 = vpop.f32.mrf.mxu2 }
 0x771   :  { %v836_v39 = vpop.f32.mrf.mxu2 }
 0x772   :  { %v874_v40 = vpack.c.bf16 %v836_v39, %v833_v38 }
 0x774   :  { %3453 = vmatmul.msk.bf16.vlgmr.msrb.gmra.mxu2 %vm691_vm15, %v874_v40 }
 0x779   :  { %v949_v41 = vpop.f32.mrf.mxu2 }
 0x77a   :  { %v961_v42 = vsel %vm296_vm0, %v949_v41, -inf }
 0x77b   :  { %962 = vmax.xlane.f32.xlu2 %v961_v42 }
 0x781   :  { %v952_v43 = vpop.f32.mrf.mxu2 }
 0x782   :  { %v964_v44 = vsel %vm296_vm0, %v952_v43, -inf }
 0x783   :  { %965 = vmax.xlane.f32.xlu0 %v964_v44 }
 0x793   :  { %3715 = vrot.lane.b32.xlu2 %v4685_v57, %s4352_s13 }
 0x797   :  { %1173 = vrot.lane.b32.xlu0 %v4613_v4, %s4349_s28 }
 0x79f   :  { %3720 = vrot.lane.b32.xlu0 %v4611_v3, %s4353_s12 }
 0x7a5   :  { %v792_v47 = vpop.xlane.xlu2 %791 }
 0x7a6   :  { %3821 = vrcp.f32 %v792_v47 }
 0x7a7   :  { %1171 = vrot.lane.b32.xlu0 %v4619_v5, %s4350_s0 }
 0x7aa   :  { %v1028_v48 = vpop.f32.mrf.mxu3 }
 0x7ac   :  { %v3822_v49 = vpop.eup %3821 }
 0x7ad   :  { %v802_v50 = vmul.f32 %v3822_v49, %v3818_v33  ;;  %v795_v51 = vpop.xlane.xlu2 %794 }
 0x7ae   :  { %3823 = vrcp.f32 %v795_v51 }
 0x7af   :  { %1358 = vrot.lane.b32.xlu0 %v4599_v1, %s4354_s14  ;;  %3437 = vmatmul.msk.f32.vlgmr.msrb.gmra.mxu0 %vm296_vm0, %v802_v50 }
 0x7b2   :  { %v1031_v52 = vpop.f32.mrf.mxu3 }
 0x7b3   :  { %v1069_v54 = vpack.c.bf16 %v1031_v52, %v1028_v48 }
 0x7b4   :  { %v3824_v55 = vpop.eup %3823 }
 0x7b5   :  { %3451 = vmatmul.msk.bf16.vlgmr.msra.gmra.mxu1 %vm691_vm15, %v1069_v54  ;;  %v803_v58 = vmul.f32 %v3824_v55, %v3820_v36 }
 0x7b7   :  { %1360 = vrot.lane.b32.xlu0 %v4603_v2, %s4354_s14  ;;  %3438 = vmatmul.msk.f32.gmra.mxu0 %vm296_vm0, %v803_v58 }
 0x7ba   :  { %v1163_v60 = vpop.f32.mrf.mxu3 }
 0x7bb   :  { %v1208_v61 = vsel %vm296_vm0, %v1163_v60, -inf }
 0x7bc   :  { %1209 = vmax.xlane.f32.xlu2 %v1208_v61 }
 0x7bf   :  { %1401 = vrot.lane.b32.xlu0 %v4613_v4, %s4351_s23 }
 0x7c2   :  { %v1166_v56 = vpop.f32.mrf.mxu3 }
 0x7c3   :  { %v1211_v59 = vsel %vm296_vm0, %v1166_v56, -inf }
 0x7c4   :  { %1212 = vmax.xlane.f32.xlu2 %v1211_v59 }
 0x7c7   :  { %1397 = vrot.lane.b32.xlu0 %v4613_v4, %s4354_s14 }
 0x7cf   :  { %1399 = vrot.lane.b32.xlu0 %v4619_v5, %s4354_s14 }
 0x7dc   :  { %1169 = vrot.lane.b32.xlu2 %v4613_v4, %s4350_s0 }
 0x7ee   :  { %v963_v2 = vpop.xlane.xlu2 %962 }
 0x7ef   :  { %v969_v62 = vsub.f32 %v949_v41, %v963_v2 }
 0x7f1   :  { %v975_v63 = vmul.f32 1.442695, %v969_v62 }
 0x7f3   :  { %3825 = vpow2.f32 %v975_v63 }
 0x7f6   :  { %v966_v0 = vpop.xlane.xlu0 %965  ;;  %v3716_v6 = vpop.permute.xlu2 %3715 }
 0x7f7   :  { %v970_v7 = vsub.f32 %v952_v43, %v966_v0  ;;  %v3717_v8 = vunpack.i.l.bf16 %v3716_v6  ;;  %v3718_v13 = vunpack.i.h.bf16 %v3716_v6  ;;  %v4763_v54 = vpop.f32.mrf.mxu2 }
 0x7f9   :  { %v3826_v9 = vpop.eup %3825  ;;  %v977_v10 = vmul.f32 1.442695, %v970_v7  ;;  %1060 = vmatpush.msra.mxu0 %v3717_v8 }
 0x7fa   :  { %v985_v14 = vsel %vm296_vm0, %v3826_v9, 0.0 }
 0x7fb   :  { %3827 = vpow2.f32 %v977_v10  ;;  %986 = vadd.xlane.f32.xlu1 %v985_v14  ;;  %1061 = vmatpush.msra.mxu0 %v3718_v13  ;;  %v1325_v10 = vld [vmem:[#allocation13 + $0x8] sm:$0xf] }
 0x7fc   :  { %v1333_v13 = vsel %vm1079_vm1, %v1325_v10, 0 }
 0x7fd   :  { %3459 = vmatpush.xpose.msk.msrb.mxu0 %vm691_vm15, %v4693_v11  ;;  %1342 = vmatpush.bf16.msrb.mxu1 %v1333_v13 }
 0x7ff   :  { %v4765_v58 = vpop.f32.mrf.mxu2 }
 0x801   :  { %v3828_v4 = vpop.eup %3827 }
 0x802   :  { %v988_v15 = vsel %vm296_vm0, %v3828_v4, 0.0 }
 0x803   :  { %989 = vadd.xlane.f32.xlu1 %v988_v15 }
 0x809   :  { %v1174_v16 = vpop.permute.xlu0 %1173 }
 0x80a   :  { %3460 = vmatpush.xpose.msk.msrb.mxu0 %vm691_vm15, %v1174_v16 }
 0x811   :  { %v3721_v17 = vpop.permute.xlu0 %3720 }
 0x812   :  { %v3722_v20 = vunpack.i.l.bf16 %v3721_v17  ;;  %v3723_v22 = vunpack.i.h.bf16 %v3721_v17 }
 0x814   :  { %1278 = vmatpush.msrb.mxu3 %v3722_v20 }
 0x816   :  { %1279 = vmatpush.msrb.mxu3 %v3723_v22 }
 0x819   :  { %v1172_v39 = vpop.permute.xlu0 %1171 }
 0x81c   :  { %1362 = vrot.lane.b32.xlu1 %v4599_v1, %s4351_s23 }
 0x821   :  { %v1359_v42 = vpop.permute.xlu0 %1358 }
 0x82c   :  { %v868_v24 = vpop.f32.mrf.mxu0 }
 0x82f   :  { %v1210_v25 = vpop.xlane.xlu2 %1209 }
 0x830   :  { %v1220_v26 = vsub.f32 %v1163_v60, %v1210_v25 }
 0x832   :  { %v1224_v27 = vmul.f32 1.442695, %v1220_v26 }
 0x834   :  { %3829 = vpow2.f32 %v1224_v27  ;;  %v871_v11 = vpop.f32.mrf.mxu0 }
 0x835   :  { %v875_v28 = vpack.c.bf16 %v871_v11, %v868_v24 }
 0x837   :  { %3454 = vmatmul.msk.bf16.gmra.mxu2 %vm691_vm15, %v875_v28  ;;  %v1213_v29 = vpop.xlane.xlu2 %1212 }
 0x838   :  { %v1221_v30 = vsub.f32 %v1166_v56, %v1213_v29 }
 0x83a   :  { %v3830_v31 = vpop.eup %3829  ;;  %v1226_v32 = vmul.f32 1.442695, %v1221_v30 }
 0x83b   :  { %v1232_v33 = vsel %vm296_vm0, %v3830_v31, 0.0 }
 0x83c   :  { %3831 = vpow2.f32 %v1226_v32  ;;  %1233 = vadd.xlane.f32.xlu2 %v1232_v33 }
 0x83f   :  { %v1170_v40 = vpop.permute.xlu2 %1169 }
 0x842   :  { %v3832_v34 = vpop.eup %3831 }
 0x843   :  { %v1235_v1 = vsel %vm296_vm0, %v3832_v34, 0.0 }
 0x846   :  { %1236 = vadd.xlane.f32.xlu1 %v1235_v1 }
 0x854   :  { %1403 = vrot.lane.b32.xlu2 %v4619_v5, %s4351_s23  ;;  %v1361_v5 = vpop.permute.xlu0 %1360 }
 0x85c   :  { %v1402_v48 = vpop.permute.xlu0 %1401 }
 0x864   :  { %v1398_v51 = vpop.permute.xlu0 %1397 }
 0x86c   :  { %v1400_v52 = vpop.permute.xlu0 %1399 }
 0x86e   :  { %v987_v35 = vpop.xlane.xlu1 %986 }
 0x86f   :  { %3833 = vrcp.f32 %v987_v35 }
 0x875   :  { %v3834_v36 = vpop.eup %3833 }
 0x876   :  { %v997_v37 = vmul.f32 %v3834_v36, %v3826_v9  ;;  %v990_v19 = vpop.xlane.xlu1 %989 }
 0x877   :  { %3835 = vrcp.f32 %v990_v19 }
 0x878   :  { %3449 = vmatmul.msk.f32.vlgmr.msra.gmra.mxu0 %vm296_vm0, %v997_v37 }
 0x87d   :  { %v3836_v23 = vpop.eup %3835 }
 0x87e   :  { %v998_v38 = vmul.f32 %v3836_v23, %v3828_v4 }
 0x880   :  { %3450 = vmatmul.msk.f32.gmra.mxu0 %vm296_vm0, %v998_v38 }
 0x888   :  { %3461 = vmatmul.msk.f32.vlgmr.msrb.gmra.mxu0 %vm691_vm15, %v1170_v40 }
 0x88e   :  { %v1363_v41 = vpop.permute.xlu1 %1362 }
 0x88f   :  { %3470 = vmatpush.xpose.msk.msra.mxu2 %vm691_vm15, %v1363_v41 }
 0x890   :  { %3462 = vmatmul.msk.f32.gmra.mxu0 %vm691_vm15, %v1172_v39 }
 0x892   :  { %3471 = vmatmul.msk.f32.vlgmr.msra.gmra.mxu2 %vm691_vm15, %v1359_v42 }
 0x89a   :  { %3472 = vmatmul.msk.f32.gmra.mxu2 %vm691_vm15, %v1361_v5 }
 0x8af   :  { %v1234_v43 = vpop.xlane.xlu2 %1233 }
 0x8b0   :  { %3837 = vrcp.f32 %v1234_v43 }
 0x8b6   :  { %v3838_v44 = vpop.eup %3837 }
 0x8b7   :  { %v1248_v45 = vmul.f32 %v3838_v44, %v3830_v31  ;;  %v1404_v46 = vpop.permute.xlu2 %1403 }
 0x8b8   :  { %3473 = vmatpush.xpose.msk.msra.mxu3 %vm691_vm15, %v1404_v46 }
 0x8b9   :  { %v1237_v47 = vpop.xlane.xlu1 %1236  ;;  %3463 = vmatmul.msk.f32.vlgmr.msrb.gmra.mxu3 %vm296_vm0, %v1248_v45 }
 0x8ba   :  { %3839 = vrcp.f32 %v1237_v47  ;;  %v4768_v56 = vpop.f32.mrf.mxu2 }
 0x8bc   :  { %3474 = vmatpush.xpose.msk.msra.mxu3 %vm691_vm15, %v1402_v48 }
 0x8c0   :  { %v3840_v49 = vpop.eup %3839 }
 0x8c1   :  { %v1249_v50 = vmul.f32 %v3840_v49, %v3832_v34 }
 0x8c2   :  { %v4771_v62 = vpop.f32.mrf.mxu2 }
 0x8c3   :  { %3464 = vmatmul.msk.f32.gmra.mxu3 %vm296_vm0, %v1249_v50 }
 0x8cb   :  { %3475 = vmatmul.msk.f32.vlgmr.msra.gmra.mxu3 %vm691_vm15, %v1398_v51 }
 0x8d3   :  { %3476 = vmatmul.msk.f32.gmra.mxu3 %vm691_vm15, %v1400_v52 }
 0x8f5   :  { %v1063_v55 = vpop.f32.mrf.mxu0 }
 0x8fd   :  { %v1066_v60 = vpop.f32.mrf.mxu0 }
 0x8fe   :  { %v1070_v61 = vpack.c.bf16 %v1066_v60, %v1063_v55 }
 0x900   :  { %3452 = vmatmul.msk.bf16.gmra.mxu1 %vm691_vm15, %v1070_v61 }
 0x905   :  { %v1202_v59 = vpop.f32.mrf.mxu0 }
 0x906   :  { %v1214_v2 = vsel %vm296_vm0, %v1202_v59, -inf }
 0x907   :  { %1215 = vmax.xlane.f32.xlu1 %v1214_v2 }
 0x90d   :  { %v1205_v63 = vpop.f32.mrf.mxu0 }
 0x90e   :  { %v1217_v0 = vsel %vm296_vm0, %v1205_v63, -inf }
 0x90f   :  { %1218 = vmax.xlane.f32.xlu2 %v1217_v0 }
 0x915   :  { %v1391_v6 = vpop.f32.mrf.mxu2 }
 0x916   :  { %v1436_v7 = vsel %vm296_vm0, %v1391_v6, -inf }
 0x917   :  { %1437 = vmax.xlane.f32.xlu0 %v1436_v7 }
 0x91d   :  { %v1394_v8 = vpop.f32.mrf.mxu2 }
 0x91e   :  { %v1439_v9 = vsel %vm296_vm0, %v1394_v8, -inf }
 0x91f   :  { %1440 = vmax.xlane.f32.xlu1 %v1439_v9 }
 0x93c   :  { %v1281_v14 = vpop.f32.mrf.mxu3 }
 0x946   :  { %v1284_v4 = vpop.f32.mrf.mxu3 }
 0x947   :  { %v1322_v15 = vpack.c.bf16 %v1284_v4, %v1281_v14 }
 0x949   :  { %3467 = vmatmul.msk.bf16.vlgmr.msrb.gmra.mxu1 %vm691_vm15, %v1322_v15  ;;  %v3654_v15 = vld [vmem:[%s5246_s6 + $0x18] sm:$0xff] }
 0x94e   :  { %v1430_v16 = vpop.f32.mrf.mxu3 }
 0x94f   :  { %v1442_v17 = vsel %vm296_vm0, %v1430_v16, -inf }
 0x950   :  { %1443 = vmax.xlane.f32.xlu1 %v1442_v17 }
 0x956   :  { %v1433_v20 = vpop.f32.mrf.mxu3 }
 0x957   :  { %v1445_v22 = vsel %vm296_vm0, %v1433_v20, -inf }
 0x958   :  { %1446 = vmax.xlane.f32.xlu1 %v1445_v22 }
 0x971   :  { %3725 = vrot.lane.b32.xlu1 %v4685_v57, %s4353_s12 }
 0x97a   :  { %v1216_v27 = vpop.xlane.xlu1 %1215 }
 0x97b   :  { %v1222_v11 = vsub.f32 %v1202_v59, %v1216_v27  ;;  %v1553_v27 = vld [vmem:[#allocation13 + $0xc] sm:$0xf] }
 0x97d   :  { %v1228_v31 = vmul.f32 1.442695, %v1222_v11  ;;  %v1561_v11 = vsel %vm1079_vm1, %v1553_v27, 0 }
 0x97e   :  { %1570 = vmatpush.bf16.msrb.mxu3 %v1561_v11 }
 0x982   :  { %v1219_v24 = vpop.xlane.xlu2 %1218 }
 0x983   :  { %v1223_v25 = vsub.f32 %v1205_v63, %v1219_v24 }
 0x985   :  { %v1230_v26 = vmul.f32 1.442695, %v1223_v25 }
 0x987   :  { %3841 = vpow2.f32 %v1230_v26 }
 0x98a   :  { %v1438_v28 = vpop.xlane.xlu0 %1437 }
 0x98b   :  { %v1448_v29 = vsub.f32 %v1391_v6, %v1438_v28 }
 0x98d   :  { %v3842_v30 = vpop.eup %3841  ;;  %v1452_v32 = vmul.f32 1.442695, %v1448_v29 }
 0x98e   :  { %v1241_v33 = vsel %vm296_vm0, %v3842_v30, 0.0 }
 0x98f   :  { %3843 = vpow2.f32 %v1452_v32  ;;  %1242 = vadd.xlane.f32.xlu2 %v1241_v33 }
 0x990   :  { %3845 = vpow2.f32 %v1228_v31 }
 0x992   :  { %v1441_v34 = vpop.xlane.xlu1 %1440 }
 0x993   :  { %v1449_v1 = vsub.f32 %v1394_v8, %v1441_v34 }
 0x995   :  { %v3844_v35 = vpop.eup %3843  ;;  %v1454_v36 = vmul.f32 1.442695, %v1449_v1 }
 0x996   :  { %v1460_v37 = vsel %vm296_vm0, %v3844_v35, 0.0  ;;  %v3846_v19 = vpop.eup %3845 }
 0x997   :  { %3847 = vpow2.f32 %v1454_v36  ;;  %1461 = vadd.xlane.f32.xlu0 %v1460_v37  ;;  %v1238_v23 = vsel %vm296_vm0, %v3846_v19, 0.0  ;;  %v1092_v37 = vpop.f32.mrf.mxu1 }
 0x99b   :  { %1239 = vadd.xlane.f32.xlu1 %v1238_v23 }
 0x99d   :  { %v3848_v38 = vpop.eup %3847 }
 0x99e   :  { %v1463_v39 = vsel %vm296_vm0, %v3848_v38, 0.0 }
 0x99f   :  { %1464 = vadd.xlane.f32.xlu0 %v1463_v39 }
 0x9a7   :  { %3730 = vrot.lane.b32.xlu2 %v4611_v3, %s4355_s30 }
 0x9b4   :  { %3735 = vrot.lane.b32.xlu1 %v4685_v57, %s4355_s30 }
 0x9c3   :  { %v1444_v40 = vpop.xlane.xlu1 %1443 }
 0x9c4   :  { %v1450_v41 = vsub.f32 %v1430_v16, %v1444_v40  ;;  %v3653_v16 = vld [vmem:[%s5246_s6 + $0x10] sm:$0xff]  ;;  %v1121_v40 = vadd.f32 %v4763_v54, %v1092_v37  ;;  %s4356_s6 = smov 32  }
 0x9c6   :  { %v1456_v42 = vmul.f32 1.442695, %v1450_v41 }
 0x9c8   :  { %3849 = vpow2.f32 %v1456_v42 }
 0x9cb   :  { %v1447_v5 = vpop.xlane.xlu1 %1446 }
 0x9cc   :  { %v1451_v43 = vsub.f32 %v1433_v20, %v1447_v5 }
 0x9ce   :  { %v3850_v44 = vpop.eup %3849  ;;  %v1458_v45 = vmul.f32 1.442695, %v1451_v43  ;;  %v3787_v43 = vld [vmem:[#allocation15] ss:$0 sm:$0xff] }
 0x9cf   :  { %v1466_v46 = vsel %vm296_vm0, %v3850_v44, 0.0 }
 0x9d0   :  { %3851 = vpow2.f32 %v1458_v45  ;;  %1467 = vadd.xlane.f32.xlu0 %v1466_v46 }
 0x9d6   :  { %v3852_v47 = vpop.eup %3851 }
 0x9d7   :  { %v1469_v48 = vsel %vm296_vm0, %v3852_v47, 0.0 }
 0x9d8   :  { %1470 = vadd.xlane.f32.xlu0 %v1469_v48 }
 0x9e3   :  { %v3726_v3 = vpop.permute.xlu1 %3725 }
 0x9e4   :  { %v3727_v49 = vunpack.i.l.bf16 %v3726_v3  ;;  %v3728_v50 = vunpack.i.h.bf16 %v3726_v3 }
 0x9e6   :  { %1313 = vmatpush.msra.mxu0 %v3727_v49 }
 0x9e8   :  { %1314 = vmatpush.msra.mxu0 %v3728_v50 }
 0xa02   :  { %v1243_v57 = vpop.xlane.xlu2 %1242 }
 0xa0a   :  { %v3731_v51 = vpop.permute.xlu2 %3730  ;;  %v1462_v2 = vpop.xlane.xlu0 %1461 }
 0xa0b   :  { %v3732_v52 = vunpack.i.l.bf16 %v3731_v51  ;;  %v3733_v55 = vunpack.i.h.bf16 %v3731_v51  ;;  %v3970_v51 = vld [vmem:[#allocation2 + $0x8] sm:$0xff] }
 0xa0d   :  { %1506 = vmatpush.msrb.mxu0 %v3732_v52 }
 0xa0e   :  { %v1240_v60 = vpop.xlane.xlu1 %1239 }
 0xa0f   :  { %3853 = vrcp.f32 %v1240_v60  ;;  %1507 = vmatpush.msrb.mxu0 %v3733_v55 }
 0xa10   :  { %3855 = vrcp.f32 %v1243_v57 }
 0xa11   :  { %3857 = vrcp.f32 %v1462_v2 }
 0xa12   :  { %v1465_v6 = vpop.xlane.xlu0 %1464 }
 0xa13   :  { %3859 = vrcp.f32 %v1465_v6 }
 0xa15   :  { %v3854_v61 = vpop.eup %3853 }
 0xa16   :  { %v1250_v59 = vmul.f32 %v3854_v61, %v3846_v19  ;;  %v3856_v63 = vpop.eup %3855  ;;  %v1094_v19 = vpop.f32.mrf.mxu1 }
 0xa17   :  { %v1251_v0 = vmul.f32 %v3856_v63, %v3842_v30  ;;  %v3858_v7 = vpop.eup %3857 }
 0xa18   :  { %3465 = vmatmul.msk.f32.vlgmr.msra.gmra.mxu0 %vm296_vm0, %v1250_v59  ;;  %v1476_v8 = vmul.f32 %v3858_v7, %v3844_v35 }
 0xa19   :  { %v3860_v14 = vpop.eup %3859 }
 0xa1a   :  { %v1477_v4 = vmul.f32 %v3860_v14, %v3848_v38 }
 0xa1e   :  { %v1097_v23 = vpop.f32.mrf.mxu1 }
 0xa20   :  { %3466 = vmatmul.msk.f32.gmra.mxu0 %vm296_vm0, %v1251_v0 }
 0xa26   :  { %v3736_v9 = vpop.permute.xlu1 %3735  ;;  %v1099_v38 = vpop.f32.mrf.mxu1 }
 0xa27   :  { %v3737_v10 = vunpack.i.l.bf16 %v3736_v9  ;;  %v3738_v13 = vunpack.i.h.bf16 %v3736_v9  ;;  %v1128_v6 = vadd.f32 %v4771_v62, %v1099_v38 }
 0xa28   :  { %3477 = vmatmul.msk.f32.vlgmr.msrb.gmra.mxu0 %vm296_vm0, %v1476_v8 }
 0xa29   :  { %1541 = vmatpush.msrb.mxu2 %v3737_v10 }
 0xa2b   :  { %1542 = vmatpush.msrb.mxu2 %v3738_v13 }
 0xa2d   :  { %1880 = vmatpush.bf16.msra.mxu2 %v3654_v15 }
 0xa2e   :  { %v1344_v39 = vpop.f32.mrf.mxu1 }
 0xa2f   :  { %v1354_v41 = vadd.f32 %v1344_v39, %v1121_v40 }
 0xa30   :  { %3478 = vmatmul.msk.f32.gmra.mxu0 %vm296_vm0, %v1477_v4 }
 0xa31   :  { %1881 = vmatpush.bf16.msra.mxu2 %v3653_v16 }
 0xa36   :  { %v1346_v46 = vpop.f32.mrf.mxu1 }
 0xa43   :  { %v1468_v17 = vpop.xlane.xlu0 %1467 }
 0xa44   :  { %3861 = vrcp.f32 %v1468_v17 }
 0xa4a   :  { %v3862_v20 = vpop.eup %3861 }
 0xa4b   :  { %v1478_v22 = vmul.f32 %v3862_v20, %v3850_v44  ;;  %v1471_v24 = vpop.xlane.xlu0 %1470  ;;  %v3969_v44 = vld [vmem:[#allocation2] sm:$0xff] }
 0xa4c   :  { %3863 = vrcp.f32 %v1471_v24 }
 0xa4d   :  { %3479 = vmatmul.msk.f32.vlgmr.msrb.gmra.mxu2 %vm296_vm0, %v1478_v22 }
 0xa52   :  { %v3864_v25 = vpop.eup %3863 }
 0xa53   :  { %v1479_v26 = vmul.f32 %v3864_v25, %v3852_v47  ;;  %v1123_v47 = vadd.f32 %v4765_v58, %v1094_v19  ;;  %v1126_v58 = vadd.f32 %v4768_v56, %v1097_v23  ;;  %v3650_v19 = vld [vmem:[#allocation16 + $0x8] sm:$0xff]  ;;  %v3649_v23 = vld [vmem:[#allocation16] sm:$0xff] }
 0xa54   :  { %1750 = vmatpush.bf16.msra.mxu0 %v3650_v19 }
 0xa55   :  { %3480 = vmatmul.msk.f32.gmra.mxu2 %vm296_vm0, %v1479_v26  ;;  %v1355_v3 = vadd.f32 %v1346_v46, %v1123_v47 }
 0xa58   :  { %1751 = vmatpush.bf16.msra.mxu0 %v3649_v23 }
 0xa5d   :  { %3515 = vmatmul.msk.bf16.vlgmr.msra.gmra.mxu2 %vm337_vm2, %v4571_v12 }
 0xa95   :  { %v1316_v28 = vpop.f32.mrf.mxu0 }
 0xa9d   :  { %v1319_v29 = vpop.f32.mrf.mxu0 }
 0xa9e   :  { %v1323_v30 = vpack.c.bf16 %v1319_v29, %v1316_v28 }
 0xaa0   :  { %3468 = vmatmul.msk.bf16.gmra.mxu1 %vm691_vm15, %v1323_v30 }
 0xaa5   :  { %v1509_v31 = vpop.f32.mrf.mxu0 }
 0xaad   :  { %v1512_v32 = vpop.f32.mrf.mxu0 }
 0xaae   :  { %v1550_v33 = vpack.c.bf16 %v1512_v32, %v1509_v31 }
 0xab0   :  { %3481 = vmatmul.msk.bf16.vlgmr.msrb.gmra.mxu3 %vm691_vm15, %v1550_v33 }
 0xad0   :  { %v1544_v34 = vpop.f32.mrf.mxu2 }
 0xad8   :  { %v1547_v1 = vpop.f32.mrf.mxu2 }
 0xad9   :  { %v1551_v35 = vpack.c.bf16 %v1547_v1, %v1544_v34 }
 0xadb   :  { %3482 = vmatmul.msk.bf16.gmra.mxu3 %vm691_vm15, %v1551_v35 }
 0xae0   :  { %v4810_v12 = vpop.f32.mrf.mxu2 }
 0xae8   :  { %v1885_v36 = vpop.f32.mrf.mxu2 }
 0xb1d   :  { %v1349_v60 = vpop.f32.mrf.mxu1 }
 0xb1e   :  { %v1356_v61 = vadd.f32 %v1349_v60, %v1126_v58 }
 0xb25   :  { %v1351_v0 = vpop.f32.mrf.mxu1 }
 0xb26   :  { %v1357_v8 = vadd.f32 %v1351_v0, %v1128_v6 }
 0xb33   :  { %v1572_v42 = vpop.f32.mrf.mxu3 }
 0xb34   :  { %v1582_v5 = vadd.f32 %v1572_v42, %v1354_v41 }
 0xb36   :  { %v1586_v45 = vadd.f32 %v3969_v44, %v1582_v5 }
 0xb38   :  { %v4814_v48 = vadd.f32 %v3787_v43, %v1586_v45 }
 0xb3a   :  { %v1598_v49 = vsel %vm337_vm2, %v4814_v48, 0.0 }
 0xb3b   :  { %v1574_v50 = vpop.f32.mrf.mxu3  ;;  %1599 = vadd.xlane.f32.xlu1 %v1598_v49 }
 0xb3c   :  { %v1583_v57 = vadd.f32 %v1574_v50, %v1355_v3  ;;  %v3971_v50 = vld [vmem:[#allocation12] sm:$0xf] }
 0xb3d   :  { %v1691_v60 = vperm.slane %v3971_v50, 3 }
 0xb3e   :  { %v1587_v54 = vadd.f32 %v3970_v51, %v1583_v57  ;;  %v1686_v57 = vperm.slane %v3971_v50, 2 }
 0xb40   :  { %v4818_v52 = vadd.f32 %v3787_v43, %v1587_v54 }
 0xb42   :  { %v1601_v55 = vsel %vm337_vm2, %v4818_v52, 0.0 }
 0xb43   :  { %1602 = vadd.xlane.f32.xlu2 %v1601_v55 }
 0xb5b   :  { %1696 = vrot.lane.b32.xlu2 %v4578_v18, %s5275_s3 }
 0xb5e   :  { %v1577_v59 = vpop.f32.mrf.mxu3 }
 0xb5f   :  { %v1584_v2 = vadd.f32 %v1577_v59, %v1356_v61 }
 0xb61   :  { %v1588_v63 = vadd.f32 %v3969_v44, %v1584_v2 }
 0xb63   :  { %v4826_v7 = vadd.f32 %v3787_v43, %v1588_v63 }
 0xb65   :  { %v1604_v9 = vsel %vm337_vm2, %v4826_v7, 0.0 }
 0xb66   :  { %v1579_v10 = vpop.f32.mrf.mxu3  ;;  %1605 = vadd.xlane.f32.xlu0 %v1604_v9 }
 0xb67   :  { %v1585_v13 = vadd.f32 %v1579_v10, %v1357_v8 }
 0xb69   :  { %v1589_v56 = vadd.f32 %v3970_v51, %v1585_v13 }
 0xb6b   :  { %v4830_v14 = vadd.f32 %v3787_v43, %v1589_v56 }
 0xb6d   :  { %v1607_v4 = vsel %vm337_vm2, %v4830_v14, 0.0 }
 0xb6e   :  { %1608 = vadd.xlane.f32.xlu0 %v1607_v4 }
 0xbae   :  { %v1600_v15 = vpop.xlane.xlu1 %1599 }
 0xbaf   :  { %v1610_v16 = vmul.f32 %v1600_v15, %v4550_v53 }
 0xbb1   :  { %v1614_v62 = vsub.f32 %v4814_v48, %v1610_v16 }
 0xbb3   :  { %v1618_v17 = vmul.f32 %v1614_v62, %v1614_v62 }
 0xbb5   :  { %v1622_v20 = vsel %vm337_vm2, %v1618_v17, 0.0 }
 0xbb6   :  { %v1603_v22 = vpop.xlane.xlu2 %1602  ;;  %1623 = vadd.xlane.f32.xlu0 %v1622_v20 }
 0xbb7   :  { %v1611_v24 = vmul.f32 %v1603_v22, %v4550_v53 }
 0xbb9   :  { %v1615_v25 = vsub.f32 %v4818_v52, %v1611_v24 }
 0xbbb   :  { %v1619_v26 = vmul.f32 %v1615_v25, %v1615_v25 }
 0xbbd   :  { %v1625_v27 = vsel %vm337_vm2, %v1619_v26, 0.0 }
 0xbbe   :  { %1626 = vadd.xlane.f32.xlu0 %v1625_v27  ;;  %v1697_v0 = vpop.permute.xlu2 %1696 }
 0xbd2   :  { %1706 = vrot.lane.b32.xlu0 %v4578_v18, %s4356_s6 }
 0xbd9   :  { %v1606_v11 = vpop.xlane.xlu0 %1605 }
 0xbda   :  { %v1612_v33 = vmul.f32 %v1606_v11, %v4550_v53 }
 0xbdc   :  { %v4851_v34 = vsub.f32 %v4826_v7, %v1612_v33 }
 0xbde   :  { %v1620_v18 = vmul.f32 %v4851_v34, %v4851_v34 }
 0xbe0   :  { %v1628_v1 = vsel %vm337_vm2, %v1620_v18, 0.0 }
 0xbe1   :  { %v1609_v28 = vpop.xlane.xlu0 %1608 }
 0xbe2   :  { %v1613_v29 = vmul.f32 %v1609_v28, %v4550_v53 }
 0xbe4   :  { %v4844_v30 = vsub.f32 %v4830_v14, %v1613_v29 }
 0xbe6   :  { %v1621_v31 = vmul.f32 %v4844_v30, %v4844_v30 }
 0xbe8   :  { %v1631_v32 = vsel %vm337_vm2, %v1621_v31, 0.0 }
 0xbe9   :  { %1632 = vadd.xlane.f32.xlu1 %v1631_v32 }
 0xbfc   :  { %1629 = vadd.xlane.f32.xlu0 %v1628_v1 }
 0xc02   :  { %1698 = vrot.lane.b32.xlu1 %v4582_v21, %s5275_s3 }
 0xc10   :  { %1708 = vrot.lane.b32.xlu0 %v4582_v21, %s4356_s6 }
 0xc29   :  { %v1624_v35 = vpop.xlane.xlu0 %1623 }
 0xc2a   :  { %v1634_v36 = vmul.f32 %v1624_v35, %v4550_v53 }
 0xc2c   :  { %v1638_v37 = vadd.f32 1e-05, %v1634_v36 }
 0xc2e   :  { %3865 = vrsqrt.f32 %v1638_v37  ;;  %vm1648_vm4 = vweird.f32 %v1638_v37 }
 0xc31   :  { %v1627_v38 = vpop.xlane.xlu0 %1626 }
 0xc32   :  { %v1635_v39 = vmul.f32 %v1627_v38, %v4550_v53 }
 0xc34   :  { %v3866_v40 = vpop.eup %3865  ;;  %v1639_v41 = vadd.f32 1e-05, %v1635_v39 }
 0xc35   :  { %v1643_v42 = vmul.f32 %v3866_v40, %v1638_v37  ;;  %vm1649_vm3 = vweird.f32 %v3866_v40 }
 0xc36   :  { %3867 = vrsqrt.f32 %v1639_v41  ;;  %vm1650_vm5 = vmor %vm1648_vm4, %vm1649_vm3  ;;  %vm1658_vm7 = vweird.f32 %v1639_v41 }
 0xc37   :  { %v1644_v5 = vmul.f32 %v3866_v40, %v1643_v42 }
 0xc39   :  { %v1645_v43 = vmul.f32 0.5, %v1644_v5 }
 0xc3b   :  { %v1646_v44 = vsub.f32 1.5, %v1645_v43 }
 0xc3c   :  { %v3868_v21 = vpop.eup %3867 }
 0xc3d   :  { %v1647_v45 = vmul.f32 %v3866_v40, %v1646_v44  ;;  %v1653_v46 = vmul.f32 %v3868_v21, %v1639_v41  ;;  %vm1659_vm6 = vweird.f32 %v3868_v21 }
 0xc3e   :  { %vm1660_vm8 = vmor %vm1658_vm7, %vm1659_vm6 }
 0xc3f   :  { %v1651_v47 = vsel %vm1650_vm5, %v3866_v40, %v1647_v45  ;;  %v1654_v3 = vmul.f32 %v3868_v21, %v1653_v46  ;;  %v3788_v46 = vld [vmem:[#allocation18] ss:$0 sm:$0xff] }
 0xc40   :  { %v1682_v49 = vmul.f32 %v1651_v47, %v1614_v62 }
 0xc41   :  { %v1655_v51 = vmul.f32 0.5, %v1654_v3  ;;  %v3651_v3 = vld [vmem:[#allocation19] sm:$0xff] }
 0xc42   :  { %v1687_v55 = vmul.f32 %v1686_v57, %v1682_v49 }
 0xc43   :  { %v1656_v54 = vsub.f32 1.5, %v1655_v51 }
 0xc44   :  { %v1692_v2 = vadd.f32 %v1691_v60, %v1687_v55  ;;  %v1707_v10 = vpop.permute.xlu0 %1706 }
 0xc45   :  { %v1657_v58 = vmul.f32 %v3868_v21, %v1656_v54 }
 0xc46   :  { %v1702_v8 = vmul.f32 %v1697_v0, %v1692_v2 }
 0xc47   :  { %v1661_v61 = vsel %vm1660_vm8, %v3868_v21, %v1657_v58 }
 0xc48   :  { %v1683_v59 = vmul.f32 %v1661_v61, %v1615_v25  ;;  %v1712_v13 = vadd.f32 %v1707_v10, %v1702_v8 }
 0xc4a   :  { %v1688_v63 = vmul.f32 %v1686_v57, %v1683_v59 }
 0xc4c   :  { %v1693_v6 = vadd.f32 %v1691_v60, %v1688_v63 }
 0xc4e   :  { %v1703_v9 = vmul.f32 %v1697_v0, %v1693_v6 }
 0xc50   :  { %v1713_v56 = vadd.f32 %v1707_v10, %v1703_v9 }
 0xc52   :  { %v1721_v4 = vpack.c.bf16 %v1713_v56, %v1712_v13 }
 0xc54   :  { %3491 = vmatmul.msk.bf16.vlgmr.msra.gmra.mxu0 %vm337_vm2, %v1721_v4 }
 0xc5c   :  { %v1633_v15 = vpop.xlane.xlu1 %1632 }
 0xc5d   :  { %v1637_v16 = vmul.f32 %v1633_v15, %v4550_v53 }
 0xc5f   :  { %v1641_v62 = vadd.f32 1e-05, %v1637_v16 }
 0xc61   :  { %3869 = vrsqrt.f32 %v1641_v62  ;;  %vm1678_vm10 = vweird.f32 %v1641_v62 }
 0xc67   :  { %v3870_v17 = vpop.eup %3869 }
 0xc68   :  { %v1673_v20 = vmul.f32 %v3870_v17, %v1641_v62  ;;  %vm1679_vm9 = vweird.f32 %v3870_v17 }
 0xc69   :  { %vm1680_vm11 = vmor %vm1678_vm10, %vm1679_vm9 }
 0xc6a   :  { %v1674_v22 = vmul.f32 %v3870_v17, %v1673_v20 }
 0xc6c   :  { %v1675_v26 = vmul.f32 0.5, %v1674_v22 }
 0xc6e   :  { %v1676_v11 = vsub.f32 1.5, %v1675_v26 }
 0xc6f   :  { %v1630_v24 = vpop.xlane.xlu0 %1629 }
 0xc70   :  { %v1636_v25 = vmul.f32 %v1630_v24, %v4550_v53  ;;  %v1677_v28 = vmul.f32 %v3870_v17, %v1676_v11 }
 0xc72   :  { %v1640_v27 = vadd.f32 1e-05, %v1636_v25  ;;  %v1681_v33 = vsel %vm1680_vm11, %v3870_v17, %v1677_v28 }
 0xc73   :  { %v1685_v1 = vmul.f32 %v1681_v33, %v4844_v30  ;;  %v3652_v30 = vld [vmem:[#allocation19 + $0x8] sm:$0xff] }
 0xc74   :  { %3871 = vrsqrt.f32 %v1640_v27  ;;  %vm1668_vm13 = vweird.f32 %v1640_v27  ;;  %v1699_v41 = vpop.permute.xlu1 %1698  ;;  %1833 = vmatpush.bf16.msra.mxu1 %v3652_v30 }
 0xc75   :  { %v1690_v37 = vmul.f32 %v1686_v57, %v1685_v1 }
 0xc77   :  { %v1695_v38 = vadd.f32 %v1691_v60, %v1690_v37 }
 0xc78   :  { %1834 = vmatpush.bf16.msra.mxu1 %v3651_v3 }
 0xc79   :  { %v1705_v43 = vmul.f32 %v1699_v41, %v1695_v38 }
 0xc7a   :  { %v3872_v29 = vpop.eup %3871 }
 0xc7b   :  { %v1663_v31 = vmul.f32 %v3872_v29, %v1640_v27  ;;  %vm1669_vm12 = vweird.f32 %v3872_v29 }
 0xc7c   :  { %vm1670_vm14 = vmor %vm1668_vm13, %vm1669_vm12 }
 0xc7d   :  { %v1664_v32 = vmul.f32 %v3872_v29, %v1663_v31 }
 0xc7f   :  { %v1665_v18 = vmul.f32 0.5, %v1664_v32 }
 0xc81   :  { %v1666_v35 = vsub.f32 1.5, %v1665_v18 }
 0xc82   :  { %v1709_v42 = vpop.permute.xlu0 %1708 }
 0xc83   :  { %v1667_v36 = vmul.f32 %v3872_v29, %v1666_v35  ;;  %v1715_v21 = vadd.f32 %v1709_v42, %v1705_v43 }
 0xc85   :  { %v1671_v19 = vsel %vm1670_vm14, %v3872_v29, %v1667_v36 }
 0xc86   :  { %v1684_v23 = vmul.f32 %v1671_v19, %v4851_v34 }
 0xc88   :  { %v1689_v39 = vmul.f32 %v1686_v57, %v1684_v23 }
 0xc8a   :  { %v1694_v40 = vadd.f32 %v1691_v60, %v1689_v39  ;;  %v3789_v39 = vld [vmem:[#allocation21] ss:$0 sm:$0xff] }
 0xc8c   :  { %v1704_v5 = vmul.f32 %v1699_v41, %v1694_v40 }
 0xc8e   :  { %v1714_v44 = vadd.f32 %v1709_v42, %v1704_v5 }
 0xc90   :  { %v1722_v45 = vpack.c.bf16 %v1715_v21, %v1714_v44 }
 0xc92   :  { %3492 = vmatmul.msk.bf16.gmra.mxu0 %vm337_vm2, %v1722_v45 }
 0xcd1   :  { %v1753_v47 = vpop.f32.mrf.mxu0 }
 0xcd2   :  { %v1754_v49 = vadd.f32 %v3788_v46, %v1753_v47 }
 0xcd4   :  { %v1763_v34 = vmul.f32 %v1754_v49, %v1754_v49 }
 0xcd6   :  { %v1767_v50 = vmul.f32 %v1763_v34, %v1754_v49 }
 0xcd8   :  { %v1771_v57 = vmul.f32 0.044715, %v1767_v50 }
 0xcd9   :  { %v1755_v51 = vpop.f32.mrf.mxu0 }
 0xcda   :  { %v1775_v54 = vadd.f32 %v1771_v57, %v1754_v49  ;;  %v1756_v55 = vadd.f32 %v3788_v46, %v1755_v51 }
 0xcdc   :  { %v1779_v60 = vmul.f32 0.7978846, %v1775_v54  ;;  %v1764_v58 = vmul.f32 %v1756_v55, %v1756_v55 }
 0xcde   :  { %v1768_v61 = vmul.f32 %v1764_v58, %v1756_v55  ;;  %3873 = vtanh.f32 %v1779_v60 }
 0xce0   :  { %v1772_v59 = vmul.f32 0.044715, %v1768_v61 }
 0xce2   :  { %v1776_v2 = vadd.f32 %v1772_v59, %v1756_v55  ;;  %v3786_v59 = vld [vmem:[#allocation10 + $0x1] ss:$0 sm:$0xff] }
 0xce4   :  { %v1780_v63 = vmul.f32 0.7978846, %v1776_v2  ;;  %v3874_v0 = vpop.eup %3873  ;;  %v1884_v2 = vadd.f32 %v3786_v59, %v4810_v12 }
 0xce5   :  { %v1787_v6 = vadd.f32 1.0, %v3874_v0 }
 0xce6   :  { %3875 = vtanh.f32 %v1780_v63  ;;  %v4897_v63 = vperm.slane %v1884_v2, 0 }
 0xce7   :  { %v1791_v9 = vmul.f32 0.5, %v1787_v6 }
 0xce9   :  { %v1795_v56 = vmul.f32 %v1791_v9, %v1754_v49 }
 0xcec   :  { %v3876_v8 = vpop.eup %3875 }
 0xced   :  { %v1788_v10 = vadd.f32 1.0, %v3876_v8 }
 0xcef   :  { %v1792_v13 = vmul.f32 0.5, %v1788_v10 }
 0xcf1   :  { %v1796_v4 = vmul.f32 %v1792_v13, %v1756_v55 }
 0xcf3   :  { %v1804_v15 = vpack.c.bf16 %v1796_v4, %v1795_v56 }
 0xcf5   :  { %3501 = vmatmul.msk.bf16.vlgmr.msra.gmra.mxu1 %vm337_vm2, %v1804_v15 }
 0xd0f   :  { %v1758_v16 = vpop.f32.mrf.mxu0 }
 0xd10   :  { %v1759_v62 = vadd.f32 %v3788_v46, %v1758_v16  ;;  %v1888_v16 = vrot.slane %v1884_v2, 1 }
 0xd12   :  { %v1765_v17 = vmul.f32 %v1759_v62, %v1759_v62 }
 0xd14   :  { %v1769_v20 = vmul.f32 %v1765_v17, %v1759_v62 }
 0xd16   :  { %v1773_v22 = vmul.f32 0.044715, %v1769_v20 }
 0xd17   :  { %v1760_v24 = vpop.f32.mrf.mxu0 }
 0xd18   :  { %v1777_v25 = vadd.f32 %v1773_v22, %v1759_v62  ;;  %v1761_v26 = vadd.f32 %v3788_v46, %v1760_v24  ;;  %v3656_v24 = vld [vmem:[%s5249_s9 + $0x18] sm:$0xff] }
 0xd19   :  { %2036 = vmatpush.bf16.msrb.mxu2 %v3656_v24 }
 0xd1a   :  { %v1781_v27 = vmul.f32 0.7978846, %v1777_v25  ;;  %v1766_v11 = vmul.f32 %v1761_v26, %v1761_v26  ;;  %v3655_v25 = vld [vmem:[%s5249_s9 + $0x10] sm:$0xff] }
 0xd1c   :  { %v1770_v28 = vmul.f32 %v1766_v11, %v1761_v26  ;;  %3877 = vtanh.f32 %v1781_v27 }
 0xd1d   :  { %2037 = vmatpush.bf16.msrb.mxu2 %v3655_v25 }
 0xd1e   :  { %v1774_v29 = vmul.f32 0.044715, %v1770_v28 }
 0xd20   :  { %v1778_v31 = vadd.f32 %v1774_v29, %v1761_v26 }
 0xd22   :  { %v1782_v32 = vmul.f32 0.7978846, %v1778_v31  ;;  %v3878_v33 = vpop.eup %3877 }
 0xd23   :  { %v1789_v18 = vadd.f32 1.0, %v3878_v33 }
 0xd24   :  { %3879 = vtanh.f32 %v1782_v32 }
 0xd25   :  { %v1793_v36 = vmul.f32 0.5, %v1789_v18 }
 0xd27   :  { %v1797_v19 = vmul.f32 %v1793_v36, %v1759_v62  ;;  %v4915_v62 = vperm.slane %v1888_v16, 0  ;;  %v1851_v36 = vld [vmem:[#allocation12 + $0x4] sm:$0xf] }
 0xd2a   :  { %v3880_v1 = vpop.eup %3879 }
 0xd2b   :  { %v1790_v35 = vadd.f32 1.0, %v3880_v1 }
 0xd2d   :  { %v1794_v37 = vmul.f32 0.5, %v1790_v35 }
 0xd2f   :  { %v1798_v23 = vmul.f32 %v1794_v37, %v1761_v26 }
 0xd31   :  { %v1805_v38 = vpack.c.bf16 %v1798_v23, %v1797_v19  ;;  %v1981_v23 = vperm.slane %v1851_v36, 0 }
 0xd33   :  { %3502 = vmatmul.msk.bf16.gmra.mxu1 %vm337_vm2, %v1805_v38 }
 0xd72   :  { %v1836_v40 = vpop.f32.mrf.mxu1 }
 0xd73   :  { %v1837_v41 = vadd.f32 %v3789_v39, %v1836_v40 }
 0xd75   :  { %v4871_v42 = vadd.f32 %v1837_v41, %v4814_v48  ;;  %v1986_v41 = vperm.slane %v1851_v36, 1 }
 0xd77   :  { %v1893_v5 = vsel %vm337_vm2, %v4871_v42, 0.0 }
 0xd78   :  { %1894 = vadd.xlane.f32.xlu2 %v1893_v5 }
 0xd7a   :  { %v1838_v43 = vpop.f32.mrf.mxu1 }
 0xd7b   :  { %v1839_v44 = vadd.f32 %v3789_v39, %v1838_v43 }
 0xd7d   :  { %v4876_v21 = vadd.f32 %v1839_v44, %v4818_v52 }
 0xd7f   :  { %v1896_v45 = vsel %vm337_vm2, %v4876_v21, 0.0 }
 0xd80   :  { %1897 = vadd.xlane.f32.xlu0 %v1896_v45 }
 0xdb0   :  { %v1841_v30 = vpop.f32.mrf.mxu1 }
 0xdb1   :  { %v1842_v46 = vadd.f32 %v3789_v39, %v1841_v30 }
 0xdb3   :  { %v4881_v47 = vadd.f32 %v1842_v46, %v4826_v7 }
 0xdb5   :  { %v1899_v48 = vsel %vm337_vm2, %v4881_v47, 0.0 }
 0xdb6   :  { %1900 = vadd.xlane.f32.xlu1 %v1899_v48 }
 0xdb8   :  { %v1843_v3 = vpop.f32.mrf.mxu1 }
 0xdb9   :  { %v1844_v49 = vadd.f32 %v3789_v39, %v1843_v3 }
 0xdbb   :  { %v4886_v34 = vadd.f32 %v1844_v49, %v4830_v14 }
 0xdbd   :  { %v1902_v52 = vsel %vm337_vm2, %v4886_v34, 0.0 }
 0xdbe   :  { %1903 = vadd.xlane.f32.xlu2 %v1902_v52 }
 0xdeb   :  { %v1895_v50 = vpop.xlane.xlu2 %1894 }
 0xdec   :  { %v1905_v57 = vmul.f32 %v1895_v50, %v4550_v53 }
 0xdee   :  { %v1909_v51 = vsub.f32 %v4871_v42, %v1905_v57 }
 0xdf0   :  { %v1913_v7 = vmul.f32 %v1909_v51, %v1909_v51 }
 0xdf2   :  { %v1917_v54 = vsel %vm337_vm2, %v1913_v7, 0.0 }
 0xdf3   :  { %1918 = vadd.xlane.f32.xlu0 %v1917_v54  ;;  %v1898_v55 = vpop.xlane.xlu0 %1897 }
 0xdf4   :  { %v1906_v60 = vmul.f32 %v1898_v55, %v4550_v53 }
 0xdf6   :  { %v1910_v58 = vsub.f32 %v4876_v21, %v1906_v60 }
 0xdf8   :  { %v1914_v14 = vmul.f32 %v1910_v58, %v1910_v58 }
 0xdfa   :  { %v1920_v61 = vsel %vm337_vm2, %v1914_v14, 0.0 }
 0xdfb   :  { %1921 = vadd.xlane.f32.xlu2 %v1920_v61 }
 0xe13   :  { %1995 = vrot.lane.b32.xlu2 %v4897_v63, %s4346_s26 }
 0xe29   :  { %v1901_v0 = vpop.xlane.xlu1 %1900 }
 0xe2a   :  { %v1907_v6 = vmul.f32 %v1901_v0, %v4550_v53 }
 0xe2c   :  { %v4903_v8 = vsub.f32 %v4881_v47, %v1907_v6 }
 0xe2e   :  { %v1915_v9 = vmul.f32 %v4903_v8, %v4903_v8 }
 0xe30   :  { %v1923_v10 = vsel %vm337_vm2, %v1915_v9, 0.0 }
 0xe31   :  { %v1904_v13 = vpop.xlane.xlu2 %1903  ;;  %1924 = vadd.xlane.f32.xlu1 %v1923_v10 }
 0xe32   :  { %v1908_v12 = vmul.f32 %v1904_v13, %v4550_v53 }
 0xe34   :  { %v4910_v56 = vsub.f32 %v4886_v34, %v1908_v12 }
 0xe36   :  { %v1916_v4 = vmul.f32 %v4910_v56, %v4910_v56 }
 0xe38   :  { %v1926_v15 = vsel %vm337_vm2, %v1916_v4, 0.0 }
 0xe39   :  { %1927 = vadd.xlane.f32.xlu0 %v1926_v15 }
 0xe4a   :  { %1997 = vrot.lane.b32.xlu1 %v4915_v62, %s4346_s26 }
 0xe66   :  { %v1919_v17 = vpop.xlane.xlu0 %1918 }
 0xe67   :  { %v1929_v20 = vmul.f32 %v1919_v17, %v4550_v53 }
 0xe69   :  { %v1933_v22 = vadd.f32 1e-05, %v1929_v20 }
 0xe6b   :  { %3881 = vrsqrt.f32 %v1933_v22  ;;  %vm1943_vm4 = vweird.f32 %v1933_v22 }
 0xe6e   :  { %v1922_v26 = vpop.xlane.xlu2 %1921 }
 0xe6f   :  { %v1930_v27 = vmul.f32 %v1922_v26, %v4550_v53 }
 0xe71   :  { %v3882_v11 = vpop.eup %3881  ;;  %v1934_v28 = vadd.f32 1e-05, %v1930_v27 }
 0xe72   :  { %v1938_v29 = vmul.f32 %v3882_v11, %v1933_v22  ;;  %vm1944_vm3 = vweird.f32 %v3882_v11 }
 0xe73   :  { %3883 = vrsqrt.f32 %v1934_v28  ;;  %vm1945_vm5 = vmor %vm1943_vm4, %vm1944_vm3  ;;  %vm1953_vm7 = vweird.f32 %v1934_v28 }
 0xe74   :  { %v1939_v31 = vmul.f32 %v3882_v11, %v1938_v29 }
 0xe76   :  { %v1940_v32 = vmul.f32 0.5, %v1939_v31  ;;  %v1996_v52 = vpop.permute.xlu2 %1995 }
 0xe78   :  { %v1941_v33 = vsub.f32 1.5, %v1940_v32 }
 0xe79   :  { %v3884_v18 = vpop.eup %3883 }
 0xe7a   :  { %v1942_v1 = vmul.f32 %v3882_v11, %v1941_v33  ;;  %v1948_v35 = vmul.f32 %v3884_v18, %v1934_v28  ;;  %vm1954_vm6 = vweird.f32 %v3884_v18 }
 0xe7b   :  { %vm1955_vm8 = vmor %vm1953_vm7, %vm1954_vm6 }
 0xe7c   :  { %v1946_v37 = vsel %vm1945_vm5, %v3882_v11, %v1942_v1  ;;  %v1949_v19 = vmul.f32 %v3884_v18, %v1948_v35 }
 0xe7d   :  { %v1977_v38 = vmul.f32 %v1946_v37, %v1909_v51 }
 0xe7e   :  { %v1950_v39 = vmul.f32 0.5, %v1949_v19 }
 0xe7f   :  { %v1982_v5 = vmul.f32 %v1981_v23, %v1977_v38 }
 0xe80   :  { %v1951_v40 = vsub.f32 1.5, %v1950_v39 }
 0xe81   :  { %v1987_v30 = vadd.f32 %v1986_v41, %v1982_v5 }
 0xe82   :  { %v1952_v43 = vmul.f32 %v3884_v18, %v1951_v40 }
 0xe83   :  { %v1991_v3 = vmul.f32 %v1987_v30, %v4897_v63 }
 0xe84   :  { %v1956_v44 = vsel %vm1955_vm8, %v3884_v18, %v1952_v43 }
 0xe85   :  { %v1978_v45 = vmul.f32 %v1956_v44, %v1910_v58  ;;  %v2001_v50 = vadd.f32 %v1996_v52, %v1991_v3 }
 0xe87   :  { %v1983_v46 = vmul.f32 %v1981_v23, %v1978_v45 }
 0xe89   :  { %v1988_v48 = vadd.f32 %v1986_v41, %v1983_v46 }
 0xe8b   :  { %v1992_v49 = vmul.f32 %v1988_v48, %v4897_v63 }
 0xe8d   :  { %v2002_v57 = vadd.f32 %v1996_v52, %v1992_v49 }
 0xe8f   :  { %v2010_v51 = vpack.c.bf16 %v2002_v57, %v2001_v50 }
 0xe91   :  { %3528 = vmatmul.msk.bf16.vlgmr.msrb.gmra.mxu2 %vm337_vm2, %v2010_v51 }
 0xea4   :  { %v1925_v7 = vpop.xlane.xlu1 %1924 }
 0xea5   :  { %v1931_v54 = vmul.f32 %v1925_v7, %v4550_v53 }
 0xea7   :  { %v1935_v55 = vadd.f32 1e-05, %v1931_v54 }
 0xea9   :  { %3885 = vrsqrt.f32 %v1935_v55  ;;  %vm1963_vm10 = vweird.f32 %v1935_v55 }
 0xeac   :  { %v1928_v60 = vpop.xlane.xlu0 %1927 }
 0xead   :  { %v1932_v58 = vmul.f32 %v1928_v60, %v4550_v53 }
 0xeaf   :  { %v3886_v14 = vpop.eup %3885  ;;  %v1936_v61 = vadd.f32 1e-05, %v1932_v58 }
 0xeb0   :  { %v1958_v59 = vmul.f32 %v3886_v14, %v1935_v55  ;;  %vm1964_vm9 = vweird.f32 %v3886_v14 }
 0xeb1   :  { %3887 = vrsqrt.f32 %v1936_v61  ;;  %vm1965_vm11 = vmor %vm1963_vm10, %vm1964_vm9  ;;  %vm1973_vm13 = vweird.f32 %v1936_v61 }
 0xeb2   :  { %v1959_v2 = vmul.f32 %v3886_v14, %v1958_v59 }
 0xeb4   :  { %v1960_v0 = vmul.f32 0.5, %v1959_v2 }
 0xeb6   :  { %v1961_v6 = vsub.f32 1.5, %v1960_v0 }
 0xeb7   :  { %v3888_v9 = vpop.eup %3887 }
 0xeb8   :  { %v1962_v10 = vmul.f32 %v3886_v14, %v1961_v6  ;;  %v1968_v13 = vmul.f32 %v3888_v9, %v1936_v61  ;;  %vm1974_vm12 = vweird.f32 %v3888_v9 }
 0xeb9   :  { %vm1975_vm14 = vmor %vm1973_vm13, %vm1974_vm12  ;;  %vm3315_vm13 = vcmask 523264  }
 0xeba   :  { %v1966_v12 = vsel %vm1965_vm11, %v3886_v14, %v1962_v10  ;;  %v1969_v4 = vmul.f32 %v3888_v9, %v1968_v13 }
 0xebb   :  { %v1979_v15 = vmul.f32 %v1966_v12, %v4903_v8 }
 0xebc   :  { %v1970_v16 = vmul.f32 0.5, %v1969_v4  ;;  %v1998_v31 = vpop.permute.xlu1 %1997 }
 0xebd   :  { %v1984_v20 = vmul.f32 %v1981_v23, %v1979_v15 }
 0xebe   :  { %v1971_v17 = vsub.f32 1.5, %v1970_v16 }
 0xebf   :  { %v1989_v25 = vadd.f32 %v1986_v41, %v1984_v20 }
 0xec0   :  { %v1972_v22 = vmul.f32 %v3888_v9, %v1971_v17 }
 0xec1   :  { %v1993_v11 = vmul.f32 %v1989_v25, %v4915_v62 }
 0xec2   :  { %v1976_v24 = vsel %vm1975_vm14, %v3888_v9, %v1972_v22 }
 0xec3   :  { %v1980_v26 = vmul.f32 %v1976_v24, %v4910_v56  ;;  %v2003_v32 = vadd.f32 %v1998_v31, %v1993_v11 }
 0xec5   :  { %v1985_v27 = vmul.f32 %v1981_v23, %v1980_v26 }
 0xec7   :  { %v1990_v28 = vadd.f32 %v1986_v41, %v1985_v27 }
 0xec9   :  { %v1994_v29 = vmul.f32 %v1990_v28, %v4915_v62 }
 0xecb   :  { %v2004_v8 = vadd.f32 %v1998_v31, %v1994_v29 }
 0xecd   :  { %v2011_v33 = vpack.c.bf16 %v2004_v8, %v2003_v32 }
 0xecf   :  { %3529 = vmatmul.msk.bf16.gmra.mxu2 %vm337_vm2, %v2011_v33 }
 0xf14   :  { %v4937_v18 = vpop.f32.mrf.mxu2 }
 0xf15   :  { %2051 = vrot.lane.b32.xlu2 %v4937_v18, %s4346_s26 }
 0xf1c   :  { %v4941_v1 = vpop.f32.mrf.mxu2 }
 0xf1d   :  { %2247 = vrot.lane.b32.xlu2 %v4941_v1, %s4348_s11  ;;  %2053 = vrot.lane.b32.xlu0 %v4941_v1, %s4346_s26  ;;  %v4951_v56 = vpack.i.bf16 %v4937_v18, %v4941_v1 }
 0xf25   :  { %2243 = vrot.lane.b32.xlu2 %v4941_v1, %s4347_s25 }
 0xf2d   :  { %3740 = vrot.lane.b32.xlu2 %v4951_v56, %s5275_s3 }
 0xf52   :  { %v4955_v35 = vpop.f32.mrf.mxu2 }
 0xf53   :  { %2088 = vrot.lane.b32.xlu0 %v4955_v35, %s4346_s26 }
 0xf5a   :  { %v4959_v36 = vpop.f32.mrf.mxu2 }
 0xf5b   :  { %2241 = vrot.lane.b32.xlu0 %v4937_v18, %s4347_s25  ;;  %2090 = vrot.lane.b32.xlu1 %v4959_v36, %s4346_s26  ;;  %v5019_v29 = vpack.i.bf16 %v4955_v35, %v4959_v36 }
 0xf63   :  { %2245 = vrot.lane.b32.xlu1 %v4937_v18, %s4348_s11 }
 0xf6f   :  { %v2052_v37 = vpop.permute.xlu2 %2051 }
 0xf77   :  { %v2248_v19 = vpop.permute.xlu2 %2247 }
 0xf7f   :  { %v2244_v23 = vpop.permute.xlu2 %2243 }
 0xf87   :  { %v3741_v38 = vpop.permute.xlu2 %3740 }
 0xf88   :  { %v3742_v39 = vunpack.i.l.bf16 %v3741_v38  ;;  %v3743_v40 = vunpack.i.h.bf16 %v3741_v38 }
 0xf8a   :  { %2193 = vmatpush.msrb.mxu1 %v3742_v39 }
 0xf8c   :  { %2194 = vmatpush.msrb.mxu1 %v3743_v40 }
 0xf8f   :  { %v2054_v41 = vpop.permute.xlu0 %2053 }
 0xf90   :  { %3530 = vmatpush.xpose.msk.msra.mxu3 %vm691_vm15, %v2054_v41 }
 0xf94   :  { %3531 = vmatpush.xpose.msk.msra.mxu3 %vm691_vm15, %v2052_v37 }
 0xf97   :  { %3532 = vmatmul.msk.f32.vlgmr.msra.gmra.mxu3 %vm691_vm15, %v4937_v18 }
 0xf9f   :  { %3533 = vmatmul.msk.f32.gmra.mxu3 %vm691_vm15, %v4941_v1 }
 0xfc5   :  { %v2089_v43 = vpop.permute.xlu0 %2088 }
 0xfcd   :  { %v2091_v5 = vpop.permute.xlu1 %2090  ;;  %v2242_v45 = vpop.permute.xlu0 %2241 }
 0xfce   :  { %3534 = vmatpush.xpose.msk.msrb.mxu0 %vm691_vm15, %v2091_v5 }
 0xfd2   :  { %3535 = vmatpush.xpose.msk.msrb.mxu0 %vm691_vm15, %v2089_v43 }
 0xfd5   :  { %v2246_v44 = vpop.permute.xlu1 %2245  ;;  %3536 = vmatmul.msk.f32.vlgmr.msrb.gmra.mxu0 %vm691_vm15, %v4955_v35 }
 0xfd6   :  { %3542 = vmatpush.xpose.msk.msra.mxu0 %vm691_vm15, %v2248_v19 }
 0xfda   :  { %3543 = vmatpush.xpose.msk.msra.mxu0 %vm691_vm15, %v2246_v44 }
 0xfdd   :  { %3537 = vmatmul.msk.f32.gmra.mxu0 %vm691_vm15, %v4959_v36 }
 0xfe5   :  { %3544 = vmatmul.msk.f32.vlgmr.msra.gmra.mxu0 %vm691_vm15, %v2242_v45 }
 0xfed   :  { %3545 = vmatmul.msk.f32.gmra.mxu0 %vm691_vm15, %v2244_v23 }
0x101a   :  { %v2080_v30 = vpop.f32.mrf.mxu3 }
0x101b   :  { %v2123_v46 = vsel %vm296_vm0, %v2080_v30, -inf }
0x101c   :  { %2124 = vmax.xlane.f32.xlu1 %v2123_v46 }
0x1022   :  { %v2083_v48 = vpop.f32.mrf.mxu3 }
0x1023   :  { %v2126_v3 = vsel %vm296_vm0, %v2083_v48, -inf }
0x1024   :  { %2127 = vmax.xlane.f32.xlu0 %v2126_v3 }
0x1052   :  { %v4985_v49 = vpop.f32.mrf.mxu0 }
0x1053   :  { %v2129_v28 = vsel %vm296_vm0, %v4985_v49, -inf }
0x105a   :  { %v4987_v52 = vpop.f32.mrf.mxu0 }
0x105b   :  { %v2132_v24 = vsel %vm296_vm0, %v4987_v52, -inf }
0x1062   :  { %v2274_v50 = vpop.f32.mrf.mxu0 }
0x1063   :  { %v2319_v57 = vsel %vm296_vm0, %v2274_v50, -inf }
0x1064   :  { %2320 = vmax.xlane.f32.xlu2 %v2319_v57 }
0x106a   :  { %v2277_v51 = vpop.f32.mrf.mxu0 }
0x106b   :  { %v2322_v7 = vsel %vm296_vm0, %v2277_v51, -inf }
0x106c   :  { %2323 = vmax.xlane.f32.xlu1 %v2322_v7 }
0x107c   :  { %2280 = vrot.lane.b32.xlu2 %v4955_v35, %s4347_s25 }
0x1084   :  { %2282 = vrot.lane.b32.xlu2 %v4959_v36, %s4347_s25 }
0x1085   :  { %2284 = vrot.lane.b32.xlu1 %v4955_v35, %s4348_s11 }
0x108d   :  { %3745 = vrot.lane.b32.xlu1 %v4951_v56, %s4352_s13 }
0x108f   :  { %v2125_v54 = vpop.xlane.xlu1 %2124 }
0x1090   :  { %v2135_v55 = vsub.f32 %v2080_v30, %v2125_v54 }
0x1092   :  { %v2139_v60 = vmul.f32 1.442695, %v2135_v55 }
0x1094   :  { %3889 = vpow2.f32 %v2139_v60 }
0x1097   :  { %v2128_v61 = vpop.xlane.xlu0 %2127 }
0x1098   :  { %v2136_v59 = vsub.f32 %v2083_v48, %v2128_v61 }
0x109a   :  { %v3890_v58 = vpop.eup %3889  ;;  %v2141_v2 = vmul.f32 1.442695, %v2136_v59 }
0x109b   :  { %v2147_v14 = vsel %vm296_vm0, %v3890_v58, 0.0 }
0x109c   :  { %2148 = vadd.xlane.f32.xlu0 %v2147_v14  ;;  %3891 = vpow2.f32 %v2141_v2 }
0x10a2   :  { %v3892_v0 = vpop.eup %3891 }
0x10a3   :  { %v2150_v6 = vsel %vm296_vm0, %v3892_v0, 0.0 }
0x10b0   :  { %2286 = vrot.lane.b32.xlu0 %v4959_v36, %s4348_s11 }
0x10b7   :  { %2151 = vadd.xlane.f32.xlu1 %v2150_v6 }
0x10d0   :  { %2499 = vrot.lane.b32.xlu1 %v4941_v1, %s4349_s28 }
0x10d7   :  { %v2321_v9 = vpop.xlane.xlu2 %2320 }
0x10d8   :  { %v2331_v10 = vsub.f32 %v2274_v50, %v2321_v9  ;;  %2497 = vrot.lane.b32.xlu1 %v4937_v18, %s4349_s28 }
0x10da   :  { %v2335_v13 = vmul.f32 1.442695, %v2331_v10 }
0x10dc   :  { %3893 = vpow2.f32 %v2335_v13 }
0x10df   :  { %v2324_v12 = vpop.xlane.xlu1 %2323  ;;  %v2281_v38 = vpop.permute.xlu2 %2280 }
0x10e0   :  { %v2332_v4 = vsub.f32 %v2277_v51, %v2324_v12  ;;  %2493 = vrot.lane.b32.xlu1 %v4937_v18, %s4350_s0 }
0x10e2   :  { %v3894_v15 = vpop.eup %3893  ;;  %v2337_v16 = vmul.f32 1.442695, %v2332_v4 }
0x10e3   :  { %v2343_v17 = vsel %vm296_vm0, %v3894_v15, 0.0 }
0x10e4   :  { %3895 = vpow2.f32 %v2337_v16  ;;  %2344 = vadd.xlane.f32.xlu0 %v2343_v17  ;;  %v2436_v16 = vld [vmem:[#allocation13 + $0x14] sm:$0xf] }
0x10e5   :  { %v2444_v17 = vsel %vm1079_vm1, %v2436_v16, 0 }
0x10e6   :  { %2453 = vmatpush.bf16.msrb.mxu0 %v2444_v17 }
0x10e7   :  { %v2283_v40 = vpop.permute.xlu2 %2282 }
0x10ea   :  { %v3896_v20 = vpop.eup %3895 }
0x10eb   :  { %v2346_v22 = vsel %vm296_vm0, %v3896_v20, 0.0 }
0x10ec   :  { %2347 = vadd.xlane.f32.xlu2 %v2346_v22 }
0x10f4   :  { %2133 = vmax.xlane.f32.xlu2 %v2132_v24 }
0x10f7   :  { %v2285_v25 = vpop.permute.xlu1 %2284 }
0x10f8   :  { %2495 = vrot.lane.b32.xlu0 %v4941_v1, %s4350_s0 }
0x10ff   :  { %v3746_v26 = vpop.permute.xlu1 %3745 }
0x1100   :  { %v3747_v27 = vunpack.i.l.bf16 %v3746_v26  ;;  %v3748_v11 = vunpack.i.h.bf16 %v3746_v26 }
0x1102   :  { %2389 = vmatpush.msra.mxu2 %v3747_v27 }
0x1104   :  { %2390 = vmatpush.msra.mxu2 %v3748_v11 }
0x110a   :  { %2130 = vmax.xlane.f32.xlu1 %v2129_v28 }
0x110c   :  { %3750 = vrot.lane.b32.xlu2 %v5019_v29, %s5275_s3 }
0x110f   :  { %v2149_v31 = vpop.xlane.xlu0 %2148 }
0x1110   :  { %3897 = vrcp.f32 %v2149_v31 }
0x1116   :  { %v3898_v32 = vpop.eup %3897 }
0x1117   :  { %v2163_v8 = vmul.f32 %v3898_v32, %v3890_v58 }
0x1119   :  { %3538 = vmatmul.msk.f32.vlgmr.msrb.gmra.mxu1 %vm296_vm0, %v2163_v8 }
0x1122   :  { %v2287_v33 = vpop.permute.xlu0 %2286 }
0x1123   :  { %3546 = vmatpush.xpose.msk.msra.mxu1 %vm691_vm15, %v2287_v33 }
0x1127   :  { %3547 = vmatpush.xpose.msk.msra.mxu1 %vm691_vm15, %v2285_v25 }
0x112a   :  { %v2152_v37 = vpop.xlane.xlu1 %2151 }
0x112b   :  { %3899 = vrcp.f32 %v2152_v37 }
0x1131   :  { %v3900_v19 = vpop.eup %3899 }
0x1132   :  { %v2164_v23 = vmul.f32 %v3900_v19, %v3892_v0  ;;  %v2240_v0 = vld [vmem:[#allocation13 + $0x10] sm:$0xf] }
0x1133   :  { %v2472_v6 = vsel %vm1079_vm1, %v2240_v0, 0 }
0x1134   :  { %3539 = vmatmul.msk.f32.gmra.mxu1 %vm296_vm0, %v2164_v23 }
0x1135   :  { %2481 = vmatpush.bf16.msrb.mxu1 %v2472_v6 }
0x113c   :  { %3548 = vmatmul.msk.f32.vlgmr.msra.gmra.mxu1 %vm691_vm15, %v2281_v38 }
0x1142   :  { %v2500_v39 = vpop.permute.xlu1 %2499 }
0x1143   :  { %3558 = vmatpush.xpose.msk.msrb.mxu2 %vm691_vm15, %v2500_v39 }
0x1144   :  { %3549 = vmatmul.msk.f32.gmra.mxu1 %vm691_vm15, %v2283_v40 }
0x114a   :  { %v2498_v41 = vpop.permute.xlu1 %2497 }
0x114b   :  { %3559 = vmatpush.xpose.msk.msrb.mxu2 %vm691_vm15, %v2498_v41 }
0x1152   :  { %v2494_v51 = vpop.permute.xlu1 %2493 }
0x1157   :  { %v2345_v5 = vpop.xlane.xlu0 %2344 }
0x1158   :  { %3901 = vrcp.f32 %v2345_v5 }
0x115e   :  { %v3902_v43 = vpop.eup %3901 }
0x115f   :  { %v2359_v44 = vmul.f32 %v3902_v43, %v3894_v15  ;;  %v2348_v45 = vpop.xlane.xlu2 %2347 }
0x1160   :  { %3903 = vrcp.f32 %v2348_v45 }
0x1161   :  { %3550 = vmatmul.msk.f32.vlgmr.msra.gmra.mxu2 %vm296_vm0, %v2359_v44 }
0x1166   :  { %v3904_v30 = vpop.eup %3903 }
0x1167   :  { %v2134_v46 = vpop.xlane.xlu2 %2133  ;;  %v2360_v48 = vmul.f32 %v3904_v30, %v3896_v20 }
0x1168   :  { %v2138_v3 = vsub.f32 %v4987_v52, %v2134_v46 }
0x1169   :  { %3551 = vmatmul.msk.f32.gmra.mxu2 %vm296_vm0, %v2360_v48 }
0x116a   :  { %v2145_v50 = vmul.f32 1.442695, %v2138_v3  ;;  %v2496_v58 = vpop.permute.xlu0 %2495 }
0x116c   :  { %3905 = vpow2.f32 %v2145_v50 }
0x116f   :  { %v3751_v57 = vpop.permute.xlu2 %3750 }
0x1170   :  { %v3752_v7 = vunpack.i.l.bf16 %v3751_v57  ;;  %v3753_v55 = vunpack.i.h.bf16 %v3751_v57 }
0x1171   :  { %3560 = vmatmul.msk.f32.vlgmr.msrb.gmra.mxu2 %vm691_vm15, %v2494_v51 }
0x1172   :  { %v3906_v54 = vpop.eup %3905  ;;  %2228 = vmatpush.msrb.mxu3 %v3752_v7 }
0x1173   :  { %v2156_v60 = vsel %vm296_vm0, %v3906_v54, 0.0 }
0x1174   :  { %2229 = vmatpush.msrb.mxu3 %v3753_v55  ;;  %2157 = vadd.xlane.f32.xlu1 %v2156_v60 }
0x1179   :  { %3561 = vmatmul.msk.f32.gmra.mxu2 %vm691_vm15, %v2496_v58 }
0x117d   :  { %v2131_v52 = vpop.xlane.xlu1 %2130 }
0x117e   :  { %v2137_v14 = vsub.f32 %v4985_v49, %v2131_v52 }
0x1180   :  { %v2143_v61 = vmul.f32 1.442695, %v2137_v14 }
0x1182   :  { %3907 = vpow2.f32 %v2143_v61 }
0x1188   :  { %v3908_v59 = vpop.eup %3907 }
0x1189   :  { %v2153_v2 = vsel %vm296_vm0, %v3908_v59, 0.0 }
0x118a   :  { %2154 = vadd.xlane.f32.xlu0 %v2153_v2 }
0x118d   :  { %2538 = vrot.lane.b32.xlu1 %v4959_v36, %s4349_s28 }
0x1196   :  { %v2196_v49 = vpop.f32.mrf.mxu1 }
0x119e   :  { %3755 = vrot.lane.b32.xlu0 %v5019_v29, %s4352_s13 }
0x11a6   :  { %2532 = vrot.lane.b32.xlu0 %v4955_v35, %s4350_s0 }
0x11b1   :  { %v2199_v9 = vpop.f32.mrf.mxu1 }
0x11b2   :  { %v2237_v10 = vpack.c.bf16 %v2199_v9, %v2196_v49 }
0x11b4   :  { %3556 = vmatmul.msk.bf16.vlgmr.msrb.gmra.mxu1 %vm691_vm15, %v2237_v10 }
0x11b9   :  { %v2313_v13 = vpop.f32.mrf.mxu1 }
0x11ba   :  { %v2325_v12 = vsel %vm296_vm0, %v2313_v13, -inf }
0x11bb   :  { %2326 = vmax.xlane.f32.xlu2 %v2325_v12 }
0x11c1   :  { %v2316_v4 = vpop.f32.mrf.mxu1 }
0x11c2   :  { %v2328_v15 = vsel %vm296_vm0, %v2316_v4, -inf }
0x11c3   :  { %2329 = vmax.xlane.f32.xlu1 %v2328_v15 }
0x11d3   :  { %2536 = vrot.lane.b32.xlu2 %v4955_v35, %s4349_s28 }
0x11db   :  { %3760 = vrot.lane.b32.xlu2 %v4951_v56, %s4353_s12 }
0x11e4   :  { %v2392_v20 = vpop.f32.mrf.mxu2 }
0x11e7   :  { %v2158_v31 = vpop.xlane.xlu1 %2157 }
0x11ec   :  { %v2395_v22 = vpop.f32.mrf.mxu2 }
0x11ed   :  { %v2433_v24 = vpack.c.bf16 %v2395_v22, %v2392_v20 }
0x11ef   :  { %3554 = vmatmul.msk.bf16.vlgmr.msrb.gmra.mxu0 %vm691_vm15, %v2433_v24 }
0x11f4   :  { %v2526_v25 = vpop.f32.mrf.mxu2 }
0x11f5   :  { %v2571_v26 = vsel %vm296_vm0, %v2526_v25, -inf }
0x11f6   :  { %2572 = vmax.xlane.f32.xlu1 %v2571_v26 }
0x11fc   :  { %v2529_v27 = vpop.f32.mrf.mxu2 }
0x11fd   :  { %v2155_v11 = vpop.xlane.xlu0 %2154  ;;  %v2574_v28 = vsel %vm296_vm0, %v2529_v27, -inf }
0x11fe   :  { %3909 = vrcp.f32 %v2155_v11  ;;  %2575 = vmax.xlane.f32.xlu0 %v2574_v28 }
0x11ff   :  { %3911 = vrcp.f32 %v2158_v31  ;;  %v2539_v39 = vpop.permute.xlu1 %2538 }
0x1204   :  { %v3910_v32 = vpop.eup %3909 }
0x1205   :  { %v2165_v8 = vmul.f32 %v3910_v32, %v3908_v59  ;;  %v3912_v33 = vpop.eup %3911 }
0x1206   :  { %v2166_v37 = vmul.f32 %v3912_v33, %v3906_v54 }
0x1207   :  { %3540 = vmatmul.msk.f32.vlgmr.msrb.gmra.mxu3 %vm296_vm0, %v2165_v8 }
0x120f   :  { %2727 = vrot.lane.b32.xlu1 %v4941_v1, %s4351_s23  ;;  %3541 = vmatmul.msk.f32.gmra.mxu3 %vm296_vm0, %v2166_v37 }
0x1210   :  { %v3756_v19 = vpop.permute.xlu0 %3755 }
0x1211   :  { %v3757_v23 = vunpack.i.l.bf16 %v3756_v19  ;;  %v3758_v38 = vunpack.i.h.bf16 %v3756_v19 }
0x1212   :  { %2534 = vrot.lane.b32.xlu0 %v4959_v36, %s4350_s0 }
0x1213   :  { %2424 = vmatpush.msra.mxu3 %v3757_v23 }
0x1215   :  { %2425 = vmatpush.msra.mxu3 %v3758_v38 }
0x1217   :  { %3562 = vmatpush.xpose.msk.msrb.mxu3 %vm691_vm15, %v2539_v39  ;;  %2725 = vrot.lane.b32.xlu1 %v4937_v18, %s4351_s23 }
0x1218   :  { %v2533_v54 = vpop.permute.xlu0 %2532 }
0x122e   :  { %v2327_v40 = vpop.xlane.xlu2 %2326 }
0x122f   :  { %v2333_v41 = vsub.f32 %v2313_v13, %v2327_v40 }
0x1231   :  { %v2339_v5 = vmul.f32 1.442695, %v2333_v41  ;;  %v5098_v33 = vpop.f32.mrf.mxu1 }
0x1233   :  { %3913 = vpow2.f32 %v2339_v5 }
0x1236   :  { %v2537_v43 = vpop.permute.xlu2 %2536  ;;  %v2330_v44 = vpop.xlane.xlu1 %2329 }
0x1237   :  { %v2334_v45 = vsub.f32 %v2316_v4, %v2330_v44  ;;  %3563 = vmatpush.xpose.msk.msrb.mxu3 %vm691_vm15, %v2537_v43 }
0x1239   :  { %v2341_v30 = vmul.f32 1.442695, %v2334_v45  ;;  %v3914_v46 = vpop.eup %3913  ;;  %v5100_v37 = vpop.f32.mrf.mxu1 }
0x123a   :  { %v2349_v50 = vsel %vm296_vm0, %v3914_v46, 0.0 }
0x123b   :  { %3915 = vpow2.f32 %v2341_v30 }
0x123e   :  { %v3761_v48 = vpop.permute.xlu2 %3760 }
0x123f   :  { %v3762_v3 = vunpack.i.l.bf16 %v3761_v48  ;;  %v3763_v57 = vunpack.i.h.bf16 %v3761_v48 }
0x1241   :  { %2641 = vmatpush.msra.mxu2 %v3762_v3  ;;  %2350 = vadd.xlane.f32.xlu1 %v2349_v50  ;;  %v3916_v51 = vpop.eup %3915  ;;  %v2688_v3 = vld [vmem:[#allocation13 + $0x18] sm:$0xf] }
0x1242   :  { %v2352_v7 = vsel %vm296_vm0, %v3916_v51, 0.0  ;;  %v2696_v50 = vsel %vm1079_vm1, %v2688_v3, 0 }
0x1243   :  { %2642 = vmatpush.msra.mxu2 %v3763_v57  ;;  %2705 = vmatpush.bf16.msra.mxu0 %v2696_v50 }
0x1249   :  { %2353 = vadd.xlane.f32.xlu1 %v2352_v7 }
0x1262   :  { %2721 = vrot.lane.b32.xlu1 %v4937_v18, %s4354_s14 }
0x1269   :  { %v2573_v55 = vpop.xlane.xlu1 %2572 }
0x126a   :  { %v2583_v60 = vsub.f32 %v2526_v25, %v2573_v55  ;;  %2723 = vrot.lane.b32.xlu1 %v4941_v1, %s4354_s14 }
0x126c   :  { %v2587_v58 = vmul.f32 1.442695, %v2583_v60 }
0x126e   :  { %3917 = vpow2.f32 %v2587_v58 }
0x1271   :  { %v2576_v52 = vpop.xlane.xlu0 %2575 }
0x1272   :  { %v2584_v14 = vsub.f32 %v2529_v27, %v2576_v52  ;;  %2766 = vrot.lane.b32.xlu1 %v4959_v36, %s4351_s23 }
0x1274   :  { %v3918_v61 = vpop.eup %3917  ;;  %v2589_v59 = vmul.f32 1.442695, %v2584_v14 }
0x1275   :  { %v2595_v2 = vsel %vm296_vm0, %v3918_v61, 0.0 }
0x1276   :  { %3919 = vpow2.f32 %v2589_v59  ;;  %2596 = vadd.xlane.f32.xlu0 %v2595_v2 }
0x127a   :  { %2760 = vrot.lane.b32.xlu1 %v4955_v35, %s4354_s14 }
0x127c   :  { %v3920_v18 = vpop.eup %3919 }
0x127d   :  { %v2598_v0 = vsel %vm296_vm0, %v3920_v18, 0.0 }
0x127e   :  { %2599 = vadd.xlane.f32.xlu2 %v2598_v0 }
0x1281   :  { %v2728_v1 = vpop.permute.xlu1 %2727 }
0x1282   :  { %2762 = vrot.lane.b32.xlu1 %v4959_v36, %s4354_s14  ;;  %3572 = vmatpush.xpose.msk.msra.mxu1 %vm691_vm15, %v2728_v1 }
0x1284   :  { %v2535_v17 = vpop.permute.xlu0 %2534 }
0x1289   :  { %v2726_v6 = vpop.permute.xlu1 %2725 }
0x128a   :  { %3573 = vmatpush.xpose.msk.msra.mxu1 %vm691_vm15, %v2726_v6  ;;  %2764 = vrot.lane.b32.xlu0 %v4955_v35, %s4351_s23  ;;  %v2231_v49 = vpop.f32.mrf.mxu3 }
0x1292   :  { %v2234_v9 = vpop.f32.mrf.mxu3 }
0x1293   :  { %v2238_v10 = vpack.c.bf16 %v2234_v9, %v2231_v49 }
0x1295   :  { %3557 = vmatmul.msk.bf16.gmra.mxu1 %vm691_vm15, %v2238_v10 }
0x12b4   :  { %v2351_v13 = vpop.xlane.xlu1 %2350 }
0x12b5   :  { %3921 = vrcp.f32 %v2351_v13 }
0x12bb   :  { %v3922_v12 = vpop.eup %3921 }
0x12bc   :  { %v2361_v4 = vmul.f32 %v3922_v12, %v3914_v46  ;;  %v2354_v15 = vpop.xlane.xlu1 %2353 }
0x12bd   :  { %3923 = vrcp.f32 %v2354_v15 }
0x12be   :  { %3552 = vmatmul.msk.f32.vlgmr.msra.gmra.mxu3 %vm296_vm0, %v2361_v4 }
0x12c3   :  { %v3924_v36 = vpop.eup %3923 }
0x12c4   :  { %v2362_v16 = vmul.f32 %v3924_v36, %v3916_v51 }
0x12c6   :  { %3553 = vmatmul.msk.f32.gmra.mxu3 %vm296_vm0, %v2362_v16 }
0x12ce   :  { %3564 = vmatmul.msk.f32.vlgmr.msrb.gmra.mxu3 %vm691_vm15, %v2533_v54 }
0x12d4   :  { %v2722_v35 = vpop.permute.xlu1 %2721 }
0x12d5   :  { %3574 = vmatmul.msk.f32.vlgmr.msra.gmra.mxu1 %vm691_vm15, %v2722_v35 }
0x12d6   :  { %3565 = vmatmul.msk.f32.gmra.mxu3 %vm691_vm15, %v2535_v17 }
0x12dc   :  { %v2724_v20 = vpop.permute.xlu1 %2723 }
0x12dd   :  { %3575 = vmatmul.msk.f32.gmra.mxu1 %vm691_vm15, %v2724_v20 }
0x12e4   :  { %v2767_v22 = vpop.permute.xlu1 %2766 }
0x12e5   :  { %3576 = vmatpush.xpose.msk.msrb.mxu2 %vm691_vm15, %v2767_v22 }
0x12e9   :  { %v2597_v24 = vpop.xlane.xlu0 %2596 }
0x12ea   :  { %3925 = vrcp.f32 %v2597_v24 }
0x12ec   :  { %v2761_v32 = vpop.permute.xlu1 %2760 }
0x12f0   :  { %v3926_v25 = vpop.eup %3925 }
0x12f1   :  { %v2611_v26 = vmul.f32 %v3926_v25, %v3918_v61  ;;  %v2600_v27 = vpop.xlane.xlu2 %2599 }
0x12f2   :  { %3927 = vrcp.f32 %v2600_v27 }
0x12f3   :  { %3566 = vmatmul.msk.f32.vlgmr.msra.gmra.mxu2 %vm296_vm0, %v2611_v26 }
0x12f4   :  { %v2763_v8 = vpop.permute.xlu1 %2762 }
0x12f8   :  { %v3928_v11 = vpop.eup %3927 }
0x12f9   :  { %v2612_v28 = vmul.f32 %v3928_v11, %v3920_v18 }
0x12fb   :  { %3567 = vmatmul.msk.f32.gmra.mxu2 %vm296_vm0, %v2612_v28 }
0x12fc   :  { %v2765_v31 = vpop.permute.xlu0 %2764 }
0x12fd   :  { %3577 = vmatpush.xpose.msk.msrb.mxu2 %vm691_vm15, %v2765_v31 }
0x1303   :  { %3578 = vmatmul.msk.f32.vlgmr.msrb.gmra.mxu2 %vm691_vm15, %v2761_v32 }
0x130b   :  { %3579 = vmatmul.msk.f32.gmra.mxu2 %vm691_vm15, %v2763_v8 }
0x1312   :  { %v5102_v19 = vpop.f32.mrf.mxu1 }
0x131a   :  { %v5104_v39 = vpop.f32.mrf.mxu1 }
0x1341   :  { %v2427_v23 = vpop.f32.mrf.mxu3 }
0x1349   :  { %v2430_v38 = vpop.f32.mrf.mxu3 }
0x134a   :  { %v2434_v40 = vpack.c.bf16 %v2430_v38, %v2427_v23 }
0x134c   :  { %3555 = vmatmul.msk.bf16.gmra.mxu0 %vm691_vm15, %v2434_v40 }
0x1351   :  { %v2565_v41 = vpop.f32.mrf.mxu3 }
0x1352   :  { %v2754_v5 = vpop.f32.mrf.mxu1  ;;  %v2577_v43 = vsel %vm296_vm0, %v2565_v41, -inf }
0x1353   :  { %2578 = vmax.xlane.f32.xlu2 %v2577_v43  ;;  %v2799_v44 = vsel %vm296_vm0, %v2754_v5, -inf }
0x1354   :  { %2800 = vmax.xlane.f32.xlu0 %v2799_v44 }
0x1359   :  { %v2568_v45 = vpop.f32.mrf.mxu3 }
0x135a   :  { %v2757_v30 = vpop.f32.mrf.mxu1  ;;  %v2580_v46 = vsel %vm296_vm0, %v2568_v45, -inf }
0x135b   :  { %2581 = vmax.xlane.f32.xlu1 %v2580_v46  ;;  %v2802_v48 = vsel %vm296_vm0, %v2757_v30, -inf }
0x135c   :  { %2803 = vmax.xlane.f32.xlu2 %v2802_v48 }
0x1376   :  { %v2644_v57 = vpop.f32.mrf.mxu2 }
0x137e   :  { %v2647_v51 = vpop.f32.mrf.mxu2 }
0x137f   :  { %v2685_v7 = vpack.c.bf16 %v2647_v51, %v2644_v57 }
0x1381   :  { %3570 = vmatmul.msk.bf16.vlgmr.msra.gmra.mxu0 %vm691_vm15, %v2685_v7 }
0x1386   :  { %v2793_v54 = vpop.f32.mrf.mxu2 }
0x1387   :  { %v2805_v55 = vsel %vm296_vm0, %v2793_v54, -inf }
0x1388   :  { %2806 = vmax.xlane.f32.xlu2 %v2805_v55 }
0x138e   :  { %v2796_v60 = vpop.f32.mrf.mxu2 }
0x138f   :  { %v2808_v58 = vsel %vm296_vm0, %v2796_v60, -inf }
0x1390   :  { %2809 = vmax.xlane.f32.xlu2 %v2808_v58 }
0x13c6   :  { %v2579_v52 = vpop.xlane.xlu2 %2578 }
0x13c7   :  { %v2585_v14 = vsub.f32 %v2565_v41, %v2579_v52  ;;  %v2801_v61 = vpop.xlane.xlu0 %2800 }
0x13c8   :  { %v2811_v59 = vsub.f32 %v2754_v5, %v2801_v61 }
0x13c9   :  { %v2591_v2 = vmul.f32 1.442695, %v2585_v14 }
0x13ca   :  { %v2815_v18 = vmul.f32 1.442695, %v2811_v59 }
0x13cb   :  { %3929 = vpow2.f32 %v2591_v2  ;;  %v2916_v2 = vld [vmem:[#allocation13 + $0x1c] sm:$0xf] }
0x13cc   :  { %3931 = vpow2.f32 %v2815_v18 }
0x13ce   :  { %v2582_v0 = vpop.xlane.xlu1 %2581 }
0x13cf   :  { %v2586_v1 = vsub.f32 %v2568_v45, %v2582_v0  ;;  %v2804_v6 = vpop.xlane.xlu2 %2803  ;;  %v2924_v0 = vsel %vm1079_vm1, %v2916_v2, 0 }
0x13d0   :  { %v2812_v49 = vsub.f32 %v2757_v30, %v2804_v6  ;;  %2933 = vmatpush.bf16.msra.mxu2 %v2924_v0 }
0x13d1   :  { %v3930_v9 = vpop.eup %3929  ;;  %v2593_v10 = vmul.f32 1.442695, %v2586_v1 }
0x13d2   :  { %v3932_v13 = vpop.eup %3931  ;;  %v2817_v12 = vmul.f32 1.442695, %v2812_v49  ;;  %v2601_v4 = vsel %vm296_vm0, %v3930_v9, 0.0 }
0x13d3   :  { %3933 = vpow2.f32 %v2593_v10  ;;  %2602 = vadd.xlane.f32.xlu2 %v2601_v4  ;;  %v2823_v15 = vsel %vm296_vm0, %v3932_v13, 0.0 }
0x13d4   :  { %3935 = vpow2.f32 %v2817_v12  ;;  %2824 = vadd.xlane.f32.xlu0 %v2823_v15  ;;  %v2455_v15 = vpop.f32.mrf.mxu0 }
0x13d9   :  { %v3934_v36 = vpop.eup %3933 }
0x13da   :  { %v3936_v16 = vpop.eup %3935  ;;  %v2604_v35 = vsel %vm296_vm0, %v3934_v36, 0.0 }
0x13db   :  { %2605 = vadd.xlane.f32.xlu1 %v2604_v35  ;;  %v2826_v17 = vsel %vm296_vm0, %v3936_v16, 0.0 }
0x13dc   :  { %2827 = vadd.xlane.f32.xlu0 %v2826_v17 }
0x13eb   :  { %3765 = vrot.lane.b32.xlu2 %v5019_v29, %s4353_s12 }
0x13f0   :  { %3775 = vrot.lane.b32.xlu0 %v5019_v29, %s4355_s30 }
0x13f4   :  { %3770 = vrot.lane.b32.xlu1 %v4951_v56, %s4355_s30 }
0x13fb   :  { %v2807_v20 = vpop.xlane.xlu2 %2806 }
0x13fc   :  { %v2813_v22 = vsub.f32 %v2793_v54, %v2807_v20  ;;  %v2484_v20 = vadd.f32 %v5098_v33, %v2455_v15 }
0x13fe   :  { %v2819_v24 = vmul.f32 1.442695, %v2813_v22 }
0x1400   :  { %3937 = vpow2.f32 %v2819_v24 }
0x1403   :  { %v2810_v25 = vpop.xlane.xlu2 %2809 }
0x1404   :  { %v2814_v26 = vsub.f32 %v2796_v60, %v2810_v25 }
0x1406   :  { %v3938_v27 = vpop.eup %3937  ;;  %v2821_v11 = vmul.f32 1.442695, %v2814_v26  ;;  %v3790_v26 = vld [vmem:[#allocation15 + $0x1] ss:$0 sm:$0xff] }
0x1407   :  { %v2829_v28 = vsel %vm296_vm0, %v3938_v27, 0.0 }
0x1408   :  { %3939 = vpow2.f32 %v2821_v11 }
0x140e   :  { %v3940_v31 = vpop.eup %3939 }
0x140f   :  { %v2832_v32 = vsel %vm296_vm0, %v3940_v31, 0.0 }
0x1414   :  { %2830 = vadd.xlane.f32.xlu2 %v2829_v28 }
0x141e   :  { %2833 = vadd.xlane.f32.xlu1 %v2832_v32 }
0x1446   :  { %v2603_v29 = vpop.xlane.xlu2 %2602 }
0x1447   :  { %3941 = vrcp.f32 %v2603_v29  ;;  %v2825_v40 = vpop.xlane.xlu0 %2824 }
0x144d   :  { %v3942_v23 = vpop.eup %3941 }
0x144e   :  { %v3766_v8 = vpop.permute.xlu2 %3765  ;;  %v2606_v56 = vpop.xlane.xlu1 %2605  ;;  %v2613_v5 = vmul.f32 %v3942_v23, %v3930_v9 }
0x144f   :  { %v3767_v38 = vunpack.i.l.bf16 %v3766_v8  ;;  %v3768_v41 = vunpack.i.h.bf16 %v3766_v8  ;;  %3943 = vrcp.f32 %v2606_v56  ;;  %v2828_v44 = vpop.xlane.xlu0 %2827 }
0x1450   :  { %3945 = vrcp.f32 %v2825_v40 }
0x1451   :  { %2676 = vmatpush.msra.mxu3 %v3767_v38  ;;  %3947 = vrcp.f32 %v2828_v44 }
0x1453   :  { %2677 = vmatpush.msra.mxu3 %v3768_v41 }
0x1454   :  { %3568 = vmatmul.msk.f32.vlgmr.msra.gmra.mxu3 %vm296_vm0, %v2613_v5 }
0x1455   :  { %v3944_v43 = vpop.eup %3943 }
0x1456   :  { %v2614_v45 = vmul.f32 %v3944_v43, %v3934_v36  ;;  %v3946_v50 = vpop.eup %3945  ;;  %v2457_v36 = vpop.f32.mrf.mxu0 }
0x1457   :  { %v2839_v7 = vmul.f32 %v3946_v50, %v3932_v13  ;;  %v3948_v54 = vpop.eup %3947  ;;  %v2486_v28 = vadd.f32 %v5100_v37, %v2457_v36 }
0x1458   :  { %v2840_v55 = vmul.f32 %v3948_v54, %v3936_v16 }
0x145c   :  { %3569 = vmatmul.msk.f32.gmra.mxu3 %vm296_vm0, %v2614_v45 }
0x145e   :  { %v2460_v16 = vpop.f32.mrf.mxu0 }
0x145f   :  { %v2489_v37 = vadd.f32 %v5102_v19, %v2460_v16 }
0x1462   :  { %v3776_v30 = vpop.permute.xlu0 %3775 }
0x1463   :  { %v3777_v46 = vunpack.i.l.bf16 %v3776_v30  ;;  %v3778_v48 = vunpack.i.h.bf16 %v3776_v30 }
0x1465   :  { %2904 = vmatpush.msrb.mxu1 %v3777_v46 }
0x1466   :  { %v3771_v3 = vpop.permute.xlu1 %3770  ;;  %v2462_v35 = vpop.f32.mrf.mxu0 }
0x1467   :  { %v3772_v57 = vunpack.i.l.bf16 %v3771_v3  ;;  %2905 = vmatpush.msrb.mxu1 %v3778_v48  ;;  %v3773_v51 = vunpack.i.h.bf16 %v3771_v3  ;;  %v2491_v45 = vadd.f32 %v5104_v39, %v2462_v35 }
0x1469   :  { %2869 = vmatpush.msrb.mxu3 %v3772_v57 }
0x146b   :  { %2870 = vmatpush.msrb.mxu3 %v3773_v51 }
0x146c   :  { %3580 = vmatmul.msk.f32.vlgmr.msrb.gmra.mxu3 %vm296_vm0, %v2839_v7 }
0x146e   :  { %v2707_v17 = vpop.f32.mrf.mxu0 }
0x146f   :  { %v2717_v22 = vadd.f32 %v2707_v17, %v2484_v20 }
0x1474   :  { %3581 = vmatmul.msk.f32.gmra.mxu3 %vm296_vm0, %v2840_v55 }
0x1476   :  { %v2709_v11 = vpop.f32.mrf.mxu0 }
0x1477   :  { %v2718_v32 = vadd.f32 %v2709_v11, %v2486_v28 }
0x1487   :  { %v2831_v60 = vpop.xlane.xlu2 %2830 }
0x1488   :  { %3949 = vrcp.f32 %v2831_v60 }
0x148e   :  { %v3950_v58 = vpop.eup %3949 }
0x148f   :  { %v2841_v52 = vmul.f32 %v3950_v58, %v3938_v27 }
0x1491   :  { %3582 = vmatmul.msk.f32.vlgmr.msrb.gmra.mxu1 %vm296_vm0, %v2841_v52  ;;  %v2834_v14 = vpop.xlane.xlu1 %2833 }
0x1492   :  { %3951 = vrcp.f32 %v2834_v14 }
0x1498   :  { %v3952_v61 = vpop.eup %3951 }
0x1499   :  { %v2842_v59 = vmul.f32 %v3952_v61, %v3940_v31 }
0x149b   :  { %3583 = vmatmul.msk.f32.gmra.mxu1 %vm296_vm0, %v2842_v59 }
0x14d7   :  { %v2679_v18 = vpop.f32.mrf.mxu3 }
0x14df   :  { %v2682_v1 = vpop.f32.mrf.mxu3 }
0x14e0   :  { %v2686_v6 = vpack.c.bf16 %v2682_v1, %v2679_v18 }
0x14e2   :  { %3571 = vmatmul.msk.bf16.gmra.mxu0 %vm691_vm15, %v2686_v6 }
0x14ef   :  { %v2872_v49 = vpop.f32.mrf.mxu3 }
0x14f7   :  { %v2875_v9 = vpop.f32.mrf.mxu3 }
0x14f8   :  { %v2913_v10 = vpack.c.bf16 %v2875_v9, %v2872_v49 }
0x14fa   :  { %3584 = vmatmul.msk.bf16.vlgmr.msra.gmra.mxu2 %vm691_vm15, %v2913_v10 }
0x150e   :  { %v2907_v13 = vpop.f32.mrf.mxu1 }
0x1518   :  { %v2910_v12 = vpop.f32.mrf.mxu1 }
0x1519   :  { %v2914_v4 = vpack.c.bf16 %v2910_v12, %v2907_v13 }
0x151b   :  { %3585 = vmatmul.msk.bf16.gmra.mxu2 %vm691_vm15, %v2914_v4 }
0x157d   :  { %v2935_v24 = vpop.f32.mrf.mxu2 }
0x157e   :  { %v2945_v25 = vadd.f32 %v2935_v24, %v2717_v22  ;;  %v3658_v22 = vld [vmem:[#allocation16 + $0x18] sm:$0xff] }
0x157f   :  { %3116 = vmatpush.bf16.msra.mxu3 %v3658_v22 }
0x1580   :  { %v2949_v27 = vadd.f32 %v2945_v25, %v4871_v42  ;;  %v2712_v42 = vpop.f32.mrf.mxu0  ;;  %v3657_v25 = vld [vmem:[#allocation16 + $0x10] sm:$0xff] }
0x1581   :  { %v2719_v40 = vadd.f32 %v2712_v42, %v2489_v37 }
0x1582   :  { %v5140_v31 = vadd.f32 %v3790_v26, %v2949_v27 }
0x1583   :  { %3117 = vmatpush.bf16.msra.mxu3 %v3657_v25  ;;  %v3791_v25 = vld [vmem:[#allocation18 + $0x1] ss:$0 sm:$0xff] }
0x1584   :  { %v2962_v29 = vsel %vm337_vm2, %v5140_v31, 0.0 }
0x1585   :  { %v2937_v8 = vpop.f32.mrf.mxu2  ;;  %2963 = vadd.xlane.f32.xlu0 %v2962_v29 }
0x1586   :  { %v2946_v56 = vadd.f32 %v2937_v8, %v2718_v32 }
0x1588   :  { %v2950_v33 = vadd.f32 %v2946_v56, %v4876_v21  ;;  %v2714_v44 = vpop.f32.mrf.mxu0 }
0x1589   :  { %v2720_v21 = vadd.f32 %v2714_v44, %v2491_v45 }
0x158a   :  { %v5145_v23 = vadd.f32 %v3790_v26, %v2950_v33 }
0x158c   :  { %v2965_v38 = vsel %vm337_vm2, %v5145_v23, 0.0 }
0x158d   :  { %2966 = vadd.xlane.f32.xlu2 %v2965_v38 }
0x159e   :  { %v2940_v41 = vpop.f32.mrf.mxu2 }
0x159f   :  { %v2947_v5 = vadd.f32 %v2940_v41, %v2719_v40 }
0x15a1   :  { %v2951_v43 = vadd.f32 %v2947_v5, %v4881_v47  ;;  %v3972_v5 = vld [vmem:[#allocation12 + $0x4] sm:$0xf] }
0x15a3   :  { %v5152_v30 = vadd.f32 %v3790_v26, %v2951_v43  ;;  %v3050_v43 = vperm.slane %v3972_v5, 2 }
0x15a5   :  { %v2968_v46 = vsel %vm337_vm2, %v5152_v30, 0.0 }
0x15a6   :  { %v2942_v48 = vpop.f32.mrf.mxu2  ;;  %2969 = vadd.xlane.f32.xlu2 %v2968_v46 }
0x15a7   :  { %v2948_v3 = vadd.f32 %v2942_v48, %v2720_v21 }
0x15a9   :  { %v2952_v50 = vadd.f32 %v2948_v3, %v4886_v34  ;;  %v3055_v3 = vperm.slane %v3972_v5, 3 }
0x15ab   :  { %v5157_v19 = vadd.f32 %v3790_v26, %v2952_v50 }
0x15ad   :  { %v2971_v57 = vsel %vm337_vm2, %v5157_v19, 0.0 }
0x15ae   :  { %2972 = vadd.xlane.f32.xlu1 %v2971_v57 }
0x15f8   :  { %v2964_v47 = vpop.xlane.xlu0 %2963 }
0x15f9   :  { %v2974_v39 = vmul.f32 %v2964_v47, %v4550_v53 }
0x15fb   :  { %v5163_v51 = vsub.f32 %v5140_v31, %v2974_v39 }
0x15fd   :  { %v2982_v7 = vmul.f32 %v5163_v51, %v5163_v51 }
0x15ff   :  { %v2986_v54 = vsel %vm337_vm2, %v2982_v7, 0.0 }
0x1600   :  { %v2967_v55 = vpop.xlane.xlu2 %2966  ;;  %2987 = vadd.xlane.f32.xlu2 %v2986_v54 }
0x1601   :  { %v2975_v34 = vmul.f32 %v2967_v55, %v4550_v53 }
0x1603   :  { %v2979_v60 = vsub.f32 %v5145_v23, %v2975_v34 }
0x1605   :  { %v2983_v58 = vmul.f32 %v2979_v60, %v2979_v60 }
0x1607   :  { %v2989_v52 = vsel %vm337_vm2, %v2983_v58, 0.0 }
0x1608   :  { %2990 = vadd.xlane.f32.xlu0 %v2989_v52 }
0x1619   :  { %v2970_v14 = vpop.xlane.xlu2 %2969 }
0x161a   :  { %v2976_v61 = vmul.f32 %v2970_v14, %v4550_v53 }
0x161c   :  { %v5173_v59 = vsub.f32 %v5152_v30, %v2976_v61  ;;  %3060 = vrot.lane.b32.xlu0 %v4897_v63, %s5275_s3 }
0x161e   :  { %v2984_v2 = vmul.f32 %v5173_v59, %v5173_v59 }
0x1620   :  { %v2992_v18 = vsel %vm337_vm2, %v2984_v2, 0.0 }
0x1621   :  { %2993 = vadd.xlane.f32.xlu1 %v2992_v18  ;;  %v2973_v0 = vpop.xlane.xlu1 %2972 }
0x1622   :  { %v2977_v1 = vmul.f32 %v2973_v0, %v4550_v53 }
0x1624   :  { %v5182_v6 = vsub.f32 %v5157_v19, %v2977_v1  ;;  %3072 = vrot.lane.b32.xlu0 %v4915_v62, %s4356_s6 }
0x1626   :  { %v2985_v49 = vmul.f32 %v5182_v6, %v5182_v6 }
0x1628   :  { %v2995_v9 = vsel %vm337_vm2, %v2985_v49, 0.0 }
0x1629   :  { %2996 = vadd.xlane.f32.xlu2 %v2995_v9 }
0x163a   :  { %3070 = vrot.lane.b32.xlu1 %v4897_v63, %s4356_s6 }
0x1641   :  { %3062 = vrot.lane.b32.xlu2 %v4915_v62, %s5275_s3 }
0x1673   :  { %v2988_v10 = vpop.xlane.xlu2 %2987 }
0x1674   :  { %v2998_v13 = vmul.f32 %v2988_v10, %v4550_v53 }
0x1676   :  { %v3002_v12 = vadd.f32 1e-05, %v2998_v13 }
0x1678   :  { %3953 = vrsqrt.f32 %v3002_v12  ;;  %vm3012_vm1 = vweird.f32 %v3002_v12 }
0x167b   :  { %v2991_v4 = vpop.xlane.xlu0 %2990 }
0x167c   :  { %v2999_v15 = vmul.f32 %v2991_v4, %v4550_v53 }
0x167e   :  { %v3003_v36 = vadd.f32 1e-05, %v2999_v15  ;;  %v3954_v16 = vpop.eup %3953 }
0x167f   :  { %v3007_v17 = vmul.f32 %v3954_v16, %v3002_v12  ;;  %vm3013_vm0 = vweird.f32 %v3954_v16 }
0x1680   :  { %3955 = vrsqrt.f32 %v3003_v36  ;;  %vm3014_vm3 = vmor %vm3012_vm1, %vm3013_vm0  ;;  %vm3022_vm4 = vweird.f32 %v3003_v36 }
0x1681   :  { %v3008_v63 = vmul.f32 %v3954_v16, %v3007_v17 }
0x1683   :  { %v3009_v62 = vmul.f32 0.5, %v3008_v63 }
0x1685   :  { %v3010_v27 = vsub.f32 1.5, %v3009_v62 }
0x1686   :  { %v3956_v35 = vpop.eup %3955 }
0x1687   :  { %v3017_v20 = vmul.f32 %v3956_v35, %v3003_v36  ;;  %v3011_v8 = vmul.f32 %v3954_v16, %v3010_v27  ;;  %vm3023_vm15 = vweird.f32 %v3956_v35 }
0x1688   :  { %vm3024_vm5 = vmor %vm3022_vm4, %vm3023_vm15  ;;  %vm3341_vm15 = vcmask 392192  }
0x1689   :  { %v3018_v24 = vmul.f32 %v3956_v35, %v3017_v20  ;;  %v3015_v38 = vsel %vm3014_vm3, %v3954_v16, %v3011_v8 }
0x168a   :  { %v3046_v44 = vmul.f32 %v3015_v38, %v5163_v51 }
0x168b   :  { %v3019_v26 = vmul.f32 0.5, %v3018_v24  ;;  %v3660_v24 = vld [vmem:[#allocation19 + $0x18] sm:$0xff] }
0x168c   :  { %v3051_v50 = vmul.f32 %v3050_v43, %v3046_v44  ;;  %3201 = vmatpush.bf16.msrb.mxu0 %v3660_v24 }
0x168d   :  { %v3020_v11 = vsub.f32 1.5, %v3019_v26  ;;  %v3659_v26 = vld [vmem:[#allocation19 + $0x10] sm:$0xff] }
0x168e   :  { %v3056_v54 = vadd.f32 %v3055_v3, %v3051_v50 }
0x168f   :  { %v3021_v56 = vmul.f32 %v3956_v35, %v3020_v11 }
0x1690   :  { %3202 = vmatpush.bf16.msrb.mxu0 %v3659_v26 }
0x1691   :  { %v3025_v33 = vsel %vm3024_vm5, %v3956_v35, %v3021_v56 }
0x1692   :  { %v3047_v41 = vmul.f32 %v3025_v33, %v2979_v60 }
0x1694   :  { %v2994_v28 = vpop.xlane.xlu1 %2993  ;;  %v3052_v48 = vmul.f32 %v3050_v43, %v3047_v41 }
0x1695   :  { %v3000_v32 = vmul.f32 %v2994_v28, %v4550_v53 }
0x1696   :  { %v3057_v7 = vadd.f32 %v3055_v3, %v3052_v48 }
0x1697   :  { %v3004_v29 = vadd.f32 1e-05, %v3000_v32 }
0x1699   :  { %3957 = vrsqrt.f32 %v3004_v29  ;;  %vm3032_vm7 = vweird.f32 %v3004_v29 }
0x169c   :  { %v2997_v42 = vpop.xlane.xlu2 %2996 }
0x169d   :  { %v3001_v37 = vmul.f32 %v2997_v42, %v4550_v53  ;;  %v3061_v53 = vpop.permute.xlu0 %3060 }
0x169e   :  { %v3066_v58 = vmul.f32 %v3061_v53, %v3056_v54  ;;  %v3067_v52 = vmul.f32 %v3061_v53, %v3057_v7 }
0x169f   :  { %v3958_v40 = vpop.eup %3957  ;;  %v3005_v45 = vadd.f32 1e-05, %v3001_v37 }
0x16a0   :  { %v3027_v21 = vmul.f32 %v3958_v40, %v3004_v29  ;;  %vm3033_vm6 = vweird.f32 %v3958_v40 }
0x16a1   :  { %3959 = vrsqrt.f32 %v3005_v45  ;;  %vm3034_vm8 = vmor %vm3032_vm7, %vm3033_vm6  ;;  %vm3042_vm10 = vweird.f32 %v3005_v45 }
0x16a2   :  { %v3028_v46 = vmul.f32 %v3958_v40, %v3027_v21 }
0x16a4   :  { %v3029_v57 = vmul.f32 0.5, %v3028_v46  ;;  %v3063_v16 = vpop.permute.xlu2 %3062 }
0x16a5   :  { %v3073_v17 = vpop.permute.xlu0 %3072 }
0x16a6   :  { %v3030_v47 = vsub.f32 1.5, %v3029_v57 }
0x16a7   :  { %v3960_v39 = vpop.eup %3959 }
0x16a8   :  { %v3031_v55 = vmul.f32 %v3958_v40, %v3030_v47  ;;  %v3037_v34 = vmul.f32 %v3960_v39, %v3005_v45  ;;  %vm3043_vm9 = vweird.f32 %v3960_v39 }
0x16a9   :  { %vm3044_vm11 = vmor %vm3042_vm10, %vm3043_vm9 }
0x16aa   :  { %v3038_v60 = vmul.f32 %v3960_v39, %v3037_v34  ;;  %v3035_v51 = vsel %vm3034_vm8, %v3958_v40, %v3031_v55 }
0x16ab   :  { %v3048_v2 = vmul.f32 %v3035_v51, %v5173_v59 }
0x16ac   :  { %v3039_v14 = vmul.f32 0.5, %v3038_v60  ;;  %v3071_v61 = vpop.permute.xlu1 %3070 }
0x16ad   :  { %v3076_v18 = vadd.f32 %v3071_v61, %v3066_v58  ;;  %v3077_v0 = vadd.f32 %v3071_v61, %v3067_v52  ;;  %v3053_v10 = vmul.f32 %v3050_v43, %v3048_v2 }
0x16ae   :  { %v3040_v1 = vsub.f32 1.5, %v3039_v14 }
0x16af   :  { %v3087_v49 = vpack.c.bf16 %v3077_v0, %v3076_v18  ;;  %v3058_v15 = vadd.f32 %v3055_v3, %v3053_v10 }
0x16b0   :  { %v3041_v9 = vmul.f32 %v3960_v39, %v3040_v1 }
0x16b1   :  { %3594 = vmatmul.msk.bf16.vlgmr.msra.gmra.mxu3 %vm337_vm2, %v3087_v49  ;;  %v3068_v35 = vmul.f32 %v3063_v16, %v3058_v15 }
0x16b2   :  { %v3045_v13 = vsel %vm3044_vm11, %v3960_v39, %v3041_v9 }
0x16b3   :  { %v3049_v12 = vmul.f32 %v3045_v13, %v5182_v6  ;;  %v3078_v22 = vadd.f32 %v3073_v17, %v3068_v35 }
0x16b5   :  { %v3054_v4 = vmul.f32 %v3050_v43, %v3049_v12  ;;  %v3662_v12 = vld [vmem:[#allocation22 + $0x8] sm:$0xff] }
0x16b6   :  { %3252 = vmatpush.bf16.msra.mxu1 %v3662_v12 }
0x16b7   :  { %v3059_v36 = vadd.f32 %v3055_v3, %v3054_v4  ;;  %v3661_v4 = vld [vmem:[#allocation22] sm:$0xff] }
0x16b9   :  { %v3069_v59 = vmul.f32 %v3063_v16, %v3059_v36  ;;  %v3792_v36 = vld [vmem:[#allocation21 + $0x1] ss:$0 sm:$0xff] }
0x16ba   :  { %3253 = vmatpush.bf16.msra.mxu1 %v3661_v4 }
0x16bb   :  { %v3079_v20 = vadd.f32 %v3073_v17, %v3069_v59 }
0x16bd   :  { %v3088_v63 = vpack.c.bf16 %v3079_v20, %v3078_v22 }
0x16c1   :  { %3595 = vmatmul.msk.bf16.gmra.mxu3 %vm337_vm2, %v3088_v63 }
0x1734   :  { %v3119_v62 = vpop.f32.mrf.mxu3 }
0x1735   :  { %v3120_v27 = vadd.f32 %v3791_v25, %v3119_v62 }
0x1737   :  { %v3129_v6 = vmul.f32 %v3120_v27, %v3120_v27 }
0x1739   :  { %v3133_v11 = vmul.f32 %v3129_v6, %v3120_v27 }
0x173b   :  { %v3137_v28 = vmul.f32 0.044715, %v3133_v11  ;;  %v3664_v11 = vld [vmem:[%s5258_s18 + $0x8] sm:$0xff] }
0x173c   :  { %v3121_v32 = vpop.f32.mrf.mxu3 }
0x173d   :  { %v3141_v29 = vadd.f32 %v3137_v28, %v3120_v27  ;;  %v3122_v8 = vadd.f32 %v3791_v25, %v3121_v32  ;;  %v3793_v28 = vld [vmem:[%s5257_s17] ss:$0 sm:$0xff] }
0x173f   :  { %v3145_v56 = vmul.f32 0.7978846, %v3141_v29  ;;  %v3130_v33 = vmul.f32 %v3122_v8, %v3122_v8 }
0x1741   :  { %v3134_v38 = vmul.f32 %v3130_v33, %v3122_v8  ;;  %3961 = vtanh.f32 %v3145_v56 }
0x1743   :  { %v3138_v42 = vmul.f32 0.044715, %v3134_v38 }
0x1744   :  { %v3124_v37 = vpop.f32.mrf.mxu3 }
0x1745   :  { %v3142_v40 = vadd.f32 %v3138_v42, %v3122_v8  ;;  %v3125_v41 = vadd.f32 %v3791_v25, %v3124_v37 }
0x1747   :  { %v3146_v5 = vmul.f32 0.7978846, %v3142_v40  ;;  %v3131_v43 = vmul.f32 %v3125_v41, %v3125_v41  ;;  %v3962_v44 = vpop.eup %3961 }
0x1748   :  { %v3153_v46 = vadd.f32 1.0, %v3962_v44 }
0x1749   :  { %3963 = vtanh.f32 %v3146_v5  ;;  %v3135_v45 = vmul.f32 %v3131_v43, %v3125_v41 }
0x174a   :  { %v3157_v7 = vmul.f32 0.5, %v3153_v46 }
0x174b   :  { %v3139_v21 = vmul.f32 0.044715, %v3135_v45 }
0x174c   :  { %v3126_v48 = vpop.f32.mrf.mxu3  ;;  %v3161_v60 = vmul.f32 %v3157_v7, %v3120_v27 }
0x174d   :  { %v3143_v3 = vadd.f32 %v3139_v21, %v3125_v41  ;;  %v3127_v50 = vadd.f32 %v3791_v25, %v3126_v48 }
0x174f   :  { %v3964_v57 = vpop.eup %3963  ;;  %v3147_v47 = vmul.f32 0.7978846, %v3143_v3  ;;  %v3132_v39 = vmul.f32 %v3127_v50, %v3127_v50  ;;  %v3794_v3 = vld [vmem:[%s5259_s19] ss:$0 sm:$0xff] }
0x1750   :  { %v3154_v54 = vadd.f32 1.0, %v3964_v57 }
0x1751   :  { %v3136_v53 = vmul.f32 %v3132_v39, %v3127_v50  ;;  %3965 = vtanh.f32 %v3147_v47 }
0x1752   :  { %v3158_v55 = vmul.f32 0.5, %v3154_v54 }
0x1753   :  { %v3140_v34 = vmul.f32 0.044715, %v3136_v53 }
0x1754   :  { %v3162_v51 = vmul.f32 %v3158_v55, %v3122_v8 }
0x1755   :  { %v3144_v58 = vadd.f32 %v3140_v34, %v3127_v50 }
0x1756   :  { %v3172_v52 = vpack.c.bf16 %v3162_v51, %v3161_v60 }
0x1757   :  { %v3148_v14 = vmul.f32 0.7978846, %v3144_v58  ;;  %v3966_v61 = vpop.eup %3965 }
0x1758   :  { %3604 = vmatmul.msk.bf16.vlgmr.msrb.gmra.mxu0 %vm337_vm2, %v3172_v52  ;;  %v3155_v2 = vadd.f32 1.0, %v3966_v61 }
0x1759   :  { %3967 = vtanh.f32 %v3148_v14 }
0x175a   :  { %v3159_v0 = vmul.f32 0.5, %v3155_v2 }
0x175c   :  { %v3163_v9 = vmul.f32 %v3159_v0, %v3125_v41 }
0x175f   :  { %v3968_v18 = vpop.eup %3967 }
0x1760   :  { %v3156_v1 = vadd.f32 1.0, %v3968_v18 }
0x1762   :  { %v3160_v49 = vmul.f32 0.5, %v3156_v1 }
0x1764   :  { %v3164_v10 = vmul.f32 %v3160_v49, %v3127_v50 }
0x1766   :  { %v3173_v13 = vpack.c.bf16 %v3164_v10, %v3163_v9 }
0x1768   :  { %3605 = vmatmul.msk.bf16.gmra.mxu0 %vm337_vm2, %v3173_v13 }
0x17d5   :  { %v3204_v15 = vpop.f32.mrf.mxu0 }
0x17d6   :  { %v3205_v16 = vadd.f32 %v3792_v36, %v3204_v15 }
0x17d8   :  { %v3214_v17 = vadd.f32 %v3205_v16, %v5140_v31  ;;  %v3666_v31 = vld [vmem:[%s5258_s18 + $0x18] sm:$0xff] }
0x17d9   :  { %3326 = vmatpush.bf16.msrb.mxu2 %v3666_v31 }
0x17dd   :  { %v3206_v35 = vpop.f32.mrf.mxu0 }
0x17de   :  { %v3207_v59 = vadd.f32 %v3792_v36, %v3206_v35 }
0x17e0   :  { %v3215_v20 = vadd.f32 %v3207_v59, %v5145_v23  ;;  %v3665_v23 = vld [vmem:[%s5258_s18 + $0x10] sm:$0xff] }
0x17e1   :  { %3327 = vmatpush.bf16.msrb.mxu2 %v3665_v23 }
0x17e2   :  { %v3223_v22 = vpack.c.bf16 %v3215_v20, %v3214_v17 }
0x17e4   :  { %3614 = vmatmul.msk.bf16.vlgmr.msra.gmra.mxu1 %vm337_vm2, %v3223_v22 }
0x17e5   :  { %v3209_v63 = vpop.f32.mrf.mxu0  ;;  %3328 = vmatpush.bf16.msrb.mxu2 %v3664_v11 }
0x17e6   :  { %v3210_v24 = vadd.f32 %v3792_v36, %v3209_v63 }
0x17e8   :  { %v3216_v26 = vadd.f32 %v3210_v24, %v5152_v30  ;;  %v3663_v30 = vld [vmem:[%s5258_s18] sm:$0xff] }
0x17e9   :  { %3329 = vmatpush.bf16.msrb.mxu2 %v3663_v30 }
0x17ed   :  { %v3211_v25 = vpop.f32.mrf.mxu0 }
0x17ee   :  { %v3212_v62 = vadd.f32 %v3792_v36, %v3211_v25 }
0x17f0   :  { %v3217_v27 = vadd.f32 %v3212_v62, %v5157_v19 }
0x17f2   :  { %v3224_v6 = vpack.c.bf16 %v3217_v27, %v3216_v26 }
0x17f4   :  { %3615 = vmatmul.msk.bf16.gmra.mxu1 %vm337_vm2, %v3224_v6 }
0x1861   :  { %v3255_v19 = vpop.f32.mrf.mxu1 }
0x1862   :  { %v3256_v32 = vadd.f32 %v3793_v28, %v3255_v19 }
0x1864   :  { %v3269_v8 = vmul.f32 0.01, %v3256_v32  ;;  %vm3265_vm2 = vcmp.ge.f32.partialorder %v3256_v32, 0.0 }
0x1866   :  { %v3273_v38 = vsel %vm3265_vm2, %v3256_v32, %v3269_v8 }
0x1869   :  { %v3257_v29 = vpop.f32.mrf.mxu1 }
0x186a   :  { %v3258_v56 = vadd.f32 %v3793_v28, %v3257_v29 }
0x186c   :  { %vm3266_vm12 = vcmp.ge.f32.partialorder %v3258_v56, 0.0  ;;  %v3270_v33 = vmul.f32 0.01, %v3258_v56 }
0x186e   :  { %v3274_v42 = vsel %vm3266_vm12, %v3258_v56, %v3270_v33 }
0x186f   :  { %v3286_v37 = vpack.c.bf16 %v3274_v42, %v3273_v38 }
0x1871   :  { %v3260_v40 = vpop.f32.mrf.mxu1  ;;  %3632 = vmatmul.msk.bf16.vlgmr.msrb.gmra.mxu2 %vm3315_vm13, %v3286_v37 }
0x1872   :  { %v3261_v41 = vadd.f32 %v3793_v28, %v3260_v40 }
0x1874   :  { %v3271_v43 = vmul.f32 0.01, %v3261_v41  ;;  %vm3267_vm14 = vcmp.ge.f32.partialorder %v3261_v41, 0.0 }
0x1876   :  { %v3275_v21 = vsel %vm3267_vm14, %v3261_v41, %v3271_v43 }
0x1879   :  { %v3262_v5 = vpop.f32.mrf.mxu1 }
0x187a   :  { %v3263_v44 = vadd.f32 %v3793_v28, %v3262_v5 }
0x187c   :  { %vm3268_vm0 = vcmp.ge.f32.partialorder %v3263_v44, 0.0  ;;  %v3272_v45 = vmul.f32 0.01, %v3263_v44 }
0x187e   :  { %v3276_v46 = vsel %vm3268_vm0, %v3263_v44, %v3272_v45 }
0x187f   :  { %v3287_v48 = vpack.c.bf16 %v3276_v46, %v3275_v21 }
0x1881   :  { %3633 = vmatmul.msk.bf16.gmra.mxu2 %vm3315_vm13, %v3287_v48 }
0x18f4   :  { %v3331_v50 = vpop.f32.mrf.mxu2 }
0x18f5   :  { %v3332_v57 = vadd.f32 %v3794_v3, %v3331_v50 }
0x18f7   :  { %3342 = vst.msk [vmem:[%s5260_s20] sm:$0xff] %vm3341_vm15, %v3332_v57 }
0x18fc   :  { %v3333_v47 = vpop.f32.mrf.mxu2 }
0x18fd   :  { %v3334_v39 = vadd.f32 %v3794_v3, %v3333_v47 }
0x18ff   :  { %3343 = vst.msk [vmem:[%s5260_s20 + $0x8] sm:$0xff] %vm3341_vm15, %v3334_v39 }
0x1904   :  { %v3336_v7 = vpop.f32.mrf.mxu2 }
0x1905   :  { %v3337_v54 = vadd.f32 %v3794_v3, %v3336_v7 }
0x1907   :  { %3344 = vst.msk [vmem:[%s5260_s20 + $0x10] sm:$0xff] %vm3341_vm15, %v3337_v54 }
0x190c   :  { %v3338_v53 = vpop.f32.mrf.mxu2 }
0x190d   :  { %v3339_v55 = vadd.f32 %v3794_v3, %v3338_v53 }
0x190f   :  { %3345 = vst.msk [vmem:[%s5260_s20 + $0x18] sm:$0xff] %vm3341_vm15, %v3339_v55 }
0x1910   :  { %3350 = vsyncpa [#allocation3], 1 }
0x1911   :  { %3351 = vsyncpa [#allocation5], 1 }
0x1912   :  { %3352 = vsyncpa [#allocation8], 1 }
0x1913   :  { %3353 = vsyncpa [#allocation11], 1 }
0x1914   :  { %3354 = vsyncpa [#allocation14], 1 }
0x1915   :  { %3355 = vsyncpa [#allocation17], 1 }
0x1916   :  { %3356 = vsyncpa [#allocation20], 1 }
0x1917   :  { %3357 = vsyncpa [#allocation23], 1 }

</bundles_post_ra>
